<compile_context>
chip_gen: v7x
topology: tpu7x:2x2x1
jax: 0.10.0
libtpu: 0.0.40
codegen_flags: <defaults>
</compile_context>

<pallas_src>
import functools

import numpy as np
import jax
import jax.numpy as jnp
from jax.experimental import pallas as pl
from jax.experimental.pallas import tpu as pltpu

CH_SMOL = 24    # chansPerSmol
CH_SLOT = 8     # chansPerSlot
CH_COMP = 8     # chansComp
TILE_B = 2048   # boards per grid step (lanes of every intermediate / the output)


def tttv_kernel(x_ref, wconv_ref, bs_ref, wcomb_ref, bc_ref,
                w1_ref, b1_ref, w2_ref, b2_ref, o_ref, *, exact_sigmoid):
    cdt = wconv_ref.dtype          # MXU operand dtype (bf16 default / f32); accumulate f32

    # Layer 1 — Conv2d(1->24, k3, s3) as (216,81) x (TB,81)^T -> (216, TB).
    # Contracting the 81-dim of BOTH operands does the batch "transpose" inside
    # the kernel (XLU/MXU), so the batch lives in lanes from here to the output.
    s = jax.lax.dot_general(wconv_ref[...], x_ref[...],
                            dimension_numbers=(((1,), (1,)), ((), ())),
                            preferred_element_type=jnp.float32)
    s = jnp.maximum(s + bs_ref[...], 0.0)                                # ReLU, f32

    # Layer 2 — Conv1d(24->8, k=1) as block-diagonal (72,216) @ (216,TB).
    f = jnp.dot(wcomb_ref[...], s.astype(cdt), preferred_element_type=jnp.float32)
    f = jnp.maximum(f + bc_ref[...], 0.0)                                # ReLU, f32

    # Layer 3 — Linear(72->8); f's row order (cs*9+p) matches torch's flatten,
    # so W1 is used completely unpermuted.
    h = jnp.dot(w1_ref[...], f.astype(cdt), preferred_element_type=jnp.float32)
    h = jnp.maximum(h + b1_ref[...], 0.0)                                # (8, TB) f32

    # Layer 4 — Linear(8->1) on the VPU/XLU (an M=1 MXU push would waste a full
    # drain): broadcast-multiply by w2 (8,1) and reduce over the 8 sublanes.
    y = jnp.sum(h * w2_ref[...], axis=0, keepdims=True) + b2_ref[...]   # (1, TB)

    # Sigmoid — exp and (approx) reciprocal both land on the otherwise-idle EUP.
    e = jnp.exp(-y)
    if exact_sigmoid:
        o_ref[...] = 1.0 / (1.0 + e)
    else:
        o_ref[...] = pl.reciprocal(1.0 + e, approx=True)


def _pack_params(params, compute_dtype):
    """One-time host-side packing of the torch parameters into matmul weights."""
    # Conv2d as a (216, 81) matrix on the row-major flattened 9x9 board:
    #   Wconv[co*9 + p, 9*(3i+kh) + (3j+kw)] = smol_w[co, 0, kh, kw],  p = 3i + j
    sel = np.zeros((9, 9, 81), np.float32)                 # [p, k, flat_board_idx]
    for i in range(3):
        for j in range(3):
            for kh in range(3):
                for kw in range(3):
                    sel[3 * i + j, 3 * kh + kw, 9 * (3 * i + kh) + (3 * j + kw)] = 1.0
    wsmol = np.asarray(params["smol_w"], np.float32).reshape(CH_SMOL, 9)
    wconv = np.einsum("ck,pkr->cpr", wsmol, sel).reshape(CH_SMOL * 9, 81)
    bs = np.broadcast_to(np.asarray(params["smol_b"], np.float32)[:, None],
                         (CH_SMOL, 9)).reshape(-1, 1)

    # Conv1d(k=1) as block-diagonal (72, 216); row order cs*9+p == torch reshape(-1).
    wc = np.asarray(params["comb_w"], np.float32).reshape(CH_SLOT, CH_SMOL)
    wcomb = np.einsum("sc,pq->spcq", wc, np.eye(9, dtype=np.float32))
    wcomb = wcomb.reshape(CH_SLOT * 9, CH_SMOL * 9)
    bc = np.broadcast_to(np.asarray(params["comb_b"], np.float32)[:, None],
                         (CH_SLOT, 9)).reshape(-1, 1)

    w1 = np.asarray(params["w1"], np.float32).reshape(CH_COMP, CH_SLOT * 9)   # (8, 72)
    b1 = np.asarray(params["b1"], np.float32).reshape(CH_COMP, 1)
    w2 = np.asarray(params["w2"], np.float32).reshape(1, CH_COMP).T           # (8, 1) for VPU layer
    b2 = np.asarray(params["b2"], np.float32).reshape(1, 1)

    cast = lambda a: jnp.asarray(a, compute_dtype)        # MXU operands
    f32 = lambda a: jnp.asarray(a, jnp.float32)           # biases / VPU layer stay f32
    return (cast(wconv), f32(bs), cast(wcomb), f32(bc),
            cast(w1), f32(b1), f32(w2), f32(b2))


def tttv_forward_batch(boards, params, *, compute_dtype=jnp.bfloat16, tile_b=TILE_B):
    """Run the TTTV forward on a batch of boards; returns (B,) sigmoid values.

    bf16 operands (default) are exact for ternary {-1,0,+1} boards; pass
    compute_dtype=jnp.float32 for a bit-tight validation path.
    """
    boards = jnp.asarray(boards).reshape(-1, 81).astype(compute_dtype)   # (B, 81), no transpose/pad
    b = boards.shape[0]
    n_tiles = pl.cdiv(b, tile_b)
    weights = _pack_params(params, compute_dtype)
    exact_sigmoid = np.dtype(compute_dtype) == np.dtype(np.float32)

    full = lambda shape: pl.BlockSpec(shape, lambda i: (0, 0))   # VMEM-resident constants
    out = pl.pallas_call(
        functools.partial(tttv_kernel, exact_sigmoid=exact_sigmoid),
        out_shape=jax.ShapeDtypeStruct((1, b), jnp.float32),
        grid=(n_tiles,),
        in_specs=[
            pl.BlockSpec((tile_b, 81), lambda i: (i, 0)),        # boards; batch -> lanes in-kernel
            full((CH_SMOL * 9, 81)), full((CH_SMOL * 9, 1)),
            full((CH_SLOT * 9, CH_SMOL * 9)), full((CH_SLOT * 9, 1)),
            full((CH_COMP, CH_SLOT * 9)), full((CH_COMP, 1)),
            full((CH_COMP, 1)), full((1, 1)),
        ],
        out_specs=pl.BlockSpec((1, tile_b), lambda i: (0, i)),   # lane-dense output
        compiler_params=pltpu.CompilerParams(
            dimension_semantics=("parallel",)),
    )(boards, *weights)
    return out[0]


def tttv_forward(x, params, **kw):
    """Matches the torch module: single board (any shape with 81 elems) -> shape (1,)."""
    return tttv_forward_batch(jnp.asarray(x).reshape(1, 81), params, **kw)


def reference_batch(boards, params):
    """Vectorized numpy re-implementation of the PyTorch forward (per board)."""
    boards = np.asarray(boards, np.float32).reshape(-1, 9, 9)
    B = boards.shape[0]
    pat = boards.reshape(B, 3, 3, 3, 3).transpose(0, 1, 3, 2, 4).reshape(B, 9, 9)
    ws = np.asarray(params["smol_w"]).reshape(CH_SMOL, 9)
    smol = np.maximum(np.einsum("bpk,ck->bcp", pat, ws)
                      + np.asarray(params["smol_b"])[None, :, None], 0.0)    # (B,24,9)
    wc = np.asarray(params["comb_w"]).reshape(CH_SLOT, CH_SMOL)
    comb = np.maximum(np.einsum("sc,bcp->bsp", wc, smol)
                      + np.asarray(params["comb_b"])[None, :, None], 0.0)    # (B,8,9)
    f = comb.reshape(B, CH_SLOT * 9)                                         # torch flatten
    h = np.maximum(f @ np.asarray(params["w1"]).T + np.asarray(params["b1"]), 0.0)
    y = h @ np.asarray(params["w2"]).T + np.asarray(params["b2"])
    return 1.0 / (1.0 + np.exp(-y.reshape(B)))


if __name__ == "__main__":
    key = jax.random.PRNGKey(0)
    kx, k0, k1, k2, k3, k4, k5, k6, k7 = jax.random.split(key, 9)

    params = {
        "smol_w": 0.2 * jax.random.normal(k0, (CH_SMOL, 1, 3, 3), jnp.float32),
        "smol_b": 0.1 * jax.random.normal(k1, (CH_SMOL,), jnp.float32),
        "comb_w": 0.2 * jax.random.normal(k2, (CH_SLOT, CH_SMOL, 1), jnp.float32),
        "comb_b": 0.1 * jax.random.normal(k3, (CH_SLOT,), jnp.float32),
        "w1":     0.2 * jax.random.normal(k4, (CH_COMP, CH_SLOT * 9), jnp.float32),
        "b1":     0.1 * jax.random.normal(k5, (CH_COMP,), jnp.float32),
        "w2":     0.2 * jax.random.normal(k6, (1, CH_COMP), jnp.float32),
        "b2":     0.1 * jax.random.normal(k7, (1,), jnp.float32),
    }
    # Real ultimate-TTT boards are ternary {-1, 0, +1} (exact in bf16).
    B = 300   # deliberately NOT a multiple of the tile -> exercises partial blocks
    x = jax.random.randint(kx, (B, 9, 9), minval=-1, maxval=2).astype(jnp.float32)

    y_ref = reference_batch(x, params)

    # Default fast path: bf16 operands + f32 accumulation, TILE_B=2048 (1 partial tile).
    y_fast = jax.block_until_ready(tttv_forward_batch(x, params))
    assert y_fast.shape == (B,), y_fast.shape
    np.testing.assert_allclose(np.asarray(y_fast), y_ref, rtol=0, atol=2e-2)

    # f32 validation path; tile_b=256 -> 2 grid steps including a partial trailing block.
    y32 = jax.block_until_ready(
        tttv_forward_batch(x, params, compute_dtype=jnp.float32, tile_b=256))
    np.testing.assert_allclose(np.asarray(y32), y_ref, rtol=1e-5, atol=1e-5)

    # Single-board API matches the torch module's output shape (1,).
    y1 = jax.block_until_ready(tttv_forward(x[0], params, compute_dtype=jnp.float32))
    assert y1.shape == (1,), y1.shape
    np.testing.assert_allclose(np.asarray(y1), y_ref[:1], rtol=1e-5, atol=1e-5)

    print("KERNEL_OK")
</pallas_src>

<mosaic_0001>
module attributes {stable_mosaic.version = 11 : i64} {
  func.func @tttv_kernel(%arg0: i32, %arg1: memref<2048x81xbf16, #tpu.memory_space<vmem>>, %arg2: memref<216x81xbf16, #tpu.memory_space<vmem>>, %arg3: memref<216x1xf32, #tpu.memory_space<vmem>>, %arg4: memref<72x216xbf16, #tpu.memory_space<vmem>>, %arg5: memref<72x1xf32, #tpu.memory_space<vmem>>, %arg6: memref<8x72xbf16, #tpu.memory_space<vmem>>, %arg7: memref<8x1xf32, #tpu.memory_space<vmem>>, %arg8: memref<8x1xf32, #tpu.memory_space<vmem>>, %arg9: memref<1x1xf32, #tpu.memory_space<vmem>>, %arg10: memref<1x2048xf32, #tpu.memory_space<vmem>>) attributes {dimension_semantics = [#tpu.dimension_semantics<parallel>], iteration_bounds = array<i64: 1>, scalar_prefetch = 0 : i64, scratch_operands = 0 : i64, tpu.core_type = #tpu.core_type<tc>, window_params = [{transform_indices = @transform_0, window_bounds = array<i64: 2048, 81>}, {pipeline_mode = #tpu.pipeline_mode<synchronous>, transform_indices = @transform_1, window_bounds = array<i64: 216, 81>}, {pipeline_mode = #tpu.pipeline_mode<synchronous>, transform_indices = @transform_2, window_bounds = array<i64: 216, 1>}, {pipeline_mode = #tpu.pipeline_mode<synchronous>, transform_indices = @transform_3, window_bounds = array<i64: 72, 216>}, {pipeline_mode = #tpu.pipeline_mode<synchronous>, transform_indices = @transform_4, window_bounds = array<i64: 72, 1>}, {pipeline_mode = #tpu.pipeline_mode<synchronous>, transform_indices = @transform_5, window_bounds = array<i64: 8, 72>}, {pipeline_mode = #tpu.pipeline_mode<synchronous>, transform_indices = @transform_6, window_bounds = array<i64: 8, 1>}, {pipeline_mode = #tpu.pipeline_mode<synchronous>, transform_indices = @transform_7, window_bounds = array<i64: 8, 1>}, {pipeline_mode = #tpu.pipeline_mode<synchronous>, transform_indices = @transform_8, window_bounds = array<i64: 1, 1>}, {transform_indices = @transform_9, window_bounds = array<i64: 1, 2048>}]} {
    %c0 = arith.constant 0 : index
    %c0_0 = arith.constant 0 : index
    %0 = vector.load %arg2[%c0, %c0_0] : memref<216x81xbf16, #tpu.memory_space<vmem>>, vector<216x81xbf16>
    %c0_1 = arith.constant 0 : index
    %c0_2 = arith.constant 0 : index
    %1 = vector.load %arg1[%c0_1, %c0_2] : memref<2048x81xbf16, #tpu.memory_space<vmem>>, vector<2048x81xbf16>
    %cst = arith.constant dense<0.000000e+00> : vector<216x2048xf32>
    %2 = tpu.matmul %0, %1, %cst {dimension_numbers = #tpu.dot_dimension_numbers<[1], [1], [0], [0], [0, 0, 1, 0], [], []>} : vector<216x81xbf16>, vector<2048x81xbf16>, vector<216x2048xf32> -> vector<216x2048xf32>
    %c0_3 = arith.constant 0 : index
    %c0_4 = arith.constant 0 : index
    %3 = vector.load %arg3[%c0_3, %c0_4] : memref<216x1xf32, #tpu.memory_space<vmem>>, vector<216x1xf32>
    %4 = vector.broadcast %3 : vector<216x1xf32> to vector<216x2048xf32>
    %5 = arith.addf %2, %4 : vector<216x2048xf32>
    %cst_5 = arith.constant 0.000000e+00 : f32
    %6 = vector.broadcast %cst_5 : f32 to vector<216x2048xf32>
    %7 = arith.maximumf %5, %6 : vector<216x2048xf32>
    %c0_6 = arith.constant 0 : index
    %c0_7 = arith.constant 0 : index
    %8 = vector.load %arg4[%c0_6, %c0_7] : memref<72x216xbf16, #tpu.memory_space<vmem>>, vector<72x216xbf16>
    %9 = arith.truncf %7 : vector<216x2048xf32> to vector<216x2048xbf16>
    %cst_8 = arith.constant dense<0.000000e+00> : vector<72x2048xf32>
    %10 = tpu.matmul %8, %9, %cst_8 {dimension_numbers = #tpu.dot_dimension_numbers<[1], [0], [0], [1], [0, 0, 1, 1], [], []>} : vector<72x216xbf16>, vector<216x2048xbf16>, vector<72x2048xf32> -> vector<72x2048xf32>
    %c0_9 = arith.constant 0 : index
    %c0_10 = arith.constant 0 : index
    %11 = vector.load %arg5[%c0_9, %c0_10] : memref<72x1xf32, #tpu.memory_space<vmem>>, vector<72x1xf32>
    %12 = vector.broadcast %11 : vector<72x1xf32> to vector<72x2048xf32>
    %13 = arith.addf %10, %12 : vector<72x2048xf32>
    %cst_11 = arith.constant 0.000000e+00 : f32
    %14 = vector.broadcast %cst_11 : f32 to vector<72x2048xf32>
    %15 = arith.maximumf %13, %14 : vector<72x2048xf32>
    %c0_12 = arith.constant 0 : index
    %c0_13 = arith.constant 0 : index
    %16 = vector.load %arg6[%c0_12, %c0_13] : memref<8x72xbf16, #tpu.memory_space<vmem>>, vector<8x72xbf16>
    %17 = arith.truncf %15 : vector<72x2048xf32> to vector<72x2048xbf16>
    %cst_14 = arith.constant dense<0.000000e+00> : vector<8x2048xf32>
    %18 = tpu.matmul %16, %17, %cst_14 {dimension_numbers = #tpu.dot_dimension_numbers<[1], [0], [0], [1], [0, 0, 1, 1], [], []>} : vector<8x72xbf16>, vector<72x2048xbf16>, vector<8x2048xf32> -> vector<8x2048xf32>
    %c0_15 = arith.constant 0 : index
    %c0_16 = arith.constant 0 : index
    %19 = vector.load %arg7[%c0_15, %c0_16] : memref<8x1xf32, #tpu.memory_space<vmem>>, vector<8x1xf32>
    %20 = vector.broadcast %19 : vector<8x1xf32> to vector<8x2048xf32>
    %21 = arith.addf %18, %20 : vector<8x2048xf32>
    %cst_17 = arith.constant 0.000000e+00 : f32
    %22 = vector.broadcast %cst_17 : f32 to vector<8x2048xf32>
    %23 = arith.maximumf %21, %22 : vector<8x2048xf32>
    %c0_18 = arith.constant 0 : index
    %c0_19 = arith.constant 0 : index
    %24 = vector.load %arg8[%c0_18, %c0_19] : memref<8x1xf32, #tpu.memory_space<vmem>>, vector<8x1xf32>
    %25 = vector.broadcast %24 : vector<8x1xf32> to vector<8x2048xf32>
    %26 = arith.mulf %23, %25 : vector<8x2048xf32>
    %cst_20 = arith.constant dense<0.000000e+00> : vector<2048xf32>
    %27 = vector.multi_reduction <add>, %26, %cst_20 [0] : vector<8x2048xf32> to vector<2048xf32>
    %28 = vector.shape_cast %27 : vector<2048xf32> to vector<1x2048xf32>
    %c0_21 = arith.constant 0 : index
    %c0_22 = arith.constant 0 : index
    %29 = vector.load %arg9[%c0_21, %c0_22] : memref<1x1xf32, #tpu.memory_space<vmem>>, vector<1x1xf32>
    %30 = vector.broadcast %29 : vector<1x1xf32> to vector<1x2048xf32>
    %31 = arith.addf %28, %30 : vector<1x2048xf32>
    %cst_23 = arith.constant 0.000000e+00 : f32
    %32 = vector.broadcast %cst_23 : f32 to vector<1x2048xf32>
    %33 = arith.subf %32, %31 : vector<1x2048xf32>
    %34 = math.exp %33 : vector<1x2048xf32>
    %cst_24 = arith.constant 1.000000e+00 : f32
    %35 = vector.broadcast %cst_24 : f32 to vector<1x2048xf32>
    %36 = arith.addf %35, %34 : vector<1x2048xf32>
    %37 = tpu.reciprocal %36 {approx = true} : vector<1x2048xf32> -> vector<1x2048xf32>
    %c0_25 = arith.constant 0 : index
    %c0_26 = arith.constant 0 : index
    %38 = vector.load %arg10[%c0_25, %c0_26] : memref<1x2048xf32, #tpu.memory_space<vmem>>, vector<1x2048xf32>
    tpu.vector_store %arg10[%c0_25, %c0_26], %37 {strides = array<i32>} : memref<1x2048xf32, #tpu.memory_space<vmem>>, vector<1x2048xf32>,
    return
  }
  func.func @transform_0(%arg0: i32) -> (i32, i32) {
    %c0_i32 = arith.constant 0 : i32
    %c0_i32_0 = arith.constant 0 : i32
    return %arg0, %c0_i32 : i32, i32
  }
  func.func @transform_1(%arg0: i32) -> (i32, i32) {
    %c0_i32 = arith.constant 0 : i32
    %c0_i32_0 = arith.constant 0 : i32
    %c0_i32_1 = arith.constant 0 : i32
    return %c0_i32, %c0_i32_0 : i32, i32
  }
  func.func @transform_2(%arg0: i32) -> (i32, i32) {
    %c0_i32 = arith.constant 0 : i32
    %c0_i32_0 = arith.constant 0 : i32
    %c0_i32_1 = arith.constant 0 : i32
    return %c0_i32, %c0_i32_0 : i32, i32
  }
  func.func @transform_3(%arg0: i32) -> (i32, i32) {
    %c0_i32 = arith.constant 0 : i32
    %c0_i32_0 = arith.constant 0 : i32
    %c0_i32_1 = arith.constant 0 : i32
    return %c0_i32, %c0_i32_0 : i32, i32
  }
  func.func @transform_4(%arg0: i32) -> (i32, i32) {
    %c0_i32 = arith.constant 0 : i32
    %c0_i32_0 = arith.constant 0 : i32
    %c0_i32_1 = arith.constant 0 : i32
    return %c0_i32, %c0_i32_0 : i32, i32
  }
  func.func @transform_5(%arg0: i32) -> (i32, i32) {
    %c0_i32 = arith.constant 0 : i32
    %c0_i32_0 = arith.constant 0 : i32
    %c0_i32_1 = arith.constant 0 : i32
    return %c0_i32, %c0_i32_0 : i32, i32
  }
  func.func @transform_6(%arg0: i32) -> (i32, i32) {
    %c0_i32 = arith.constant 0 : i32
    %c0_i32_0 = arith.constant 0 : i32
    %c0_i32_1 = arith.constant 0 : i32
    return %c0_i32, %c0_i32_0 : i32, i32
  }
  func.func @transform_7(%arg0: i32) -> (i32, i32) {
    %c0_i32 = arith.constant 0 : i32
    %c0_i32_0 = arith.constant 0 : i32
    %c0_i32_1 = arith.constant 0 : i32
    return %c0_i32, %c0_i32_0 : i32, i32
  }
  func.func @transform_8(%arg0: i32) -> (i32, i32) {
    %c0_i32 = arith.constant 0 : i32
    %c0_i32_0 = arith.constant 0 : i32
    %c0_i32_1 = arith.constant 0 : i32
    return %c0_i32, %c0_i32_0 : i32, i32
  }
  func.func @transform_9(%arg0: i32) -> (i32, i32) {
    %c0_i32 = arith.constant 0 : i32
    %c0_i32_0 = arith.constant 0 : i32
    return %c0_i32, %arg0 : i32, i32
  }
}

</mosaic_0001>

<bundles_post_ra>
// kernel: tpu_custom_call.1
= control target key start
LH: loop header
LB: loop body
LE: loop exit
PB: predicated region body
PF: predicated region fallthrough
CT: control target
= control target key end

     0   :  { %s9199_s0 = inlined_call_operand.vmem [shape: bf16[300,81], index: 0, kind: input, shape index: {}]   ;;  %s9200_s1 = inlined_call_operand.vmem [shape: bf16[216,81], index: 1, kind: input, shape index: {}]   ;;  %s9201_s2 = inlined_call_operand.vmem [shape: f32[216,1], index: 2, kind: input, shape index: {}]   ;;  %s9202_s3 = inlined_call_operand.vmem [shape: bf16[72,216], index: 3, kind: input, shape index: {}]   ;;  %s9203_s4 = inlined_call_operand.vmem [shape: f32[72,1], index: 4, kind: input, shape index: {}]   ;;  %s9204_s5 = inlined_call_operand.vmem [shape: bf16[8,72], index: 5, kind: input, shape index: {}]   ;;  %s9205_s6 = inlined_call_operand.vmem [shape: f32[8,1], index: 6, kind: input, shape index: {}]   ;;  %s9206_s7 = inlined_call_operand.vmem [shape: f32[8,1], index: 7, kind: input, shape index: {}]   ;;  %s9207_s8 = inlined_call_operand.<no memory space> [shape: f32[1,1], index: 8, kind: input, shape index: {}]   ;;  %s9208_s9 = inlined_call_operand.hbm [shape: f32[1,300], index: 9, kind: output, shape index: {}]  }
   0x1   :  { %v14_v0 = vstv %s9207_s8 }
   0x2   :  { %15 = vst [vmem:[#allocation2] sm:$0x1] %v14_v0 }
   0x3   :  { %16 = vsyncpa [#allocation4], 0  ;;  %v6190_v1 = vld [vmem:[%s9199_s0 + $0x40] sm:$0xff]   ;;  %vm1189_vm0 = vcmask 662528   ;;  %v6194_v6 = vld [vmem:[%s9199_s0 + $0x48] sm:$0xff]   ;;  %v9209_v23 = vmov 0  }
   0x4   :  { %v6191_v2 = vld [vmem:[%s9199_s0 + $0xc0] sm:$0xff]   ;;  %6121 = vmatprep.subr.msk.bf16.mxu0 %vm1189_vm0, %v6190_v1  ;;  %v6195_v8 = vld [vmem:[%s9199_s0 + $0xc8] sm:$0xff]   ;;  %v6198_v12 = vld [vmem:[%s9199_s0 + $0x50] sm:$0xff]   ;;  %6188 = vset.pattern.permute.xlu0 %v9209_v23  ;;  %vm3761_vm1 = vcmask 1043456   ;;  %vm3745_vm2 = vcmask 719872   ;;  %vm4689_vm3 = vcmask 588800  }
   0x5   :  { %v6192_v3 = vld [vmem:[%s9199_s0] sm:$0xff]   ;;  %6129 = vmatprep.subr.msk.bf16.mxu1 %vm1189_vm0, %v6191_v2  ;;  %v6196_v9 = vld [vmem:[%s9199_s0 + $0x8] sm:$0xff]   ;;  %v6199_v14 = vld [vmem:[%s9199_s0 + $0xd0] sm:$0xff]   ;;  %6189 = vset.pattern.permute.xlu1 %v9209_v23 }
   0x6   :  { %v6193_v4 = vld [vmem:[%s9199_s0 + $0x80] sm:$0xff]   ;;  %v1233_v5 = vsel %vm1189_vm0, %v6192_v3, 0  ;;  %v6197_v10 = vld [vmem:[%s9199_s0 + $0x88] sm:$0xff]   ;;  %v1236_v11 = vsel %vm1189_vm0, %v6196_v9, 0  ;;  %v6200_v15 = vld [vmem:[%s9199_s0 + $0x10] sm:$0xff]  }
   0x7   :  { %5770 = vmatpush3.bf16.xpose.msra.mxu0 %v1233_v5  ;;  %v1281_v7 = vsel %vm1189_vm0, %v6193_v4, 0  ;;  %v1284_v13 = vsel %vm1189_vm0, %v6197_v10, 0  ;;  %v6201_v16 = vld [vmem:[%s9199_s0 + $0x90] sm:$0xff]   ;;  %v1239_v17 = vsel %vm1189_vm0, %v6200_v15, 0  ;;  %v6202_v18 = vld [vmem:[%s9199_s0 + $0x58] sm:$0xff]   ;;  %v6206_v25 = vld [vmem:[%s9199_s0 + $0x60] sm:$0xff]  }
   0x8   :  { %5814 = vmatpush3.bf16.xpose.msra.mxu1 %v1281_v7  ;;  %6122 = vmatprep.subr.msk.bf16.mxu0 %vm1189_vm0, %v6194_v6  ;;  %v1287_v19 = vsel %vm1189_vm0, %v6201_v16, 0  ;;  %v6203_v20 = vld [vmem:[%s9199_s0 + $0xd8] sm:$0xff]   ;;  %v6207_v27 = vld [vmem:[%s9199_s0 + $0xe0] sm:$0xff]   ;;  %v6210_v32 = vld [vmem:[%s9199_s0 + $0x68] sm:$0xff]  }
   0x9   :  { %6130 = vmatprep.subr.msk.bf16.mxu1 %vm1189_vm0, %v6195_v8  ;;  %v6204_v21 = vld [vmem:[%s9199_s0 + $0x18] sm:$0xff]   ;;  %v6208_v28 = vld [vmem:[%s9199_s0 + $0x20] sm:$0xff]   ;;  %v6211_v34 = vld [vmem:[%s9199_s0 + $0xe8] sm:$0xff]  }
   0xa   :  { %v6205_v22 = vld [vmem:[%s9199_s0 + $0x98] sm:$0xff]   ;;  %v1242_v24 = vsel %vm1189_vm0, %v6204_v21, 0  ;;  %v6209_v29 = vld [vmem:[%s9199_s0 + $0xa0] sm:$0xff]   ;;  %v1245_v31 = vsel %vm1189_vm0, %v6208_v28, 0  ;;  %v6212_v35 = vld [vmem:[%s9199_s0 + $0x28] sm:$0xff]  }
   0xb   :  { %v1290_v26 = vsel %vm1189_vm0, %v6205_v22, 0  ;;  %v6609_v30 = vld [vmem:[%s9200_s1] sm:$0xff]   ;;  %v1293_v33 = vsel %vm1189_vm0, %v6209_v29, 0  ;;  %v6213_v36 = vld [vmem:[%s9199_s0 + $0xa8] sm:$0xff]   ;;  %v1248_v37 = vsel %vm1189_vm0, %v6212_v35, 0  ;;  %v6214_v38 = vld [vmem:[%s9199_s0 + $0x70] sm:$0xff]  }
   0xc   :  { %5785 = vmatprep.mubr.msk.bf16.mxu0 %vm1189_vm0, %v6609_v30  ;;  %5829 = vmatprep.mubr.msk.bf16.mxu1 %vm1189_vm0, %v6609_v30  ;;  %v1296_v39 = vsel %vm1189_vm0, %v6213_v36, 0  ;;  %v6215_v40 = vld [vmem:[%s9199_s0 + $0xf0] sm:$0xff]   ;;  %v6218_v44 = vld [vmem:[%s9199_s0 + $0x78] sm:$0xff]   ;;  %v6223_v50 = vld [vmem:[%s9199_s0 + $0x140] sm:$0xff]  }
   0xd   :  { %v6216_v41 = vld [vmem:[%s9199_s0 + $0x30] sm:$0xff]   ;;  %v6219_v46 = vld [vmem:[%s9199_s0 + $0xf8] sm:$0xff]   ;;  %v6224_v52 = vld [vmem:[%s9199_s0 + $0x1c0] sm:$0xff]  }
   0xe   :  { %v6217_v42 = vld [vmem:[%s9199_s0 + $0xb0] sm:$0xff]   ;;  %v1251_v43 = vsel %vm1189_vm0, %v6216_v41, 0  ;;  %v6220_v47 = vld [vmem:[%s9199_s0 + $0x38] sm:$0xff]   ;;  %v6225_v53 = vld [vmem:[%s9199_s0 + $0x100] sm:$0xff]  }
   0xf   :  { %5772 = vmatpush3.bf16.xpose.msra.mxu0 %v1236_v11  ;;  %v1299_v45 = vsel %vm1189_vm0, %v6217_v42, 0  ;;  %v6221_v48 = vld [vmem:[%s9199_s0 + $0xb8] sm:$0xff]   ;;  %v1254_v49 = vsel %vm1189_vm0, %v6220_v47, 0  ;;  %v6226_v54 = vld [vmem:[%s9199_s0 + $0x180] sm:$0xff]   ;;  %v1329_v55 = vsel %vm1189_vm0, %v6225_v53, 0  ;;  %v6683_v56 = vld [vmem:[%s9200_s1 + $0x8] sm:$0xff]  }
  0x10   :  { %5816 = vmatpush3.bf16.xpose.msra.mxu1 %v1284_v13  ;;  %6123 = vmatprep.subr.msk.bf16.mxu0 %vm1189_vm0, %v6198_v12  ;;  %v1302_v51 = vsel %vm1189_vm0, %v6221_v48, 0  ;;  %v319_v57 = vld [vmem:[%s9201_s2] sm:$0xff]  ;;  %v1377_v58 = vsel %vm1189_vm0, %v6226_v54, 0  ;;  %v6228_v59 = vld [vmem:[%s9199_s0 + $0x148] sm:$0xff]   ;;  %v321_v0 = vld [vmem:[%s9201_s2 + $0x10] sm:$0xff] }
  0x11   :  { %6131 = vmatprep.subr.msk.bf16.mxu1 %vm1189_vm0, %v6199_v14  ;;  %348 = vperm.xlu0 %6188, %v319_v57   ;;  %v6229_v60 = vld [vmem:[%s9199_s0 + $0x1c8] sm:$0xff]   ;;  %v6720_v1 = vld [vmem:[%s9200_s1 + $0x10] sm:$0xff]   ;;  %v322_v6 = vld [vmem:[%s9201_s2 + $0x18] sm:$0xff] }
  0x12   :  { %v320_v61 = vld [vmem:[%s9201_s2 + $0x8] sm:$0xff]  ;;  %358 = vperm.xlu1 %6189, %v321_v0   ;;  %v6234_v3 = vld [vmem:[%s9199_s0 + $0x150] sm:$0xff]   ;;  %v323_v7 = vld [vmem:[%s9201_s2 + $0x20] sm:$0xff] }
  0x13   :  { %v6231_v62 = vld [vmem:[%s9199_s0 + $0x108] sm:$0xff]   ;;  %v6235_v5 = vld [vmem:[%s9199_s0 + $0x1d0] sm:$0xff]   ;;  %v6747_v8 = vld [vmem:[%s9200_s1 + $0x18] sm:$0xff]  }
  0x14   :  { %v6232_v63 = vld [vmem:[%s9199_s0 + $0x188] sm:$0xff]   ;;  %v1332_v2 = vsel %vm1189_vm0, %v6231_v62, 0  ;;  %v6236_v9 = vld [vmem:[%s9199_s0 + $0x110] sm:$0xff]   ;;  %v6240_v13 = vld [vmem:[%s9199_s0 + $0x158] sm:$0xff]  }
  0x15   :  { %353 = vperm.xlu0 %6188, %v320_v61   ;;  %v1380_v4 = vsel %vm1189_vm0, %v6232_v63, 0  ;;  %v6237_v10 = vld [vmem:[%s9199_s0 + $0x190] sm:$0xff]   ;;  %v324_v11 = vld [vmem:[%s9201_s2 + $0x28] sm:$0xff]  ;;  %v1335_v12 = vsel %vm1189_vm0, %v6236_v9, 0  ;;  %v6241_v15 = vld [vmem:[%s9199_s0 + $0x1d8] sm:$0xff]  }
  0x16   :  { %363 = vperm.xlu1 %6189, %v322_v6   ;;  %v1383_v14 = vsel %vm1189_vm0, %v6237_v10, 0  ;;  %v325_v16 = vld [vmem:[%s9201_s2 + $0x30] sm:$0xff]  ;;  %v327_v21 = vld [vmem:[%s9201_s2 + $0x40] sm:$0xff]  ;;  %v330_v35 = vld [vmem:[%s9201_s2 + $0x58] sm:$0xff] }
  0x17   :  { %5774 = vmatpush3.bf16.xpose.msra.mxu0 %v1239_v17  ;;  %v326_v17 = vld [vmem:[%s9201_s2 + $0x38] sm:$0xff]  ;;  %v6248_v28 = vld [vmem:[%s9199_s0 + $0x120] sm:$0xff]   ;;  %v6259_v47 = vld [vmem:[%s9199_s0 + $0x130] sm:$0xff]  }
  0x18   :  { %5818 = vmatpush3.bf16.xpose.msra.mxu1 %v1287_v19  ;;  %6124 = vmatprep.subr.msk.bf16.mxu0 %vm1189_vm0, %v6202_v18  ;;  %v6242_v18 = vld [vmem:[%s9199_s0 + $0x118] sm:$0xff]   ;;  %v6249_v29 = vld [vmem:[%s9199_s0 + $0x1a0] sm:$0xff]   ;;  %v1341_v36 = vsel %vm1189_vm0, %v6248_v28, 0  ;;  %v6258_v48 = vld [vmem:[%s9199_s0 + $0x1f0] sm:$0xff]   ;;  %v1347_v53 = vsel %vm1189_vm0, %v6259_v47, 0 }
  0x19   :  { %6132 = vmatprep.subr.msk.bf16.mxu1 %vm1189_vm0, %v6203_v20  ;;  %368 = vperm.xlu0 %6188, %v323_v7   ;;  %v6243_v19 = vld [vmem:[%s9199_s0 + $0x198] sm:$0xff]   ;;  %v6793_v20 = vld [vmem:[%s9200_s1 + $0x20] sm:$0xff]   ;;  %v1338_v22 = vsel %vm1189_vm0, %v6242_v18, 0  ;;  %v336_v54 = vld [vmem:[%s9201_s2 + $0x88] sm:$0xff] }
  0x1a   :  { %373 = vperm.xlu1 %6189, %v324_v11   ;;  %v331_v42 = vld [vmem:[%s9201_s2 + $0x60] sm:$0xff]  ;;  %v6265_v57 = vld [vmem:[%s9199_s0 + $0x138] sm:$0xff]   ;;  %v337_v61 = vld [vmem:[%s9201_s2 + $0x90] sm:$0xff] }
  0x1b   :  { %v1350_v62 = vsel %vm1189_vm0, %v6265_v57, 0  ;;  %v338_v63 = vld [vmem:[%s9201_s2 + $0x98] sm:$0xff]  ;;  %v6944_v0 = vld [vmem:[%s9200_s1 + $0x40] sm:$0xff]   ;;  %v340_v6 = vld [vmem:[%s9201_s2 + $0xa8] sm:$0xff] }
  0x1c   :  { %v341_v7 = vld [vmem:[%s9201_s2 + $0xb0] sm:$0xff]  ;;  %v6975_v9 = vld [vmem:[%s9200_s1 + $0x48] sm:$0xff]   ;;  %v342_v10 = vld [vmem:[%s9201_s2 + $0xb8] sm:$0xff] }
  0x1d   :  { %378 = vperm.xlu0 %6188, %v325_v16   ;;  %v343_v11 = vld [vmem:[%s9201_s2 + $0xc0] sm:$0xff]  ;;  %v3650_v18 = vld [vmem:[%s9203_s4 + $0x8] sm:$0xff] }
  0x1e   :  { %383 = vperm.xlu1 %6189, %v326_v17   ;;  %v7028_v16 = vld [vmem:[%s9200_s1 + $0x60] sm:$0xff]   ;;  %v7041_v17 = vld [vmem:[%s9200_s1 + $0x68] ss:$0 sps:$4 sm:$0xff]  }
  0x1f   :  { %5776 = vmatpush3.bf16.xpose.msra.mxu0 %v1242_v24  ;;  %v6246_v24 = vld [vmem:[%s9199_s0 + $0x160] sm:$0xff]   ;;  %v6272_v28 = vld [vmem:[%s9199_s0 + $0x248] sm:$0xff]  }
  0x20   :  { %5820 = vmatpush3.bf16.xpose.msra.mxu1 %v1290_v26  ;;  %6125 = vmatprep.subr.msk.bf16.mxu0 %vm1189_vm0, %v6206_v25  ;;  %v1386_v25 = vsel %vm1189_vm0, %v6243_v19, 0  ;;  %v6247_v26 = vld [vmem:[%s9199_s0 + $0x1e0] sm:$0xff]  }
  0x21   :  { %6133 = vmatprep.subr.msk.bf16.mxu1 %vm1189_vm0, %v6207_v27  ;;  %388 = vperm.xlu0 %6188, %v327_v21   ;;  %v328_v27 = vld [vmem:[%s9201_s2 + $0x48] sm:$0xff]  ;;  %v6270_v19 = vld [vmem:[%s9199_s0 + $0x200] sm:$0xff]  }
  0x22   :  { %393 = vperm.xlu1 %6189, %v328_v27   ;;  %v6271_v21 = vld [vmem:[%s9199_s0 + $0x280] sm:$0xff]  }
  0x23   :  { %v1473_v27 = vsel %vm1189_vm0, %v6271_v21, 0  ;;  %v6285_v57 = vld [vmem:[%s9199_s0 + $0x2e0] sm:$0xff]  }
  0x26   :  { %403 = vperm.xlu1 %6189, %v330_v35   ;;  %v3653_v35 = vld [vmem:[%s9203_s4 + $0x20] sm:$0xff] }
  0x27   :  { %5778 = vmatpush3.bf16.xpose.msra.mxu0 %v1245_v31  ;;  %v329_v31 = vld [vmem:[%s9201_s2 + $0x50] sm:$0xff] }
  0x28   :  { %5822 = vmatpush3.bf16.xpose.msra.mxu1 %v1293_v33  ;;  %6126 = vmatprep.subr.msk.bf16.mxu0 %vm1189_vm0, %v6210_v32  ;;  %v6829_v32 = vld [vmem:[%s9200_s1 + $0x28] sm:$0xff]  }
  0x29   :  { %6134 = vmatprep.subr.msk.bf16.mxu1 %vm1189_vm0, %v6211_v34  ;;  %v6254_v33 = vld [vmem:[%s9199_s0 + $0x128] sm:$0xff]   ;;  %398 = vperm.xlu0 %6188, %v329_v31  }
  0x2a   :  { %v6255_v34 = vld [vmem:[%s9199_s0 + $0x1a8] sm:$0xff]  }
  0x2b   :  { %v1392_v41 = vsel %vm1189_vm0, %v6255_v34, 0  ;;  %v6274_v31 = vld [vmem:[%s9199_s0 + $0x208] sm:$0xff]  }
  0x2c   :  { %v6275_v34 = vld [vmem:[%s9199_s0 + $0x288] sm:$0xff]  }
  0x2d   :  { %408 = vperm.xlu0 %6188, %v331_v42   ;;  %v6279_v42 = vld [vmem:[%s9199_s0 + $0x290] sm:$0xff]  }
  0x2e   :  { %v1479_v47 = vsel %vm1189_vm0, %v6279_v42, 0 }
  0x2f   :  { %5780 = vmatpush3.bf16.xpose.msra.mxu0 %v1248_v37  ;;  %v6251_v37 = vld [vmem:[%s9199_s0 + $0x168] sm:$0xff]  }
  0x30   :  { %5824 = vmatpush3.bf16.xpose.msra.mxu1 %v1296_v39  ;;  %6127 = vmatprep.subr.msk.bf16.mxu0 %vm1189_vm0, %v6214_v38  ;;  %v6252_v38 = vld [vmem:[%s9199_s0 + $0x1e8] sm:$0xff]   ;;  %v1389_v39 = vsel %vm1189_vm0, %v6249_v29, 0 }
  0x31   :  { %6135 = vmatprep.subr.msk.bf16.mxu1 %vm1189_vm0, %v6215_v40  ;;  %v1344_v40 = vsel %vm1189_vm0, %v6254_v33, 0  ;;  %v6273_v29 = vld [vmem:[%s9199_s0 + $0x2c8] sm:$0xff]   ;;  %v3651_v33 = vld [vmem:[%s9203_s4 + $0x10] sm:$0xff] }
  0x37   :  { %5782 = vmatpush3.bf16.xpose.msra.mxu0 %v1251_v43  ;;  %v332_v43 = vld [vmem:[%s9201_s2 + $0x68] sm:$0xff] }
  0x38   :  { %5826 = vmatpush3.bf16.xpose.msra.mxu1 %v1299_v45  ;;  %6128 = vmatprep.subr.msk.bf16.mxu0 %vm1189_vm0, %v6218_v44  ;;  %v6869_v44 = vld [vmem:[%s9200_s1 + $0x30] sm:$0xff]  }
  0x39   :  { %6136 = vmatprep.subr.msk.bf16.mxu1 %vm1189_vm0, %v6219_v46  ;;  %v333_v45 = vld [vmem:[%s9201_s2 + $0x70] sm:$0xff]  ;;  %413 = vperm.xlu1 %6189, %v332_v43   ;;  %v5203_v43 = vld [vmem:[#allocation2] sm:$0x1] }
  0x3a   :  { %v6257_v46 = vld [vmem:[%s9199_s0 + $0x170] sm:$0xff]   ;;  %418 = vperm.xlu0 %6188, %v333_v45  }
  0x3f   :  { %5784 = vmatpush3.bf16.xpose.msra.mxu0 %v1254_v49  ;;  %v6260_v49 = vld [vmem:[%s9199_s0 + $0x1b0] sm:$0xff]  }
  0x40   :  { %5828 = vmatpush3.bf16.xpose.msra.mxu1 %v1302_v51  ;;  %6137 = vmatprep.subr.msk.bf16.mxu0 %vm1189_vm0, %v6223_v50  ;;  %v334_v50 = vld [vmem:[%s9201_s2 + $0x78] sm:$0xff]  ;;  %v335_v51 = vld [vmem:[%s9201_s2 + $0x80] sm:$0xff] }
  0x41   :  { %6145 = vmatprep.subr.msk.bf16.mxu1 %vm1189_vm0, %v6224_v52  ;;  %v6905_v52 = vld [vmem:[%s9200_s1 + $0x38] sm:$0xff]   ;;  %423 = vperm.xlu1 %6189, %v334_v50  }
  0x42   :  { %428 = vperm.xlu0 %6188, %v335_v51   ;;  %v6282_v50 = vld [vmem:[%s9199_s0 + $0x218] sm:$0xff]   ;;  %v5085_v51 = vld [vmem:[%s9206_s7] sm:$0xff] }
  0x45   :  { %433 = vperm.xlu1 %6189, %v336_v54   ;;  %v6284_v54 = vld [vmem:[%s9199_s0 + $0x260] sm:$0xff]  }
  0x46   :  { %5786 = vmatmul.mubr.msk.bf16.vlgmr.msra.gmra.mrb[0].mxu0 %vm1189_vm0, %v6609_v30  ;;  %438 = vperm.xlu0 %6188, %v337_v61  }
  0x47   :  { %5830 = vmatmul.mubr.msk.bf16.vlgmr.msra.gmra.mrb[0].mxu1 %vm1189_vm0, %v6609_v30  ;;  %5858 = vmatpush3.bf16.xpose.msra.mxu0 %v1329_v55  ;;  %v1395_v55 = vsel %vm1189_vm0, %v6260_v49, 0  ;;  %v3657_v49 = vld [vmem:[%s9203_s4 + $0x40] sm:$0xff] }
  0x48   :  { %5902 = vmatpush3.bf16.xpose.msra.mxu1 %v1377_v58  ;;  %5787 = vmatprep.mubr.msk.bf16.mxu0 %vm1189_vm0, %v6683_v56  ;;  %v6263_v58 = vld [vmem:[%s9199_s0 + $0x178] sm:$0xff]  }
  0x49   :  { %5831 = vmatprep.mubr.msk.bf16.mxu1 %vm1189_vm0, %v6683_v56  ;;  %6138 = vmatprep.subr.msk.bf16.mxu0 %vm1189_vm0, %v6228_v59  ;;  %v6264_v59 = vld [vmem:[%s9199_s0 + $0x1f8] sm:$0xff]  }
  0x4a   :  { %6146 = vmatprep.subr.msk.bf16.mxu1 %vm1189_vm0, %v6229_v60  ;;  %v6266_v60 = vld [vmem:[%s9199_s0 + $0x1b8] sm:$0xff]   ;;  %443 = vperm.xlu1 %6189, %v338_v63   ;;  %v6290_v63 = vld [vmem:[%s9199_s0 + $0x228] sm:$0xff]  }
  0x4e   :  { %5788 = vmatmul.mubr.msk.bf16.gmra.mrb[4].mxu0 %vm1189_vm0, %v6683_v56  ;;  %453 = vperm.xlu1 %6189, %v340_v6   ;;  %v6294_v6 = vld [vmem:[%s9199_s0 + $0x230] sm:$0xff]  }
  0x4f   :  { %5832 = vmatmul.mubr.msk.bf16.gmra.mrb[4].mxu1 %vm1189_vm0, %v6683_v56  ;;  %5789 = vmatprep.mubr.msk.bf16.mxu0 %vm1189_vm0, %v6720_v1 }
  0x50   :  { %5833 = vmatprep.mubr.msk.bf16.mxu1 %vm1189_vm0, %v6720_v1  ;;  %5860 = vmatpush3.bf16.xpose.msra.mxu0 %v1332_v2  ;;  %v1398_v2 = vsel %vm1189_vm0, %v6266_v60, 0  ;;  %v6288_v60 = vld [vmem:[%s9199_s0 + $0x268] sm:$0xff]  }
  0x51   :  { %5904 = vmatpush3.bf16.xpose.msra.mxu1 %v1380_v4  ;;  %6139 = vmatprep.subr.msk.bf16.mxu0 %vm1189_vm0, %v6234_v3  ;;  %v339_v3 = vld [vmem:[%s9201_s2 + $0xa0] sm:$0xff] }
  0x52   :  { %6147 = vmatprep.subr.msk.bf16.mxu1 %vm1189_vm0, %v6235_v5  ;;  %v6268_v4 = vld [vmem:[%s9199_s0 + $0x240] sm:$0xff]   ;;  %448 = vperm.xlu0 %6188, %v339_v3   ;;  %v6292_v3 = vld [vmem:[%s9199_s0 + $0x270] sm:$0xff]  }
  0x53   :  { %v6269_v5 = vld [vmem:[%s9199_s0 + $0x2c0] sm:$0xff]   ;;  %463 = vperm.xlu1 %6189, %v342_v10   ;;  %v6296_v10 = vld [vmem:[%s9199_s0 + $0x278] sm:$0xff]  }
  0x56   :  { %5790 = vmatmul.mubr.msk.bf16.gmra.mrb[8].mxu0 %vm1189_vm0, %v6720_v1  ;;  %458 = vperm.xlu0 %6188, %v341_v7   ;;  %v1443_v7 = vsel %vm1189_vm0, %v6294_v6, 0 }
  0x57   :  { %5834 = vmatmul.mubr.msk.bf16.gmra.mrb[8].mxu1 %vm1189_vm0, %v6720_v1  ;;  %5791 = vmatprep.mubr.msk.bf16.mxu0 %vm1189_vm0, %v6747_v8 }
  0x58   :  { %5835 = vmatprep.mubr.msk.bf16.mxu1 %vm1189_vm0, %v6747_v8  ;;  %5862 = vmatpush3.bf16.xpose.msra.mxu0 %v1335_v12  ;;  %v344_v12 = vld [vmem:[%s9201_s2 + $0xc8] sm:$0xff] }
  0x59   :  { %5906 = vmatpush3.bf16.xpose.msra.mxu1 %v1383_v14  ;;  %6140 = vmatprep.subr.msk.bf16.mxu0 %vm1189_vm0, %v6240_v13  ;;  %v345_v13 = vld [vmem:[%s9201_s2 + $0xd0] sm:$0xff] }
  0x5a   :  { %6148 = vmatprep.subr.msk.bf16.mxu1 %vm1189_vm0, %v6241_v15  ;;  %468 = vperm.xlu0 %6188, %v343_v11   ;;  %v7002_v14 = vld [vmem:[%s9200_s1 + $0x50] sm:$0xff]   ;;  %v7015_v15 = vld [vmem:[%s9200_s1 + $0x58] sm:$0xff]  }
  0x5b   :  { %473 = vperm.xlu1 %6189, %v344_v12   ;;  %v6297_v12 = vld [vmem:[%s9199_s0 + $0x2f8] sm:$0xff]  }
  0x5e   :  { %5792 = vmatmul.mubr.msk.bf16.gmra.mrb[12].mxu0 %vm1189_vm0, %v6747_v8  ;;  %478 = vperm.xlu0 %6188, %v345_v13   ;;  %v6298_v13 = vld [vmem:[%s9199_s0 + $0x238] sm:$0xff]  }
  0x5f   :  { %5836 = vmatmul.mubr.msk.bf16.gmra.mrb[12].mxu1 %vm1189_vm0, %v6747_v8  ;;  %5793 = vmatprep.mubr.msk.bf16.mxu0 %vm1189_vm0, %v6793_v20 }
  0x60   :  { %5837 = vmatprep.mubr.msk.bf16.mxu1 %vm1189_vm0, %v6793_v20  ;;  %5864 = vmatpush3.bf16.xpose.msra.mxu0 %v1338_v22  ;;  %v3652_v22 = vld [vmem:[%s9203_s4 + $0x18] sm:$0xff] }
  0x61   :  { %5908 = vmatpush3.bf16.xpose.msra.mxu1 %v1386_v25  ;;  %6141 = vmatprep.subr.msk.bf16.mxu0 %vm1189_vm0, %v6246_v24  ;;  %v3649_v24 = vld [vmem:[%s9203_s4] sm:$0xff]  ;;  %v3654_v25 = vld [vmem:[%s9203_s4 + $0x28] sm:$0xff] }
  0x62   :  { %6149 = vmatprep.subr.msk.bf16.mxu1 %vm1189_vm0, %v6247_v26  ;;  %3665 = vperm.xlu0 %6188, %v3650_v18   ;;  %v1425_v26 = vsel %vm1189_vm0, %v6270_v19, 0  ;;  %v1446_v18 = vsel %vm1189_vm0, %v6298_v13, 0  ;;  %v6300_v19 = vld [vmem:[%s9199_s0 + $0x340] sm:$0xff]  }
  0x63   :  { %3660 = vperm.xlu1 %6189, %v3649_v24  }
  0x66   :  { %5794 = vmatmul.mubr.msk.bf16.gmra.mrb[16].mxu0 %vm1189_vm0, %v6793_v20  ;;  %3675 = vperm.xlu0 %6188, %v3652_v22   ;;  %v6301_v22 = vld [vmem:[%s9199_s0 + $0x3c0] sm:$0xff]  }
  0x67   :  { %5838 = vmatmul.mubr.msk.bf16.gmra.mrb[16].mxu1 %vm1189_vm0, %v6793_v20  ;;  %5795 = vmatprep.mubr.msk.bf16.mxu0 %vm1189_vm0, %v6829_v32 }
  0x68   :  { %5839 = vmatprep.mubr.msk.bf16.mxu1 %vm1189_vm0, %v6829_v32  ;;  %5866 = vmatpush3.bf16.xpose.msra.mxu0 %v1341_v36  ;;  %v1428_v36 = vsel %vm1189_vm0, %v6274_v31, 0 }
  0x69   :  { %5910 = vmatpush3.bf16.xpose.msra.mxu1 %v1389_v39  ;;  %6142 = vmatprep.subr.msk.bf16.mxu0 %vm1189_vm0, %v6251_v37  ;;  %v6276_v37 = vld [vmem:[%s9199_s0 + $0x250] sm:$0xff]  }
  0x6a   :  { %6150 = vmatprep.subr.msk.bf16.mxu1 %vm1189_vm0, %v6252_v38  ;;  %3685 = vperm.xlu0 %6188, %v3654_v25   ;;  %v1476_v38 = vsel %vm1189_vm0, %v6275_v34, 0  ;;  %v6277_v39 = vld [vmem:[%s9199_s0 + $0x2d0] sm:$0xff]  }
  0x6b   :  { %3670 = vperm.xlu1 %6189, %v3651_v33  }
  0x6e   :  { %5796 = vmatmul.mubr.msk.bf16.gmra.mrb[20].mxu0 %vm1189_vm0, %v6829_v32 }
  0x6f   :  { %5840 = vmatmul.mubr.msk.bf16.gmra.mrb[20].mxu1 %vm1189_vm0, %v6829_v32  ;;  %5797 = vmatprep.mubr.msk.bf16.mxu0 %vm1189_vm0, %v6869_v44 }
  0x70   :  { %5841 = vmatprep.mubr.msk.bf16.mxu1 %vm1189_vm0, %v6869_v44  ;;  %5868 = vmatpush3.bf16.xpose.msra.mxu0 %v1344_v40  ;;  %v4683_v40 = vld [vmem:[%s9205_s6] sm:$0xff] }
  0x71   :  { %5912 = vmatpush3.bf16.xpose.msra.mxu1 %v1392_v41  ;;  %6143 = vmatprep.subr.msk.bf16.mxu0 %vm1189_vm0, %v6257_v46  ;;  %v6278_v41 = vld [vmem:[%s9199_s0 + $0x210] sm:$0xff]   ;;  %v6280_v46 = vld [vmem:[%s9199_s0 + $0x258] sm:$0xff]  }
  0x72   :  { %6151 = vmatprep.subr.msk.bf16.mxu1 %vm1189_vm0, %v6258_v48  ;;  %3680 = vperm.xlu1 %6189, %v3653_v35   ;;  %v1431_v45 = vsel %vm1189_vm0, %v6278_v41, 0  ;;  %v6281_v48 = vld [vmem:[%s9199_s0 + $0x2d8] sm:$0xff]  }
  0x76   :  { %5798 = vmatmul.mubr.msk.bf16.gmra.mrb[24].mxu0 %vm1189_vm0, %v6869_v44 }
  0x77   :  { %5842 = vmatmul.mubr.msk.bf16.gmra.mrb[24].mxu1 %vm1189_vm0, %v6869_v44  ;;  %5799 = vmatprep.mubr.msk.bf16.mxu0 %vm1189_vm0, %v6905_v52 }
  0x78   :  { %5843 = vmatprep.mubr.msk.bf16.mxu1 %vm1189_vm0, %v6905_v52  ;;  %5870 = vmatpush3.bf16.xpose.msra.mxu0 %v1347_v53  ;;  %v1434_v53 = vsel %vm1189_vm0, %v6282_v50, 0 }
  0x79   :  { %5914 = vmatpush3.bf16.xpose.msra.mxu1 %v1395_v55  ;;  %6144 = vmatprep.subr.msk.bf16.mxu0 %vm1189_vm0, %v6263_v58  ;;  %v6286_v58 = vld [vmem:[%s9199_s0 + $0x220] sm:$0xff]  }
  0x7a   :  { %6152 = vmatprep.subr.msk.bf16.mxu1 %vm1189_vm0, %v6264_v59  ;;  %v1437_v59 = vsel %vm1189_vm0, %v6286_v58, 0 }
  0x7e   :  { %5800 = vmatmul.mubr.msk.bf16.gmra.mrb[28].mxu0 %vm1189_vm0, %v6905_v52 }
  0x7f   :  { %5844 = vmatmul.mubr.msk.bf16.gmra.mrb[28].mxu1 %vm1189_vm0, %v6905_v52  ;;  %5801 = vmatprep.mubr.msk.bf16.mxu0 %vm1189_vm0, %v6944_v0 }
  0x80   :  { %5845 = vmatprep.mubr.msk.bf16.mxu1 %vm1189_vm0, %v6944_v0  ;;  %5872 = vmatpush3.bf16.xpose.msra.mxu0 %v1350_v62  ;;  %v6289_v62 = vld [vmem:[%s9199_s0 + $0x2e8] sm:$0xff]  }
  0x81   :  { %5916 = vmatpush3.bf16.xpose.msra.mxu1 %v1398_v2  ;;  %6153 = vmatprep.subr.msk.bf16.mxu0 %vm1189_vm0, %v6268_v4  ;;  %v1440_v2 = vsel %vm1189_vm0, %v6290_v63, 0 }
  0x82   :  { %6161 = vmatprep.subr.msk.bf16.mxu1 %vm1189_vm0, %v6269_v5  ;;  %v6293_v5 = vld [vmem:[%s9199_s0 + $0x2f0] sm:$0xff]  }
  0x86   :  { %5802 = vmatmul.mubr.msk.bf16.gmra.mrb[32].mxu0 %vm1189_vm0, %v6944_v0 }
  0x87   :  { %5846 = vmatmul.mubr.msk.bf16.gmra.mrb[32].mxu1 %vm1189_vm0, %v6944_v0  ;;  %5803 = vmatprep.mubr.msk.bf16.mxu0 %vm1189_vm0, %v6975_v9 }
  0x88   :  { %5847 = vmatprep.mubr.msk.bf16.mxu1 %vm1189_vm0, %v6975_v9 }
  0x8e   :  { %5804 = vmatmul.mubr.msk.bf16.gmra.mrb[36].mxu0 %vm1189_vm0, %v6975_v9 }
  0x8f   :  { %5848 = vmatmul.mubr.msk.bf16.gmra.mrb[36].mxu1 %vm1189_vm0, %v6975_v9  ;;  %5805 = vmatprep.mubr.msk.bf16.mxu0 %vm1189_vm0, %v7002_v14 }
  0x90   :  { %5849 = vmatprep.mubr.msk.bf16.mxu1 %vm1189_vm0, %v7002_v14 }
  0x96   :  { %5806 = vmatmul.mubr.msk.bf16.gmra.mrb[40].mxu0 %vm1189_vm0, %v7002_v14 }
  0x97   :  { %5850 = vmatmul.mubr.msk.bf16.gmra.mrb[40].mxu1 %vm1189_vm0, %v7002_v14  ;;  %5807 = vmatprep.mubr.msk.bf16.mxu0 %vm1189_vm0, %v7015_v15 }
  0x98   :  { %5851 = vmatprep.mubr.msk.bf16.mxu1 %vm1189_vm0, %v7015_v15 }
  0x9e   :  { %5808 = vmatmul.mubr.msk.bf16.gmra.mrb[44].mxu0 %vm1189_vm0, %v7015_v15 }
  0x9f   :  { %5852 = vmatmul.mubr.msk.bf16.gmra.mrb[44].mxu1 %vm1189_vm0, %v7015_v15  ;;  %5809 = vmatprep.mubr.msk.bf16.mxu0 %vm1189_vm0, %v7028_v16 }
  0xa0   :  { %5853 = vmatprep.mubr.msk.bf16.mxu1 %vm1189_vm0, %v7028_v16 }
  0xa6   :  { %5810 = vmatmul.mubr.msk.bf16.gmra.mrb[48].mxu0 %vm1189_vm0, %v7028_v16 }
  0xa7   :  { %5854 = vmatmul.mubr.msk.bf16.gmra.mrb[48].mxu1 %vm1189_vm0, %v7028_v16  ;;  %5811 = vmatprep.mubr.msk.bf16.mxu0 %vm1189_vm0, %v7041_v17 }
  0xa8   :  { %5855 = vmatprep.mubr.msk.bf16.mxu1 %vm1189_vm0, %v7041_v17 }
  0xae   :  { %5812 = vmatmul.mubr.msk.bf16.gmra.mrb[52].mxu0 %vm1189_vm0, %v7041_v17 }
  0xaf   :  { %5856 = vmatmul.mubr.msk.bf16.gmra.mrb[52].mxu1 %vm1189_vm0, %v7041_v17  ;;  %5873 = vmatprep.mubr.msk.bf16.mxu0 %vm1189_vm0, %v6609_v30 }
  0xb0   :  { %5917 = vmatprep.mubr.msk.bf16.mxu1 %vm1189_vm0, %v6609_v30 }
  0xb6   :  { %5874 = vmatmul.mubr.msk.bf16.vlgmr.msra.gmra.mrb[56].mxu0 %vm1189_vm0, %v6609_v30 }
  0xb7   :  { %5918 = vmatmul.mubr.msk.bf16.vlgmr.msra.gmra.mrb[56].mxu1 %vm1189_vm0, %v6609_v30  ;;  %5946 = vmatpush3.bf16.xpose.msra.mxu0 %v1425_v26  ;;  %v3656_v30 = vld [vmem:[%s9203_s4 + $0x38] sm:$0xff] }
  0xb8   :  { %5990 = vmatpush3.bf16.xpose.msra.mxu1 %v1473_v27  ;;  %5875 = vmatprep.mubr.msk.bf16.mxu0 %vm1189_vm0, %v6683_v56 }
  0xb9   :  { %5919 = vmatprep.mubr.msk.bf16.mxu1 %vm1189_vm0, %v6683_v56  ;;  %6154 = vmatprep.subr.msk.bf16.mxu0 %vm1189_vm0, %v6272_v28 }
  0xba   :  { %6162 = vmatprep.subr.msk.bf16.mxu1 %vm1189_vm0, %v6273_v29  ;;  %3695 = vperm.xlu0 %6188, %v3656_v30  }
  0xbe   :  { %5876 = vmatmul.mubr.msk.bf16.gmra.mrb[60].mxu0 %vm1189_vm0, %v6683_v56  ;;  %4686 = vperm.xlu0 %6188, %v4683_v40  }
  0xbf   :  { %5920 = vmatmul.mubr.msk.bf16.gmra.mrb[60].mxu1 %vm1189_vm0, %v6683_v56  ;;  %5877 = vmatprep.mubr.msk.bf16.mxu0 %vm1189_vm0, %v6720_v1  ;;  %v3655_v56 = vld [vmem:[%s9203_s4 + $0x30] sm:$0xff] }
  0xc0   :  { %5921 = vmatprep.mubr.msk.bf16.mxu1 %vm1189_vm0, %v6720_v1  ;;  %5948 = vmatpush3.bf16.xpose.msra.mxu0 %v1428_v36 }
  0xc1   :  { %5992 = vmatpush3.bf16.xpose.msra.mxu1 %v1476_v38  ;;  %6155 = vmatprep.subr.msk.bf16.mxu0 %vm1189_vm0, %v6276_v37 }
  0xc2   :  { %6163 = vmatprep.subr.msk.bf16.mxu1 %vm1189_vm0, %v6277_v39  ;;  %3690 = vperm.xlu1 %6189, %v3655_v56  }
  0xc3   :  { %5206 = vperm.xlu0 %6188, %v5203_v43   ;;  %v6410_v43 = vld [vmem:[%s9200_s1] sm:$0xff]  }
  0xc6   :  { %5878 = vmatmul.mubr.msk.bf16.gmra.mrb[64].mxu0 %vm1189_vm0, %v6720_v1  ;;  %3700 = vperm.xlu1 %6189, %v3657_v49  }
  0xc7   :  { %5922 = vmatmul.mubr.msk.bf16.gmra.mrb[64].mxu1 %vm1189_vm0, %v6720_v1  ;;  %5879 = vmatprep.mubr.msk.bf16.mxu0 %vm1189_vm0, %v6747_v8  ;;  %v6283_v1 = vld [vmem:[%s9199_s0 + $0x298] sm:$0xff]  }
  0xc8   :  { %5923 = vmatprep.mubr.msk.bf16.mxu1 %vm1189_vm0, %v6747_v8  ;;  %5950 = vmatpush3.bf16.xpose.msra.mxu0 %v1431_v45  ;;  %v1482_v55 = vsel %vm1189_vm0, %v6283_v1, 0  ;;  %v6303_v1 = vld [vmem:[%s9199_s0 + $0x380] sm:$0xff]  }
  0xc9   :  { %5994 = vmatpush3.bf16.xpose.msra.mxu1 %v1479_v47  ;;  %6156 = vmatprep.subr.msk.bf16.mxu0 %vm1189_vm0, %v6280_v46  ;;  %v1569_v6 = vsel %vm1189_vm0, %v6303_v1, 0 }
  0xca   :  { %6164 = vmatprep.subr.msk.bf16.mxu1 %vm1189_vm0, %v6281_v48  ;;  %5088 = vperm.xlu1 %6189, %v5085_v51   ;;  %v6302_v48 = vld [vmem:[%s9199_s0 + $0x300] sm:$0xff]  }
  0xce   :  { %5880 = vmatmul.mubr.msk.bf16.gmra.mrb[68].mxu0 %vm1189_vm0, %v6747_v8 }
  0xcf   :  { %5924 = vmatmul.mubr.msk.bf16.gmra.mrb[68].mxu1 %vm1189_vm0, %v6747_v8  ;;  %5881 = vmatprep.mubr.msk.bf16.mxu0 %vm1189_vm0, %v6793_v20  ;;  %v6287_v8 = vld [vmem:[%s9199_s0 + $0x2a0] sm:$0xff]  }
  0xd0   :  { %5925 = vmatprep.mubr.msk.bf16.mxu1 %vm1189_vm0, %v6793_v20  ;;  %5952 = vmatpush3.bf16.xpose.msra.mxu0 %v1434_v53  ;;  %v1485_v61 = vsel %vm1189_vm0, %v6287_v8, 0 }
  0xd1   :  { %5996 = vmatpush3.bf16.xpose.msra.mxu1 %v1482_v55  ;;  %6157 = vmatprep.subr.msk.bf16.mxu0 %vm1189_vm0, %v6284_v54 }
  0xd2   :  { %6165 = vmatprep.subr.msk.bf16.mxu1 %vm1189_vm0, %v6285_v57 }
  0xd6   :  { %5882 = vmatmul.mubr.msk.bf16.gmra.mrb[72].mxu0 %vm1189_vm0, %v6793_v20 }
  0xd7   :  { %5926 = vmatmul.mubr.msk.bf16.gmra.mrb[72].mxu1 %vm1189_vm0, %v6793_v20  ;;  %5883 = vmatprep.mubr.msk.bf16.mxu0 %vm1189_vm0, %v6829_v32  ;;  %v6291_v20 = vld [vmem:[%s9199_s0 + $0x2a8] sm:$0xff]  }
  0xd8   :  { %5927 = vmatprep.mubr.msk.bf16.mxu1 %vm1189_vm0, %v6829_v32  ;;  %5954 = vmatpush3.bf16.xpose.msra.mxu0 %v1437_v59  ;;  %v1488_v4 = vsel %vm1189_vm0, %v6291_v20, 0 }
  0xd9   :  { %5998 = vmatpush3.bf16.xpose.msra.mxu1 %v1485_v61  ;;  %6158 = vmatprep.subr.msk.bf16.mxu0 %vm1189_vm0, %v6288_v60 }
  0xda   :  { %6166 = vmatprep.subr.msk.bf16.mxu1 %vm1189_vm0, %v6289_v62 }
  0xde   :  { %5884 = vmatmul.mubr.msk.bf16.gmra.mrb[76].mxu0 %vm1189_vm0, %v6829_v32 }
  0xdf   :  { %5928 = vmatmul.mubr.msk.bf16.gmra.mrb[76].mxu1 %vm1189_vm0, %v6829_v32  ;;  %5885 = vmatprep.mubr.msk.bf16.mxu0 %vm1189_vm0, %v6869_v44  ;;  %v6295_v32 = vld [vmem:[%s9199_s0 + $0x2b0] sm:$0xff]  }
  0xe0   :  { %5929 = vmatprep.mubr.msk.bf16.mxu1 %vm1189_vm0, %v6869_v44  ;;  %5956 = vmatpush3.bf16.xpose.msra.mxu0 %v1440_v2  ;;  %v1491_v11 = vsel %vm1189_vm0, %v6295_v32, 0  ;;  %v1521_v2 = vsel %vm1189_vm0, %v6302_v48, 0  ;;  %v6304_v32 = vld [vmem:[%s9199_s0 + $0x348] sm:$0xff]  }
  0xe1   :  { %6000 = vmatpush3.bf16.xpose.msra.mxu1 %v1488_v4  ;;  %6159 = vmatprep.subr.msk.bf16.mxu0 %vm1189_vm0, %v6292_v3 }
  0xe2   :  { %6167 = vmatprep.subr.msk.bf16.mxu1 %vm1189_vm0, %v6293_v5 }
  0xe6   :  { %5886 = vmatmul.mubr.msk.bf16.gmra.mrb[80].mxu0 %vm1189_vm0, %v6869_v44 }
  0xe7   :  { %5930 = vmatmul.mubr.msk.bf16.gmra.mrb[80].mxu1 %vm1189_vm0, %v6869_v44  ;;  %5887 = vmatprep.mubr.msk.bf16.mxu0 %vm1189_vm0, %v6905_v52  ;;  %v6299_v44 = vld [vmem:[%s9199_s0 + $0x2b8] sm:$0xff]  }
  0xe8   :  { %5931 = vmatprep.mubr.msk.bf16.mxu1 %vm1189_vm0, %v6905_v52  ;;  %5958 = vmatpush3.bf16.xpose.msra.mxu0 %v1443_v7  ;;  %v1494_v21 = vsel %vm1189_vm0, %v6299_v44, 0 }
  0xe9   :  { %6002 = vmatpush3.bf16.xpose.msra.mxu1 %v1491_v11  ;;  %6160 = vmatprep.subr.msk.bf16.mxu0 %vm1189_vm0, %v6296_v10 }
  0xea   :  { %6168 = vmatprep.subr.msk.bf16.mxu1 %vm1189_vm0, %v6297_v12  ;;  %v6305_v12 = vld [vmem:[%s9199_s0 + $0x3c8] sm:$0xff]  }
  0xee   :  { %5888 = vmatmul.mubr.msk.bf16.gmra.mrb[84].mxu0 %vm1189_vm0, %v6905_v52 }
  0xef   :  { %5932 = vmatmul.mubr.msk.bf16.gmra.mrb[84].mxu1 %vm1189_vm0, %v6905_v52  ;;  %5889 = vmatprep.mubr.msk.bf16.mxu0 %vm1189_vm0, %v6944_v0  ;;  %v7316_v52 = vpop.permute.xlu0 %348 }
  0xf0   :  { %5933 = vmatprep.mubr.msk.bf16.mxu1 %vm1189_vm0, %v6944_v0  ;;  %5960 = vmatpush3.bf16.xpose.msra.mxu0 %v1446_v18  ;;  %9297 = vst [vmem:[#allocation6_spill] sm:$0xff] %v7316_v52 }
  0xf1   :  { %6004 = vmatpush3.bf16.xpose.msra.mxu1 %v1494_v21  ;;  %6169 = vmatprep.subr.msk.bf16.mxu0 %vm1189_vm0, %v6300_v19 }
  0xf2   :  { %6177 = vmatprep.subr.msk.bf16.mxu1 %vm1189_vm0, %v6301_v22 }
  0xf6   :  { %5890 = vmatmul.mubr.msk.bf16.gmra.mrb[88].mxu0 %vm1189_vm0, %v6944_v0 }
  0xf7   :  { %5934 = vmatmul.mubr.msk.bf16.gmra.mrb[88].mxu1 %vm1189_vm0, %v6944_v0  ;;  %5891 = vmatprep.mubr.msk.bf16.mxu0 %vm1189_vm0, %v6975_v9  ;;  %v7324_v0 = vpop.permute.xlu0 %353 }
  0xf8   :  { %5935 = vmatprep.mubr.msk.bf16.mxu1 %vm1189_vm0, %v6975_v9  ;;  %9298 = vst [vmem:[#allocation7_spill] sm:$0xff] %v7324_v0 }
  0xfb   :  { %v7381_v21 = vpop.permute.xlu0 %368 }
  0xfe   :  { %5892 = vmatmul.mubr.msk.bf16.gmra.mrb[92].mxu0 %vm1189_vm0, %v6975_v9 }
  0xff   :  { %5936 = vmatmul.mubr.msk.bf16.gmra.mrb[92].mxu1 %vm1189_vm0, %v6975_v9  ;;  %5893 = vmatprep.mubr.msk.bf16.mxu0 %vm1189_vm0, %v7002_v14 }
 0x100   :  { %5937 = vmatprep.mubr.msk.bf16.mxu1 %vm1189_vm0, %v7002_v14 }
 0x106   :  { %5894 = vmatmul.mubr.msk.bf16.gmra.mrb[96].mxu0 %vm1189_vm0, %v7002_v14 }
 0x107   :  { %5938 = vmatmul.mubr.msk.bf16.gmra.mrb[96].mxu1 %vm1189_vm0, %v7002_v14  ;;  %5895 = vmatprep.mubr.msk.bf16.mxu0 %vm1189_vm0, %v7015_v15  ;;  %v7328_v14 = vpop.permute.xlu1 %358 }
 0x108   :  { %5939 = vmatprep.mubr.msk.bf16.mxu1 %vm1189_vm0, %v7015_v15  ;;  %9299 = vst [vmem:[#allocation8_spill] sm:$0xff] %v7328_v14 }
 0x10e   :  { %5896 = vmatmul.mubr.msk.bf16.gmra.mrb[100].mxu0 %vm1189_vm0, %v7015_v15 }
 0x10f   :  { %5940 = vmatmul.mubr.msk.bf16.gmra.mrb[100].mxu1 %vm1189_vm0, %v7015_v15  ;;  %5897 = vmatprep.mubr.msk.bf16.mxu0 %vm1189_vm0, %v7028_v16 }
 0x110   :  { %5941 = vmatprep.mubr.msk.bf16.mxu1 %vm1189_vm0, %v7028_v16 }
 0x116   :  { %5898 = vmatmul.mubr.msk.bf16.gmra.mrb[104].mxu0 %vm1189_vm0, %v7028_v16 }
 0x117   :  { %5942 = vmatmul.mubr.msk.bf16.gmra.mrb[104].mxu1 %vm1189_vm0, %v7028_v16  ;;  %5899 = vmatprep.mubr.msk.bf16.mxu0 %vm1189_vm0, %v7041_v17 }
 0x118   :  { %5943 = vmatprep.mubr.msk.bf16.mxu1 %vm1189_vm0, %v7041_v17 }
 0x119   :  { %v1650_v9 = vpop.f32.mrb[0].mxu0 }
 0x11a   :  { %v1651_v15 = vadd.f32 %v1650_v9, %v7316_v52  ;;  %v1821_v24 = vpop.f32.mrb[0].mxu1  ;;  %v1652_v25 = vpop.f32.mrb[1].mxu0 }
 0x11b   :  { %v1822_v26 = vadd.f32 %v1821_v24, %v7316_v52  ;;  %v1653_v27 = vadd.f32 %v1652_v25, %v7316_v52  ;;  %v1823_v16 = vpop.f32.mrb[1].mxu1  ;;  %v1654_v28 = vpop.f32.mrb[2].mxu0  ;;  %v6411_v24 = vld [vmem:[%s9200_s1 + $0x8] sm:$0xff]  }
 0x11c   :  { %v1824_v29 = vadd.f32 %v1823_v16, %v7316_v52  ;;  %v1655_v31 = vadd.f32 %v1654_v28, %v7324_v0  ;;  %v1825_v33 = vpop.f32.mrb[2].mxu1  ;;  %v1656_v30 = vpop.f32.mrb[3].mxu0  ;;  %v2984_v37 = vmax.f32 %v1651_v15, 0.0  ;;  %v6306_v25 = vld [vmem:[%s9199_s0 + $0x308] sm:$0xff]  }
 0x11d   :  { %v1826_v34 = vadd.f32 %v1825_v33, %v7324_v0  ;;  %v1657_v35 = vadd.f32 %v1656_v30, %v7324_v0  ;;  %v1827_v36 = vpop.f32.mrb[3].mxu1  ;;  %v2986_v40 = vmax.f32 %v1822_v26, 0.0  ;;  %v2985_v41 = vmax.f32 %v1653_v27, 0.0  ;;  %v6307_v28 = vld [vmem:[%s9199_s0 + $0x388] sm:$0xff]  }
 0x11e   :  { %v3000_v38 = vmax.f32 %v1655_v31, 0.0  ;;  %v1828_v39 = vadd.f32 %v1827_v36, %v7324_v0  ;;  %5900 = vmatmul.mubr.msk.bf16.gmra.mrb[108].mxu0 %vm1189_vm0, %v7041_v17  ;;  %v2987_v45 = vmax.f32 %v1824_v29, 0.0  ;;  %v1572_v48 = vsel %vm1189_vm0, %v6307_v28, 0 }
 0x11f   :  { %v3002_v56 = vmax.f32 %v1826_v34, 0.0  ;;  %v3001_v42 = vmax.f32 %v1657_v35, 0.0  ;;  %5944 = vmatmul.mubr.msk.bf16.gmra.mrb[108].mxu1 %vm1189_vm0, %v7041_v17  ;;  %5961 = vmatprep.mubr.msk.bf16.mxu0 %vm1189_vm0, %v6410_v43  ;;  %v7354_v17 = vpop.permute.xlu1 %363 }
 0x120   :  { %v7346_v46 = vpack.c.bf16 %v3000_v38, %v2984_v37  ;;  %v3003_v47 = vmax.f32 %v1828_v39, 0.0  ;;  %6005 = vmatprep.mubr.msk.bf16.mxu1 %vm1189_vm0, %v6410_v43 }
 0x121   :  { %v7352_v49 = vpack.c.bf16 %v3002_v56, %v2986_v40  ;;  %v1660_v50 = vpop.f32.mrb[4].mxu0  ;;  %v7359_v51 = vpack.c.bf16 %v3001_v42, %v2985_v41  ;;  %v1524_v42 = vsel %vm1189_vm0, %v6306_v25, 0 }
 0x122   :  { %v1661_v53 = vadd.f32 %v1660_v50, %v7328_v14  ;;  %v1831_v54 = vpop.f32.mrb[4].mxu1  ;;  %v1662_v55 = vpop.f32.mrb[5].mxu0  ;;  %v7362_v57 = vpack.c.bf16 %v3003_v47, %v2987_v45  ;;  %v6308_v50 = vld [vmem:[%s9199_s0 + $0x350] sm:$0xff]  }
 0x123   :  { %v1832_v58 = vadd.f32 %v1831_v54, %v7328_v14  ;;  %v1663_v8 = vadd.f32 %v1662_v55, %v7328_v14  ;;  %v1833_v59 = vpop.f32.mrb[5].mxu1  ;;  %v1664_v60 = vpop.f32.mrb[6].mxu0  ;;  %v6309_v55 = vld [vmem:[%s9199_s0 + $0x3d0] sm:$0xff]  }
 0x124   :  { %v1834_v61 = vadd.f32 %v1833_v59, %v7328_v14  ;;  %v1665_v62 = vadd.f32 %v1664_v60, %v7354_v17  ;;  %v1835_v63 = vpop.f32.mrb[6].mxu1  ;;  %v1666_v20 = vpop.f32.mrb[7].mxu0  ;;  %v3016_v7 = vmax.f32 %v1661_v53, 0.0 }
 0x125   :  { %v1836_v3 = vadd.f32 %v1835_v63, %v7354_v17  ;;  %v1667_v4 = vadd.f32 %v1666_v20, %v7354_v17  ;;  %v1837_v5 = vpop.f32.mrb[7].mxu1  ;;  %v3018_v13 = vmax.f32 %v1832_v58, 0.0  ;;  %v3017_v44 = vmax.f32 %v1663_v8, 0.0  ;;  %v7394_v16 = vpop.permute.xlu1 %373 }
 0x126   :  { %v3032_v10 = vmax.f32 %v1665_v62, 0.0  ;;  %v1838_v11 = vadd.f32 %v1837_v5, %v7354_v17  ;;  %5962 = vmatmul.mubr.msk.bf16.vlgmr.msra.gmra.mrb[112].mxu0 %vm1189_vm0, %v6410_v43  ;;  %v3019_v22 = vmax.f32 %v1834_v61, 0.0  ;;  %9300 = vst [vmem:[#allocation9_spill] sm:$0xff] %v7394_v16  ;;  %v7424_v61 = vpop.permute.xlu0 %378 }
 0x127   :  { %v3034_v18 = vmax.f32 %v1836_v3, 0.0  ;;  %v3033_v19 = vmax.f32 %v1667_v4, 0.0  ;;  %6006 = vmatmul.mubr.msk.bf16.vlgmr.msra.gmra.mrb[112].mxu1 %vm1189_vm0, %v6410_v43  ;;  %6034 = vmatpush3.bf16.xpose.msra.mxu0 %v1521_v2  ;;  %9301 = vst [vmem:[#allocation10_spill] sm:$0xff] %v7424_v61  ;;  %v6412_v2 = vld [vmem:[%s9200_s1 + $0x10] sm:$0xff]  }
 0x128   :  { %v7383_v9 = vpack.c.bf16 %v3032_v10, %v3016_v7  ;;  %v3035_v15 = vmax.f32 %v1838_v11, 0.0  ;;  %6078 = vmatpush3.bf16.xpose.msra.mxu1 %v1569_v6  ;;  %5963 = vmatprep.mubr.msk.bf16.mxu0 %vm1189_vm0, %v6411_v24  ;;  %v6310_v3 = vld [vmem:[%s9199_s0 + $0x310] sm:$0xff]  }
 0x129   :  { %v7392_v26 = vpack.c.bf16 %v3034_v18, %v3018_v13  ;;  %v1670_v27 = vpop.f32.mrb[8].mxu0  ;;  %6007 = vmatprep.mubr.msk.bf16.mxu1 %vm1189_vm0, %v6411_v24  ;;  %6170 = vmatprep.subr.msk.bf16.mxu0 %vm1189_vm0, %v6304_v32  ;;  %v7401_v29 = vpack.c.bf16 %v3033_v19, %v3017_v44  ;;  %v7437_v6 = vpop.permute.xlu1 %383  ;;  %v6311_v32 = vld [vmem:[%s9199_s0 + $0x390] sm:$0xff]   ;;  %v1527_v28 = vsel %vm1189_vm0, %v6310_v3, 0 }
 0x12a   :  { %v1841_v31 = vpop.f32.mrb[8].mxu1  ;;  %v1672_v33 = vpop.f32.mrb[9].mxu0  ;;  %v1671_v30 = vadd.f32 %v1670_v27, %v7381_v21  ;;  %6178 = vmatprep.subr.msk.bf16.mxu1 %vm1189_vm0, %v6305_v12  ;;  %v7405_v34 = vpack.c.bf16 %v3035_v15, %v3019_v22  ;;  %9302 = vst [vmem:[#allocation11_spill] sm:$0xff] %v7437_v6 }
 0x12b   :  { %v1673_v35 = vadd.f32 %v1672_v33, %v7381_v21  ;;  %v1843_v36 = vpop.f32.mrb[9].mxu1  ;;  %v1674_v37 = vpop.f32.mrb[10].mxu0  ;;  %v1842_v38 = vadd.f32 %v1841_v31, %v7381_v21 }
 0x12c   :  { %v1844_v39 = vadd.f32 %v1843_v36, %v7381_v21  ;;  %v1675_v40 = vadd.f32 %v1674_v37, %v7394_v16  ;;  %v1845_v41 = vpop.f32.mrb[10].mxu1  ;;  %v1676_v56 = vpop.f32.mrb[11].mxu0  ;;  %v3048_v1 = vmax.f32 %v1671_v30, 0.0  ;;  %v6312_v36 = vld [vmem:[%s9199_s0 + $0x358] sm:$0xff]  }
 0x12d   :  { %v1846_v43 = vadd.f32 %v1845_v41, %v7394_v16  ;;  %v1677_v45 = vadd.f32 %v1676_v56, %v7394_v16  ;;  %v1847_v47 = vpop.f32.mrb[11].mxu1  ;;  %v3049_v58 = vmax.f32 %v1673_v35, 0.0  ;;  %v3050_v8 = vmax.f32 %v1842_v38, 0.0 }
 0x12e   :  { %v3064_v53 = vmax.f32 %v1675_v40, 0.0  ;;  %v1848_v54 = vadd.f32 %v1847_v47, %v7394_v16  ;;  %5964 = vmatmul.mubr.msk.bf16.gmra.mrb[116].mxu0 %vm1189_vm0, %v6411_v24  ;;  %v3051_v62 = vmax.f32 %v1844_v39, 0.0  ;;  %v1575_v35 = vsel %vm1189_vm0, %v6311_v32, 0  ;;  %v6313_v40 = vld [vmem:[%s9199_s0 + $0x3d8] sm:$0xff]  }
 0x12f   :  { %v3066_v59 = vmax.f32 %v1846_v43, 0.0  ;;  %v3065_v60 = vmax.f32 %v1677_v45, 0.0  ;;  %6008 = vmatmul.mubr.msk.bf16.gmra.mrb[116].mxu1 %vm1189_vm0, %v6411_v24  ;;  %6036 = vmatpush3.bf16.xpose.msra.mxu0 %v1524_v42  ;;  %v7467_v45 = vpop.permute.xlu0 %388 }
 0x130   :  { %v7426_v63 = vpack.c.bf16 %v3064_v53, %v3048_v1  ;;  %v3067_v20 = vmax.f32 %v1848_v54, 0.0  ;;  %6080 = vmatpush3.bf16.xpose.msra.mxu1 %v1572_v48  ;;  %5965 = vmatprep.mubr.msk.bf16.mxu0 %vm1189_vm0, %v6412_v2  ;;  %9303 = vst [vmem:[#allocation12_spill] sm:$0xff] %v7467_v45  ;;  %v6413_v1 = vld [vmem:[%s9200_s1 + $0x18] sm:$0xff]  }
 0x131   :  { %v7435_v4 = vpack.c.bf16 %v3066_v59, %v3050_v8  ;;  %v1680_v5 = vpop.f32.mrb[12].mxu0  ;;  %6009 = vmatprep.mubr.msk.bf16.mxu1 %vm1189_vm0, %v6412_v2  ;;  %6171 = vmatprep.subr.msk.bf16.mxu0 %vm1189_vm0, %v6308_v50  ;;  %v7444_v7 = vpack.c.bf16 %v3065_v60, %v3049_v58  ;;  %v6314_v53 = vld [vmem:[%s9199_s0 + $0x318] sm:$0xff]   ;;  %v7480_v58 = vpop.permute.xlu1 %393 }
 0x132   :  { %v1851_v10 = vpop.f32.mrb[12].mxu1  ;;  %v1682_v11 = vpop.f32.mrb[13].mxu0  ;;  %v1681_v12 = vadd.f32 %v1680_v5, %v7424_v61  ;;  %6179 = vmatprep.subr.msk.bf16.mxu1 %vm1189_vm0, %v6309_v55  ;;  %v7448_v13 = vpack.c.bf16 %v3067_v20, %v3051_v62  ;;  %9304 = vst [vmem:[#allocation13_spill] sm:$0xff] %v7480_v58  ;;  %v6315_v8 = vld [vmem:[%s9199_s0 + $0x398] sm:$0xff]  }
 0x133   :  { %v1683_v44 = vadd.f32 %v1682_v11, %v7424_v61  ;;  %v1853_v18 = vpop.f32.mrb[13].mxu1  ;;  %v1684_v19 = vpop.f32.mrb[14].mxu0  ;;  %v1852_v22 = vadd.f32 %v1851_v10, %v7424_v61 }
 0x134   :  { %v1854_v15 = vadd.f32 %v1853_v18, %v7424_v61  ;;  %v1685_v24 = vadd.f32 %v1684_v19, %v7437_v6  ;;  %v1855_v25 = vpop.f32.mrb[14].mxu1  ;;  %v1686_v27 = vpop.f32.mrb[15].mxu0  ;;  %v3080_v37 = vmax.f32 %v1681_v12, 0.0  ;;  %v1530_v19 = vsel %vm1189_vm0, %v6314_v53, 0  ;;  %v6319_v53 = vld [vmem:[%s9199_s0 + $0x3a0] sm:$0xff]  }
 0x135   :  { %v1856_v31 = vadd.f32 %v1855_v25, %v7437_v6  ;;  %v1687_v33 = vadd.f32 %v1686_v27, %v7437_v6  ;;  %v1857_v30 = vpop.f32.mrb[15].mxu1  ;;  %v3081_v41 = vmax.f32 %v1683_v44, 0.0  ;;  %v3082_v56 = vmax.f32 %v1852_v22, 0.0  ;;  %v6316_v27 = vld [vmem:[%s9199_s0 + $0x360] sm:$0xff]  }
 0x136   :  { %v3096_v38 = vmax.f32 %v1685_v24, 0.0  ;;  %v1858_v39 = vadd.f32 %v1857_v30, %v7437_v6  ;;  %5966 = vmatmul.mubr.msk.bf16.gmra.mrb[120].mxu0 %vm1189_vm0, %v6412_v2  ;;  %v3083_v47 = vmax.f32 %v1854_v15, 0.0  ;;  %v1578_v25 = vsel %vm1189_vm0, %v6315_v8, 0  ;;  %v6317_v30 = vld [vmem:[%s9199_s0 + $0x3e0] sm:$0xff]  }
 0x137   :  { %v3098_v42 = vmax.f32 %v1856_v31, 0.0  ;;  %v3097_v43 = vmax.f32 %v1687_v33, 0.0  ;;  %6010 = vmatmul.mubr.msk.bf16.gmra.mrb[120].mxu1 %vm1189_vm0, %v6412_v2  ;;  %6038 = vmatpush3.bf16.xpose.msra.mxu0 %v1527_v28 }
 0x138   :  { %v7469_v48 = vpack.c.bf16 %v3096_v38, %v3080_v37  ;;  %v3099_v50 = vmax.f32 %v1858_v39, 0.0  ;;  %6082 = vmatpush3.bf16.xpose.msra.mxu1 %v1575_v35  ;;  %5967 = vmatprep.mubr.msk.bf16.mxu0 %vm1189_vm0, %v6413_v1  ;;  %v7510_v39 = vpop.permute.xlu0 %398 }
 0x139   :  { %v7478_v54 = vpack.c.bf16 %v3098_v42, %v3082_v56  ;;  %v1690_v55 = vpop.f32.mrb[16].mxu0  ;;  %6011 = vmatprep.mubr.msk.bf16.mxu1 %vm1189_vm0, %v6413_v1  ;;  %6172 = vmatprep.subr.msk.bf16.mxu0 %vm1189_vm0, %v6312_v36  ;;  %v7487_v59 = vpack.c.bf16 %v3097_v43, %v3081_v41  ;;  %9305 = vst [vmem:[#allocation14_spill] sm:$0xff] %v7510_v39  ;;  %v6414_v42 = vld [vmem:[%s9200_s1 + $0x20] sm:$0xff]  }
 0x13a   :  { %v1861_v60 = vpop.f32.mrb[16].mxu1  ;;  %v1692_v62 = vpop.f32.mrb[17].mxu0  ;;  %v1691_v20 = vadd.f32 %v1690_v55, %v7467_v45  ;;  %6180 = vmatprep.subr.msk.bf16.mxu1 %vm1189_vm0, %v6313_v40  ;;  %v7491_v2 = vpack.c.bf16 %v3099_v50, %v3083_v47  ;;  %v6318_v43 = vld [vmem:[%s9199_s0 + $0x320] sm:$0xff]  }
 0x13b   :  { %v1693_v3 = vadd.f32 %v1692_v62, %v7467_v45  ;;  %v1863_v5 = vpop.f32.mrb[17].mxu1  ;;  %v1694_v32 = vpop.f32.mrb[18].mxu0  ;;  %v1862_v10 = vadd.f32 %v1861_v60, %v7467_v45 }
 0x13c   :  { %v1864_v11 = vadd.f32 %v1863_v5, %v7467_v45  ;;  %v1695_v12 = vadd.f32 %v1694_v32, %v7480_v58  ;;  %v1865_v44 = vpop.f32.mrb[18].mxu1  ;;  %v1696_v18 = vpop.f32.mrb[19].mxu0  ;;  %v3112_v28 = vmax.f32 %v1691_v20, 0.0 }
 0x13d   :  { %v1866_v22 = vadd.f32 %v1865_v44, %v7480_v58  ;;  %v1697_v15 = vadd.f32 %v1696_v18, %v7480_v58  ;;  %v1867_v24 = vpop.f32.mrb[19].mxu1  ;;  %v3113_v35 = vmax.f32 %v1693_v3, 0.0  ;;  %v3114_v36 = vmax.f32 %v1862_v10, 0.0 }
 0x13e   :  { %v3128_v31 = vmax.f32 %v1695_v12, 0.0  ;;  %v1868_v33 = vadd.f32 %v1867_v24, %v7480_v58  ;;  %5968 = vmatmul.mubr.msk.bf16.gmra.mrb[124].mxu0 %vm1189_vm0, %v6413_v1  ;;  %v3115_v40 = vmax.f32 %v1864_v11, 0.0 }
 0x13f   :  { %v3130_v37 = vmax.f32 %v1866_v22, 0.0  ;;  %v3129_v38 = vmax.f32 %v1697_v15, 0.0  ;;  %6012 = vmatmul.mubr.msk.bf16.gmra.mrb[124].mxu1 %vm1189_vm0, %v6413_v1  ;;  %6040 = vmatpush3.bf16.xpose.msra.mxu0 %v1530_v19  ;;  %v7523_v1 = vpop.permute.xlu1 %403  ;;  %v1533_v19 = vsel %vm1189_vm0, %v6318_v43, 0 }
 0x140   :  { %v7512_v41 = vpack.c.bf16 %v3128_v31, %v3112_v28  ;;  %v3131_v56 = vmax.f32 %v1868_v33, 0.0  ;;  %6084 = vmatpush3.bf16.xpose.msra.mxu1 %v1578_v25  ;;  %5969 = vmatprep.mubr.msk.bf16.mxu0 %vm1189_vm0, %v6414_v42  ;;  %9306 = vst [vmem:[#allocation15_spill] sm:$0xff] %v7523_v1  ;;  %v1581_v25 = vsel %vm1189_vm0, %v6319_v53, 0  ;;  %v7560_v53 = vld [vmem:[%s9200_s1 + $0x28] sm:$0xff]  }
 0x141   :  { %v7521_v47 = vpack.c.bf16 %v3130_v37, %v3114_v36  ;;  %v1700_v50 = vpop.f32.mrb[20].mxu0  ;;  %6013 = vmatprep.mubr.msk.bf16.mxu1 %vm1189_vm0, %v6414_v42  ;;  %6173 = vmatprep.subr.msk.bf16.mxu0 %vm1189_vm0, %v6316_v27  ;;  %v7530_v55 = vpack.c.bf16 %v3129_v38, %v3113_v35  ;;  %v6320_v27 = vld [vmem:[%s9199_s0 + $0x368] sm:$0xff]   ;;  %9308 = vst [vmem:[#allocation17_spill] sm:$0xff] %v7560_v53 }
 0x142   :  { %v1871_v8 = vpop.f32.mrb[20].mxu1  ;;  %v1702_v60 = vpop.f32.mrb[21].mxu0  ;;  %v1701_v62 = vadd.f32 %v1700_v50, %v7510_v39  ;;  %6181 = vmatprep.subr.msk.bf16.mxu1 %vm1189_vm0, %v6317_v30  ;;  %v7534_v20 = vpack.c.bf16 %v3131_v56, %v3115_v40  ;;  %v6321_v30 = vld [vmem:[%s9199_s0 + $0x3e8] sm:$0xff]  }
 0x143   :  { %v1703_v3 = vadd.f32 %v1702_v60, %v7510_v39  ;;  %v1873_v5 = vpop.f32.mrb[21].mxu1  ;;  %v1704_v32 = vpop.f32.mrb[22].mxu0  ;;  %v1872_v10 = vadd.f32 %v1871_v8, %v7510_v39 }
 0x144   :  { %v1874_v11 = vadd.f32 %v1873_v5, %v7510_v39  ;;  %v1705_v12 = vadd.f32 %v1704_v32, %v7523_v1  ;;  %v1875_v44 = vpop.f32.mrb[22].mxu1  ;;  %v1706_v18 = vpop.f32.mrb[23].mxu0  ;;  %v3144_v28 = vmax.f32 %v1701_v62, 0.0 }
 0x145   :  { %v1876_v22 = vadd.f32 %v1875_v44, %v7523_v1  ;;  %v1707_v15 = vadd.f32 %v1706_v18, %v7523_v1  ;;  %v1877_v24 = vpop.f32.mrb[23].mxu1  ;;  %v3145_v35 = vmax.f32 %v1703_v3, 0.0  ;;  %v3146_v36 = vmax.f32 %v1872_v10, 0.0  ;;  %v7553_v40 = vpop.permute.xlu0 %408  ;;  %v6323_v3 = vld [vmem:[%s9199_s0 + $0x3a8] sm:$0xff]  }
 0x146   :  { %v3160_v31 = vmax.f32 %v1705_v12, 0.0  ;;  %v1878_v33 = vadd.f32 %v1877_v24, %v7523_v1  ;;  %5970 = vmatmul.mubr.msk.bf16.gmra.mrb[128].mxu0 %vm1189_vm0, %v6414_v42  ;;  %9307 = vst [vmem:[#allocation16_spill] sm:$0xff] %v7553_v40  ;;  %v3147_v56 = vmax.f32 %v1874_v11, 0.0  ;;  %v7569_v62 = vpop.permute.xlu1 %413 }
 0x147   :  { %v3162_v37 = vmax.f32 %v1876_v22, 0.0  ;;  %v3161_v38 = vmax.f32 %v1707_v15, 0.0  ;;  %6014 = vmatmul.mubr.msk.bf16.gmra.mrb[128].mxu1 %vm1189_vm0, %v6414_v42  ;;  %6042 = vmatpush3.bf16.xpose.msra.mxu0 %v1533_v19  ;;  %v6322_v42 = vld [vmem:[%s9199_s0 + $0x328] sm:$0xff]   ;;  %9309 = vst [vmem:[#allocation18_spill] sm:$0xff] %v7569_v62 }
 0x148   :  { %v7555_v43 = vpack.c.bf16 %v3160_v31, %v3144_v28  ;;  %v3163_v50 = vmax.f32 %v1878_v33, 0.0  ;;  %6086 = vmatpush3.bf16.xpose.msra.mxu1 %v1581_v25  ;;  %5971 = vmatprep.mubr.msk.bf16.mxu0 %vm1189_vm0, %v7560_v53  ;;  %v1536_v28 = vsel %vm1189_vm0, %v6322_v42, 0 }
 0x149   :  { %v7567_v8 = vpack.c.bf16 %v3162_v37, %v3146_v36  ;;  %v1710_v60 = vpop.f32.mrb[24].mxu0  ;;  %6015 = vmatprep.mubr.msk.bf16.mxu1 %vm1189_vm0, %v7560_v53  ;;  %6174 = vmatprep.subr.msk.bf16.mxu0 %vm1189_vm0, %v6320_v27  ;;  %v7577_v5 = vpack.c.bf16 %v3161_v38, %v3145_v35  ;;  %v1584_v35 = vsel %vm1189_vm0, %v6323_v3, 0  ;;  %v6324_v36 = vld [vmem:[%s9199_s0 + $0x370] sm:$0xff]   ;;  %v7602_v3 = vpop.permute.xlu0 %418 }
 0x14a   :  { %v1881_v32 = vpop.f32.mrb[24].mxu1  ;;  %v1712_v10 = vpop.f32.mrb[25].mxu0  ;;  %v1711_v11 = vadd.f32 %v1710_v60, %v7553_v40  ;;  %6182 = vmatprep.subr.msk.bf16.mxu1 %vm1189_vm0, %v6321_v30  ;;  %v7581_v12 = vpack.c.bf16 %v3163_v50, %v3147_v56  ;;  %v6325_v50 = vld [vmem:[%s9199_s0 + $0x3f0] sm:$0xff]   ;;  %9310 = vst [vmem:[#allocation19_spill] sm:$0xff] %v7602_v3 }
 0x14b   :  { %v1713_v44 = vadd.f32 %v1712_v10, %v7553_v40  ;;  %v1883_v18 = vpop.f32.mrb[25].mxu1  ;;  %v1714_v19 = vpop.f32.mrb[26].mxu0  ;;  %v1882_v22 = vadd.f32 %v1881_v32, %v7553_v40 }
 0x14c   :  { %v1884_v15 = vadd.f32 %v1883_v18, %v7553_v40  ;;  %v1715_v24 = vadd.f32 %v1714_v19, %v7569_v62  ;;  %v1885_v25 = vpop.f32.mrb[26].mxu1  ;;  %v1716_v27 = vpop.f32.mrb[27].mxu0  ;;  %v3176_v37 = vmax.f32 %v1711_v11, 0.0 }
 0x14d   :  { %v1886_v31 = vadd.f32 %v1885_v25, %v7569_v62  ;;  %v1717_v33 = vadd.f32 %v1716_v27, %v7569_v62  ;;  %v1887_v30 = vpop.f32.mrb[27].mxu1  ;;  %v3177_v42 = vmax.f32 %v1713_v44, 0.0  ;;  %v3178_v60 = vmax.f32 %v1882_v22, 0.0  ;;  %v6326_v44 = vld [vmem:[%s9199_s0 + $0x330] sm:$0xff]   ;;  %v7615_v27 = vpop.permute.xlu1 %423 }
 0x14e   :  { %v3192_v38 = vmax.f32 %v1715_v24, 0.0  ;;  %v1888_v56 = vadd.f32 %v1887_v30, %v7569_v62  ;;  %5972 = vmatmul.mubr.msk.bf16.gmra.mrb[132].mxu0 %vm1189_vm0, %v7560_v53  ;;  %v3179_v11 = vmax.f32 %v1884_v15, 0.0  ;;  %v6416_v24 = vld [vmem:[%s9200_s1 + $0x30] sm:$0xff]   ;;  %9311 = vst [vmem:[#allocation20_spill] sm:$0xff] %v7615_v27  ;;  %v1539_v23 = vsel %vm1189_vm0, %v6326_v44, 0  ;;  %v6329_v44 = vld [vmem:[%s9199_s0 + $0x3f8] sm:$0xff]  }
 0x14f   :  { %v3194_v32 = vmax.f32 %v1886_v31, 0.0  ;;  %v3193_v10 = vmax.f32 %v1717_v33, 0.0  ;;  %6016 = vmatmul.mubr.msk.bf16.gmra.mrb[132].mxu1 %vm1189_vm0, %v7560_v53  ;;  %6044 = vmatpush3.bf16.xpose.msra.mxu0 %v1536_v28  ;;  %v6327_v15 = vld [vmem:[%s9199_s0 + $0x3b0] sm:$0xff]  }
 0x150   :  { %v7604_v18 = vpack.c.bf16 %v3192_v38, %v3176_v37  ;;  %v3195_v19 = vmax.f32 %v1888_v56, 0.0  ;;  %6088 = vmatpush3.bf16.xpose.msra.mxu1 %v1584_v35  ;;  %5973 = vmatprep.mubr.msk.bf16.mxu0 %vm1189_vm0, %v6416_v24 }
 0x151   :  { %v7613_v22 = vpack.c.bf16 %v3194_v32, %v3178_v60  ;;  %v1720_v25 = vpop.f32.mrb[28].mxu0  ;;  %6017 = vmatprep.mubr.msk.bf16.mxu1 %vm1189_vm0, %v6416_v24  ;;  %6175 = vmatprep.subr.msk.bf16.mxu0 %vm1189_vm0, %v6324_v36  ;;  %v7622_v28 = vpack.c.bf16 %v3193_v10, %v3177_v42 }
 0x152   :  { %v1891_v31 = vpop.f32.mrb[28].mxu1  ;;  %v1722_v33 = vpop.f32.mrb[29].mxu0  ;;  %v1721_v30 = vadd.f32 %v1720_v25, %v7602_v3  ;;  %6183 = vmatprep.subr.msk.bf16.mxu1 %vm1189_vm0, %v6325_v50  ;;  %v7626_v35 = vpack.c.bf16 %v3195_v19, %v3179_v11  ;;  %v1587_v19 = vsel %vm1189_vm0, %v6327_v15, 0 }
 0x153   :  { %v1723_v37 = vadd.f32 %v1722_v33, %v7602_v3  ;;  %v1893_v38 = vpop.f32.mrb[29].mxu1  ;;  %v1724_v56 = vpop.f32.mrb[30].mxu0  ;;  %v1892_v36 = vadd.f32 %v1891_v31, %v7602_v3  ;;  %v6328_v33 = vld [vmem:[%s9199_s0 + $0x378] sm:$0xff]  }
 0x154   :  { %v1894_v60 = vadd.f32 %v1893_v38, %v7602_v3  ;;  %v1725_v32 = vadd.f32 %v1724_v56, %v7615_v27  ;;  %v1895_v42 = vpop.f32.mrb[30].mxu1  ;;  %v1726_v10 = vpop.f32.mrb[31].mxu0  ;;  %v3208_v31 = vmax.f32 %v1721_v30, 0.0 }
 0x155   :  { %v1896_v25 = vadd.f32 %v1895_v42, %v7615_v27  ;;  %v1727_v50 = vadd.f32 %v1726_v10, %v7615_v27  ;;  %v1897_v11 = vpop.f32.mrb[31].mxu1  ;;  %v3209_v56 = vmax.f32 %v1723_v37, 0.0  ;;  %v3210_v42 = vmax.f32 %v1892_v36, 0.0  ;;  %v7645_v15 = vpop.permute.xlu0 %428  ;;  %v6330_v37 = vld [vmem:[%s9199_s0 + $0x338] sm:$0xff]  }
 0x156   :  { %v3224_v62 = vmax.f32 %v1725_v32, 0.0  ;;  %v1898_v38 = vadd.f32 %v1897_v11, %v7615_v27  ;;  %5974 = vmatmul.mubr.msk.bf16.gmra.mrb[136].mxu0 %vm1189_vm0, %v6416_v24  ;;  %9312 = vst [vmem:[#allocation21_spill] sm:$0xff] %v7645_v15  ;;  %v3211_v40 = vmax.f32 %v1894_v60, 0.0  ;;  %v6417_v11 = vld [vmem:[%s9200_s1 + $0x38] sm:$0xff]   ;;  %v1542_v1 = vsel %vm1189_vm0, %v6330_v37, 0 }
 0x157   :  { %v3226_v10 = vmax.f32 %v1896_v25, 0.0  ;;  %v3225_v3 = vmax.f32 %v1727_v50, 0.0  ;;  %6018 = vmatmul.mubr.msk.bf16.gmra.mrb[136].mxu1 %vm1189_vm0, %v6416_v24  ;;  %6046 = vmatpush3.bf16.xpose.msra.mxu0 %v1539_v23  ;;  %v7658_v24 = vpop.permute.xlu1 %433 }
 0x158   :  { %v7647_v30 = vpack.c.bf16 %v3224_v62, %v3208_v31  ;;  %v3227_v32 = vmax.f32 %v1898_v38, 0.0  ;;  %6090 = vmatpush3.bf16.xpose.msra.mxu1 %v1587_v19  ;;  %5975 = vmatprep.mubr.msk.bf16.mxu0 %vm1189_vm0, %v6417_v11  ;;  %9315 = vst [vmem:[#allocation24_spill] sm:$0xff] %v7658_v24  ;;  %v6331_v62 = vld [vmem:[%s9199_s0 + $0x3b8] sm:$0xff]  }
 0x159   :  { %v7656_v36 = vpack.c.bf16 %v3226_v10, %v3210_v42  ;;  %v1730_v23 = vpop.f32.mrb[32].mxu0  ;;  %6019 = vmatprep.mubr.msk.bf16.mxu1 %vm1189_vm0, %v6417_v11  ;;  %6176 = vmatprep.subr.msk.bf16.mxu0 %vm1189_vm0, %v6328_v33  ;;  %v7665_v60 = vpack.c.bf16 %v3225_v3, %v3209_v56  ;;  %v7682_v37 = vpop.permute.xlu0 %438 }
 0x15a   :  { %9313 = vst [vmem:[#allocation22_spill] sm:$0xff] %v7647_v30  ;;  %v1901_v25 = vpop.f32.mrb[32].mxu1  ;;  %v1732_v50 = vpop.f32.mrb[33].mxu0  ;;  %v1731_v19 = vadd.f32 %v1730_v23, %v7645_v15  ;;  %6184 = vmatprep.subr.msk.bf16.mxu1 %vm1189_vm0, %v6329_v44  ;;  %v7669_v31 = vpack.c.bf16 %v3227_v32, %v3211_v40  ;;  %v1590_v32 = vsel %vm1189_vm0, %v6331_v62, 0  ;;  %9316 = vst [vmem:[#allocation25_spill] sm:$0xff] %v7682_v37 }
 0x15b   :  { %9314 = vst [vmem:[#allocation23_spill] sm:$0xff] %v7656_v36  ;;  %v1733_v38 = vadd.f32 %v1732_v50, %v7645_v15  ;;  %v1903_v42 = vpop.f32.mrb[33].mxu1  ;;  %v1734_v10 = vpop.f32.mrb[34].mxu0  ;;  %v1902_v33 = vadd.f32 %v1901_v25, %v7645_v15 }
 0x15c   :  { %v1904_v27 = vadd.f32 %v1903_v42, %v7645_v15  ;;  %v1735_v53 = vadd.f32 %v1734_v10, %v7658_v24  ;;  %v1905_v3 = vpop.f32.mrb[34].mxu1  ;;  %v1736_v56 = vpop.f32.mrb[35].mxu0  ;;  %v3240_v50 = vmax.f32 %v1731_v19, 0.0 }
 0x15d   :  { %v1906_v23 = vadd.f32 %v1905_v3, %v7658_v24  ;;  %v1737_v44 = vadd.f32 %v1736_v56, %v7658_v24  ;;  %v1907_v40 = vpop.f32.mrb[35].mxu1  ;;  %v3241_v25 = vmax.f32 %v1733_v38, 0.0  ;;  %v3242_v42 = vmax.f32 %v1902_v33, 0.0  ;;  %v7690_v19 = vpop.permute.xlu1 %443 }
 0x15e   :  { %v3256_v36 = vmax.f32 %v1735_v53, 0.0  ;;  %v1908_v30 = vadd.f32 %v1907_v40, %v7658_v24  ;;  %5976 = vmatmul.mubr.msk.bf16.gmra.mrb[140].mxu0 %vm1189_vm0, %v6417_v11  ;;  %v3243_v3 = vmax.f32 %v1904_v27, 0.0  ;;  %9317 = vst [vmem:[#allocation26_spill] sm:$0xff] %v7690_v19 }
 0x15f   :  { %v3258_v10 = vmax.f32 %v1906_v23, 0.0  ;;  %v3257_v15 = vmax.f32 %v1737_v44, 0.0  ;;  %6020 = vmatmul.mubr.msk.bf16.gmra.mrb[140].mxu1 %vm1189_vm0, %v6417_v11  ;;  %6048 = vmatpush3.bf16.xpose.msra.mxu0 %v1542_v1  ;;  %v7695_v1 = vld [vmem:[%s9200_s1 + $0x40] sm:$0xff]  }
 0x160   :  { %v7684_v56 = vpack.c.bf16 %v3256_v36, %v3240_v50  ;;  %v3259_v39 = vmax.f32 %v1908_v30, 0.0  ;;  %6092 = vmatpush3.bf16.xpose.msra.mxu1 %v1590_v32  ;;  %3810 = vmatprep.subr.bf16.mxu0 %v7359_v51  ;;  %9318 = vst [vmem:[#allocation27_spill] sm:$0xff] %v7695_v1 }
 0x161   :  { %v7687_v53 = vpack.c.bf16 %v3258_v10, %v3242_v42  ;;  %3891 = vmatprep.subr.bf16.mxu1 %v7362_v57  ;;  %v1740_v62 = vpop.f32.mrb[36].mxu0  ;;  %5977 = vmatprep.mubr.msk.bf16.mxu0 %vm1189_vm0, %v7695_v1  ;;  %v7699_v27 = vpack.c.bf16 %v3257_v15, %v3241_v25 }
 0x162   :  { %v1911_v30 = vpop.f32.mrb[36].mxu1  ;;  %v1742_v11 = vpop.f32.mrb[37].mxu0  ;;  %v1741_v51 = vadd.f32 %v1740_v62, %v7682_v37  ;;  %6021 = vmatprep.mubr.msk.bf16.mxu1 %vm1189_vm0, %v7695_v1  ;;  %v7704_v57 = vpack.c.bf16 %v3259_v39, %v3243_v3 }
 0x163   :  { %v1743_v36 = vadd.f32 %v1742_v11, %v7682_v37  ;;  %v1913_v38 = vpop.f32.mrb[37].mxu1  ;;  %v1744_v33 = vpop.f32.mrb[38].mxu0  ;;  %v1912_v23 = vadd.f32 %v1911_v30, %v7682_v37 }
 0x164   :  { %v1914_v44 = vadd.f32 %v1913_v38, %v7682_v37  ;;  %v1745_v15 = vadd.f32 %v1744_v33, %v7690_v19  ;;  %v1915_v40 = vpop.f32.mrb[38].mxu1  ;;  %v1746_v32 = vpop.f32.mrb[39].mxu0  ;;  %v3272_v10 = vmax.f32 %v1741_v51, 0.0 }
 0x165   :  { %v1916_v50 = vadd.f32 %v1915_v40, %v7690_v19  ;;  %v1747_v25 = vadd.f32 %v1746_v32, %v7690_v19  ;;  %v1917_v42 = vpop.f32.mrb[39].mxu1  ;;  %v3273_v62 = vmax.f32 %v1743_v36, 0.0  ;;  %v3274_v30 = vmax.f32 %v1912_v23, 0.0  ;;  %v7717_v33 = vpop.permute.xlu0 %448  ;;  %v7722_v40 = vld [vmem:[%s9200_s1 + $0x48] sm:$0xff]  }
 0x166   :  { %v3288_v39 = vmax.f32 %v1745_v15, 0.0  ;;  %v1918_v3 = vadd.f32 %v1917_v42, %v7690_v19  ;;  %5978 = vmatmul.mubr.msk.bf16.gmra.mrb[144].mxu0 %vm1189_vm0, %v7695_v1  ;;  %9319 = vst [vmem:[#allocation28_spill] sm:$0xff] %v7717_v33  ;;  %9320 = vst [vmem:[#allocation29_spill] sm:$0xff] %v7722_v40  ;;  %v3275_v51 = vmax.f32 %v1914_v44, 0.0 }
 0x167   :  { %v3290_v11 = vmax.f32 %v1916_v50, 0.0  ;;  %v3289_v38 = vmax.f32 %v1747_v25, 0.0  ;;  %6022 = vmatmul.mubr.msk.bf16.gmra.mrb[144].mxu1 %vm1189_vm0, %v7695_v1  ;;  %5979 = vmatprep.mubr.msk.bf16.mxu0 %vm1189_vm0, %v7722_v40  ;;  %v7732_v50 = vpop.permute.xlu1 %453 }
 0x168   :  { %v7726_v15 = vpack.c.bf16 %v3288_v39, %v3272_v10  ;;  %v3291_v36 = vmax.f32 %v1918_v3, 0.0  ;;  %6023 = vmatprep.mubr.msk.bf16.mxu1 %vm1189_vm0, %v7722_v40  ;;  %9323 = vst [vmem:[#allocation32_spill] sm:$0xff] %v7732_v50 }
 0x169   :  { %v7730_v23 = vpack.c.bf16 %v3290_v11, %v3274_v30  ;;  %v1750_v32 = vpop.f32.mrb[40].mxu0  ;;  %v7734_v25 = vpack.c.bf16 %v3289_v38, %v3273_v62 }
 0x16a   :  { %9321 = vst [vmem:[#allocation30_spill] sm:$0xff] %v7726_v15  ;;  %v1921_v42 = vpop.f32.mrb[40].mxu1  ;;  %v1752_v19 = vpop.f32.mrb[41].mxu0  ;;  %v1751_v37 = vadd.f32 %v1750_v32, %v7717_v33  ;;  %v7737_v1 = vpack.c.bf16 %v3291_v36, %v3275_v51 }
 0x16b   :  { %9322 = vst [vmem:[#allocation31_spill] sm:$0xff] %v7730_v23  ;;  %v1753_v44 = vadd.f32 %v1752_v19, %v7717_v33  ;;  %v1923_v10 = vpop.f32.mrb[41].mxu1  ;;  %v1754_v39 = vpop.f32.mrb[42].mxu0  ;;  %v1922_v3 = vadd.f32 %v1921_v42, %v7717_v33 }
 0x16c   :  { %9324 = vst [vmem:[#allocation33_spill] sm:$0xff] %v7737_v1  ;;  %v1924_v30 = vadd.f32 %v1923_v10, %v7717_v33  ;;  %v1755_v11 = vadd.f32 %v1754_v39, %v7732_v50  ;;  %v1925_v24 = vpop.f32.mrb[42].mxu1  ;;  %v1756_v23 = vpop.f32.mrb[43].mxu0  ;;  %v3304_v32 = vmax.f32 %v1751_v37, 0.0 }
 0x16d   :  { %v1926_v62 = vadd.f32 %v1925_v24, %v7732_v50  ;;  %v1757_v38 = vadd.f32 %v1756_v23, %v7732_v50  ;;  %v1927_v15 = vpop.f32.mrb[43].mxu1  ;;  %v3305_v19 = vmax.f32 %v1753_v44, 0.0  ;;  %v3306_v42 = vmax.f32 %v1922_v3, 0.0  ;;  %v7750_v39 = vpop.permute.xlu0 %458  ;;  %v7755_v24 = vld [vmem:[%s9200_s1 + $0x50] sm:$0xff]  }
 0x16e   :  { %v3320_v51 = vmax.f32 %v1755_v11, 0.0  ;;  %v1928_v36 = vadd.f32 %v1927_v15, %v7732_v50  ;;  %5980 = vmatmul.mubr.msk.bf16.gmra.mrb[148].mxu0 %vm1189_vm0, %v7722_v40  ;;  %9325 = vst [vmem:[#allocation34_spill] sm:$0xff] %v7750_v39  ;;  %9326 = vst [vmem:[#allocation35_spill] sm:$0xff] %v7755_v24  ;;  %v3307_v37 = vmax.f32 %v1924_v30, 0.0  ;;  %v7765_v11 = vpop.permute.xlu1 %463 }
 0x16f   :  { %v3322_v1 = vmax.f32 %v1926_v62, 0.0  ;;  %v3321_v10 = vmax.f32 %v1757_v38, 0.0  ;;  %6024 = vmatmul.mubr.msk.bf16.gmra.mrb[148].mxu1 %vm1189_vm0, %v7722_v40  ;;  %5981 = vmatprep.mubr.msk.bf16.mxu0 %vm1189_vm0, %v7755_v24  ;;  %9329 = vst [vmem:[#allocation38_spill] sm:$0xff] %v7765_v11 }
 0x170   :  { %v7759_v15 = vpack.c.bf16 %v3320_v51, %v3304_v32  ;;  %v3323_v23 = vmax.f32 %v1928_v36, 0.0  ;;  %6025 = vmatprep.mubr.msk.bf16.mxu1 %vm1189_vm0, %v7755_v24 }
 0x171   :  { %v7763_v44 = vpack.c.bf16 %v3322_v1, %v3306_v42  ;;  %v1760_v3 = vpop.f32.mrb[44].mxu0  ;;  %v7767_v62 = vpack.c.bf16 %v3321_v10, %v3305_v19 }
 0x172   :  { %9327 = vst [vmem:[#allocation36_spill] sm:$0xff] %v7759_v15  ;;  %v1931_v38 = vpop.f32.mrb[44].mxu1  ;;  %v1762_v50 = vpop.f32.mrb[45].mxu0  ;;  %v1761_v33 = vadd.f32 %v1760_v3, %v7750_v39  ;;  %v7770_v40 = vpack.c.bf16 %v3323_v23, %v3307_v37 }
 0x173   :  { %9328 = vst [vmem:[#allocation37_spill] sm:$0xff] %v7763_v44  ;;  %9330 = vst [vmem:[#allocation39_spill] sm:$0xff] %v7767_v62  ;;  %v1763_v30 = vadd.f32 %v1762_v50, %v7750_v39  ;;  %v1933_v32 = vpop.f32.mrb[45].mxu1  ;;  %v1764_v51 = vpop.f32.mrb[46].mxu0  ;;  %v1932_v36 = vadd.f32 %v1931_v38, %v7750_v39 }
 0x174   :  { %9331 = vst [vmem:[#allocation40_spill] sm:$0xff] %v7770_v40  ;;  %v1934_v1 = vadd.f32 %v1933_v32, %v7750_v39  ;;  %v1765_v42 = vadd.f32 %v1764_v51, %v7765_v11  ;;  %v1935_v44 = vpop.f32.mrb[46].mxu1  ;;  %v1766_v15 = vpop.f32.mrb[47].mxu0  ;;  %v3336_v3 = vmax.f32 %v1761_v33, 0.0 }
 0x175   :  { %v1936_v19 = vadd.f32 %v1935_v44, %v7765_v11  ;;  %v1767_v10 = vadd.f32 %v1766_v15, %v7765_v11  ;;  %v1937_v62 = vpop.f32.mrb[47].mxu1  ;;  %v3337_v50 = vmax.f32 %v1763_v30, 0.0  ;;  %v3338_v38 = vmax.f32 %v1932_v36, 0.0  ;;  %v7783_v51 = vpop.permute.xlu0 %468  ;;  %v7788_v15 = vld [vmem:[%s9200_s1 + $0x58] sm:$0xff]  }
 0x176   :  { %v3352_v37 = vmax.f32 %v1765_v42, 0.0  ;;  %v1938_v23 = vadd.f32 %v1937_v62, %v7765_v11  ;;  %5982 = vmatmul.mubr.msk.bf16.gmra.mrb[152].mxu0 %vm1189_vm0, %v7755_v24  ;;  %9332 = vst [vmem:[#allocation41_spill] sm:$0xff] %v7783_v51  ;;  %9333 = vst [vmem:[#allocation42_spill] sm:$0xff] %v7788_v15  ;;  %v3339_v33 = vmax.f32 %v1934_v1, 0.0  ;;  %v7798_v42 = vpop.permute.xlu1 %473 }
 0x177   :  { %v3354_v40 = vmax.f32 %v1936_v19, 0.0  ;;  %v3353_v32 = vmax.f32 %v1767_v10, 0.0  ;;  %6026 = vmatmul.mubr.msk.bf16.gmra.mrb[152].mxu1 %vm1189_vm0, %v7755_v24  ;;  %5983 = vmatprep.mubr.msk.bf16.mxu0 %vm1189_vm0, %v7788_v15  ;;  %9336 = vst [vmem:[#allocation45_spill] sm:$0xff] %v7798_v42 }
 0x178   :  { %v7792_v44 = vpack.c.bf16 %v3352_v37, %v3336_v3  ;;  %v3355_v62 = vmax.f32 %v1938_v23, 0.0  ;;  %6027 = vmatprep.mubr.msk.bf16.mxu1 %vm1189_vm0, %v7788_v15 }
 0x179   :  { %v7796_v30 = vpack.c.bf16 %v3354_v40, %v3338_v38  ;;  %v1770_v36 = vpop.f32.mrb[48].mxu0  ;;  %v7800_v19 = vpack.c.bf16 %v3353_v32, %v3337_v50 }
 0x17a   :  { %9334 = vst [vmem:[#allocation43_spill] sm:$0xff] %v7792_v44  ;;  %v1941_v10 = vpop.f32.mrb[48].mxu1  ;;  %v1772_v11 = vpop.f32.mrb[49].mxu0  ;;  %v1771_v39 = vadd.f32 %v1770_v36, %v7783_v51  ;;  %v7803_v24 = vpack.c.bf16 %v3355_v62, %v3339_v33 }
 0x17b   :  { %9335 = vst [vmem:[#allocation44_spill] sm:$0xff] %v7796_v30  ;;  %9337 = vst [vmem:[#allocation46_spill] sm:$0xff] %v7800_v19  ;;  %v1773_v1 = vadd.f32 %v1772_v11, %v7783_v51  ;;  %v1943_v3 = vpop.f32.mrb[49].mxu1  ;;  %v1774_v37 = vpop.f32.mrb[50].mxu0  ;;  %v1942_v23 = vadd.f32 %v1941_v10, %v7783_v51 }
 0x17c   :  { %9338 = vst [vmem:[#allocation47_spill] sm:$0xff] %v7803_v24  ;;  %v1944_v40 = vadd.f32 %v1943_v3, %v7783_v51  ;;  %v1775_v38 = vadd.f32 %v1774_v37, %v7798_v42  ;;  %v1945_v30 = vpop.f32.mrb[50].mxu1  ;;  %v1776_v44 = vpop.f32.mrb[51].mxu0  ;;  %v3368_v36 = vmax.f32 %v1771_v39, 0.0 }
 0x17d   :  { %v1946_v50 = vadd.f32 %v1945_v30, %v7798_v42  ;;  %v1777_v32 = vadd.f32 %v1776_v44, %v7798_v42  ;;  %v1947_v19 = vpop.f32.mrb[51].mxu1  ;;  %v3369_v11 = vmax.f32 %v1773_v1, 0.0  ;;  %v3370_v10 = vmax.f32 %v1942_v23, 0.0  ;;  %v7819_v30 = vld [vmem:[%s9200_s1 + $0x60] sm:$0xff]  }
 0x17e   :  { %v3384_v33 = vmax.f32 %v1775_v38, 0.0  ;;  %v1948_v62 = vadd.f32 %v1947_v19, %v7798_v42  ;;  %5984 = vmatmul.mubr.msk.bf16.gmra.mrb[156].mxu0 %vm1189_vm0, %v7788_v15  ;;  %9339 = vst [vmem:[#allocation48_spill] sm:$0xff] %v7819_v30  ;;  %v3371_v39 = vmax.f32 %v1944_v40, 0.0 }
 0x17f   :  { %v3386_v24 = vmax.f32 %v1946_v50, 0.0  ;;  %v3385_v3 = vmax.f32 %v1777_v32, 0.0  ;;  %6028 = vmatmul.mubr.msk.bf16.gmra.mrb[156].mxu1 %vm1189_vm0, %v7788_v15  ;;  %5985 = vmatprep.mubr.msk.bf16.mxu0 %vm1189_vm0, %v7819_v30 }
 0x180   :  { %v7823_v44 = vpack.c.bf16 %v3384_v33, %v3368_v36  ;;  %v3387_v19 = vmax.f32 %v1948_v62, 0.0  ;;  %6029 = vmatprep.mubr.msk.bf16.mxu1 %vm1189_vm0, %v7819_v30 }
 0x181   :  { %v7827_v1 = vpack.c.bf16 %v3386_v24, %v3370_v10  ;;  %v7829_v37 = vpop.f32.mrb[52].mxu0  ;;  %v7831_v23 = vpack.c.bf16 %v3385_v3, %v3369_v11  ;;  %v7848_v24 = vld [vmem:[%s9200_s1 + $0x68] ss:$0 sps:$4 sm:$0xff]  }
 0x182   :  { %9340 = vst [vmem:[#allocation49_spill] sm:$0xff] %v7823_v44  ;;  %v7833_v38 = vpop.f32.mrb[52].mxu1  ;;  %v7835_v50 = vpop.f32.mrb[53].mxu0  ;;  %v7837_v32 = vpack.c.bf16 %v3387_v19, %v3371_v39  ;;  %9346 = vst [vmem:[#allocation55_spill] sm:$0xff] %v7848_v24 }
 0x183   :  { %9341 = vst [vmem:[#allocation50_spill] sm:$0xff] %v7827_v1  ;;  %9342 = vst [vmem:[#allocation51_spill] sm:$0xff] %v7831_v23  ;;  %v7839_v42 = vpop.f32.mrb[53].mxu1  ;;  %v1784_v40 = vpop.f32.mrb[54].mxu0 }
 0x184   :  { %9343 = vst [vmem:[#allocation52_spill] sm:$0xff] %v7833_v38  ;;  %9344 = vst [vmem:[#allocation53_spill] sm:$0xff] %v7837_v32  ;;  %v1955_v36 = vpop.f32.mrb[54].mxu1  ;;  %v1785_v33 = vpop.f32.mrb[55].mxu0 }
 0x185   :  { %9345 = vst [vmem:[#allocation54_spill] sm:$0xff] %v7839_v42  ;;  %v1956_v62 = vpop.f32.mrb[55].mxu1 }
 0x186   :  { %5986 = vmatmul.mubr.msk.bf16.gmra.mrb[160].mxu0 %vm1189_vm0, %v7819_v30 }
 0x187   :  { %6030 = vmatmul.mubr.msk.bf16.gmra.mrb[160].mxu1 %vm1189_vm0, %v7819_v30  ;;  %5987 = vmatprep.mubr.msk.bf16.mxu0 %vm1189_vm0, %v7848_v24 }
 0x188   :  { %6031 = vmatprep.mubr.msk.bf16.mxu1 %vm1189_vm0, %v7848_v24 }
 0x189   :  { %v1992_v11 = vpop.f32.mrb[56].mxu0 }
 0x18a   :  { %v1993_v10 = vadd.f32 %v1992_v11, %v7316_v52  ;;  %v2163_v3 = vpop.f32.mrb[56].mxu1  ;;  %v1994_v39 = vpop.f32.mrb[57].mxu0 }
 0x18b   :  { %v2164_v19 = vadd.f32 %v2163_v3, %v7316_v52  ;;  %v1995_v40 = vadd.f32 %v1994_v39, %v7316_v52  ;;  %v2165_v36 = vpop.f32.mrb[57].mxu1  ;;  %v1996_v33 = vpop.f32.mrb[58].mxu0 }
 0x18c   :  { %v2166_v62 = vadd.f32 %v2165_v36, %v7316_v52  ;;  %v1997_v30 = vadd.f32 %v1996_v33, %v7324_v0  ;;  %v2167_v51 = vpop.f32.mrb[58].mxu1  ;;  %v1998_v15 = vpop.f32.mrb[59].mxu0  ;;  %v2988_v11 = vmax.f32 %v1993_v10, 0.0 }
 0x18d   :  { %v2168_v1 = vadd.f32 %v2167_v51, %v7324_v0  ;;  %v1999_v44 = vadd.f32 %v1998_v15, %v7324_v0  ;;  %v2169_v32 = vpop.f32.mrb[59].mxu1  ;;  %v2990_v3 = vmax.f32 %v2164_v19, 0.0  ;;  %v2989_v39 = vmax.f32 %v1995_v40, 0.0  ;;  %v6424_v51 = vld [vmem:[%s9200_s1] sm:$0xff]  }
 0x18e   :  { %v3004_v23 = vmax.f32 %v1997_v30, 0.0  ;;  %v2170_v42 = vadd.f32 %v2169_v32, %v7324_v0  ;;  %5988 = vmatmul.mubr.msk.bf16.gmra.mrb[164].mxu0 %vm1189_vm0, %v7848_v24  ;;  %v2991_v15 = vmax.f32 %v2166_v62, 0.0 }
 0x18f   :  { %v3006_v38 = vmax.f32 %v2168_v1, 0.0  ;;  %v3005_v36 = vmax.f32 %v1999_v44, 0.0  ;;  %6032 = vmatmul.mubr.msk.bf16.gmra.mrb[164].mxu1 %vm1189_vm0, %v7848_v24  ;;  %6049 = vmatprep.mubr.msk.bf16.mxu0 %vm1189_vm0, %v6424_v51 }
 0x190   :  { %v7870_v30 = vpack.c.bf16 %v3004_v23, %v2988_v11  ;;  %v3007_v32 = vmax.f32 %v2170_v42, 0.0  ;;  %6093 = vmatprep.mubr.msk.bf16.mxu1 %vm1189_vm0, %v6424_v51 }
 0x191   :  { %v7873_v10 = vpack.c.bf16 %v3006_v38, %v2990_v3  ;;  %v2002_v19 = vpop.f32.mrb[60].mxu0  ;;  %v7875_v1 = vpack.c.bf16 %v3005_v36, %v2989_v39 }
 0x192   :  { %9347 = vst [vmem:[#allocation56_spill] sm:$0xff] %v7870_v30  ;;  %v2003_v44 = vadd.f32 %v2002_v19, %v7328_v14  ;;  %v2173_v40 = vpop.f32.mrb[60].mxu1  ;;  %v2004_v33 = vpop.f32.mrb[61].mxu0  ;;  %v7878_v0 = vpack.c.bf16 %v3007_v32, %v2991_v15 }
 0x193   :  { %9348 = vst [vmem:[#allocation57_spill] sm:$0xff] %v7873_v10  ;;  %v2174_v52 = vadd.f32 %v2173_v40, %v7328_v14  ;;  %v2005_v62 = vadd.f32 %v2004_v33, %v7328_v14  ;;  %v2175_v23 = vpop.f32.mrb[61].mxu1  ;;  %v2006_v11 = vpop.f32.mrb[62].mxu0 }
 0x194   :  { %9349 = vst [vmem:[#allocation58_spill] sm:$0xff] %v7878_v0  ;;  %v2176_v42 = vadd.f32 %v2175_v23, %v7328_v14  ;;  %v2007_v38 = vadd.f32 %v2006_v11, %v7354_v17  ;;  %v2177_v3 = vpop.f32.mrb[62].mxu1  ;;  %v2008_v10 = vpop.f32.mrb[63].mxu0  ;;  %v3020_v30 = vmax.f32 %v2003_v44, 0.0  ;;  %v6425_v44 = vld [vmem:[%s9200_s1 + $0x8] sm:$0xff]  }
 0x195   :  { %v2178_v39 = vadd.f32 %v2177_v3, %v7354_v17  ;;  %v2009_v36 = vadd.f32 %v2008_v10, %v7354_v17  ;;  %v2179_v19 = vpop.f32.mrb[63].mxu1  ;;  %v3022_v40 = vmax.f32 %v2174_v52, 0.0  ;;  %v3021_v33 = vmax.f32 %v2005_v62, 0.0 }
 0x196   :  { %v3036_v15 = vmax.f32 %v2007_v38, 0.0  ;;  %v2180_v32 = vadd.f32 %v2179_v19, %v7354_v17  ;;  %6050 = vmatmul.mubr.msk.bf16.vlgmr.msra.gmra.mrb[168].mxu0 %vm1189_vm0, %v6424_v51  ;;  %v3023_v23 = vmax.f32 %v2176_v42, 0.0 }
 0x197   :  { %v3038_v24 = vmax.f32 %v2178_v39, 0.0  ;;  %v3037_v0 = vmax.f32 %v2009_v36, 0.0  ;;  %6094 = vmatmul.mubr.msk.bf16.vlgmr.msra.gmra.mrb[168].mxu1 %vm1189_vm0, %v6424_v51  ;;  %3811 = vmatpush1.bf16.msra.mxu0 %v7346_v46 }
 0x198   :  { %v7890_v11 = vpack.c.bf16 %v3036_v15, %v3020_v30  ;;  %v3039_v3 = vmax.f32 %v2180_v32, 0.0  ;;  %3892 = vmatpush1.bf16.msra.mxu1 %v7352_v49  ;;  %3812 = vmatprep.subr.bf16.mxu0 %v7401_v29 }
 0x199   :  { %v7894_v10 = vpack.c.bf16 %v3038_v24, %v3022_v40  ;;  %3893 = vmatprep.subr.bf16.mxu1 %v7405_v34  ;;  %v2012_v52 = vpop.f32.mrb[64].mxu0  ;;  %6051 = vmatprep.mubr.msk.bf16.mxu0 %vm1189_vm0, %v6425_v44  ;;  %v7901_v46 = vpack.c.bf16 %v3037_v0, %v3021_v33 }
 0x19a   :  { %v2013_v51 = vadd.f32 %v2012_v52, %v7381_v21  ;;  %v2183_v30 = vpop.f32.mrb[64].mxu1  ;;  %v2014_v62 = vpop.f32.mrb[65].mxu0  ;;  %6095 = vmatprep.mubr.msk.bf16.mxu1 %vm1189_vm0, %v6425_v44  ;;  %v7905_v49 = vpack.c.bf16 %v3039_v3, %v3023_v23 }
 0x19b   :  { %v2184_v29 = vadd.f32 %v2183_v30, %v7381_v21  ;;  %v2015_v34 = vadd.f32 %v2014_v62, %v7381_v21  ;;  %v2185_v24 = vpop.f32.mrb[65].mxu1  ;;  %3813 = vmatpush1.bf16.msra.mxu0 %v7383_v9  ;;  %v2016_v42 = vpop.f32.mrb[66].mxu0 }
 0x19c   :  { %v2186_v38 = vadd.f32 %v2185_v24, %v7381_v21  ;;  %3894 = vmatpush1.bf16.msra.mxu1 %v7392_v26  ;;  %v2017_v0 = vadd.f32 %v2016_v42, %v7394_v16  ;;  %v2187_v39 = vpop.f32.mrb[66].mxu1  ;;  %3814 = vmatprep.subr.bf16.mxu0 %v7444_v7  ;;  %v2018_v36 = vpop.f32.mrb[67].mxu0  ;;  %v3052_v40 = vmax.f32 %v2013_v51, 0.0 }
 0x19d   :  { %v2188_v19 = vadd.f32 %v2187_v39, %v7394_v16  ;;  %3895 = vmatprep.subr.bf16.mxu1 %v7448_v13  ;;  %v2019_v15 = vadd.f32 %v2018_v36, %v7394_v16  ;;  %v2189_v32 = vpop.f32.mrb[67].mxu1  ;;  %v3054_v26 = vmax.f32 %v2184_v29, 0.0  ;;  %v3053_v23 = vmax.f32 %v2015_v34, 0.0 }
 0x19e   :  { %v3068_v9 = vmax.f32 %v2017_v0, 0.0  ;;  %v2190_v33 = vadd.f32 %v2189_v32, %v7394_v16  ;;  %6052 = vmatmul.mubr.msk.bf16.gmra.mrb[172].mxu0 %vm1189_vm0, %v6425_v44  ;;  %v3055_v7 = vmax.f32 %v2186_v38, 0.0 }
 0x19f   :  { %v3070_v3 = vmax.f32 %v2188_v19, 0.0  ;;  %v3069_v52 = vmax.f32 %v2019_v15, 0.0  ;;  %6096 = vmatmul.mubr.msk.bf16.gmra.mrb[172].mxu1 %vm1189_vm0, %v6425_v44  ;;  %3815 = vmatpush1.bf16.msra.mxu0 %v7426_v63  ;;  %v6426_v44 = vld [vmem:[%s9200_s1 + $0x10] sm:$0xff]  }
 0x1a0   :  { %v7921_v30 = vpack.c.bf16 %v3068_v9, %v3052_v40  ;;  %v3071_v13 = vmax.f32 %v2190_v33, 0.0  ;;  %3896 = vmatpush1.bf16.msra.mxu1 %v7435_v4  ;;  %3816 = vmatprep.subr.bf16.mxu0 %v7487_v59 }
 0x1a1   :  { %v7925_v51 = vpack.c.bf16 %v3070_v3, %v3054_v26  ;;  %v7927_v62 = vpack.c.bf16 %v3069_v52, %v3053_v23  ;;  %3897 = vmatprep.subr.bf16.mxu1 %v7491_v2  ;;  %v2022_v29 = vpop.f32.mrb[68].mxu0  ;;  %6053 = vmatprep.mubr.msk.bf16.mxu0 %vm1189_vm0, %v6426_v44 }
 0x1a2   :  { %v7934_v63 = vpack.c.bf16 %v3071_v13, %v3055_v7  ;;  %v2023_v34 = vadd.f32 %v2022_v29, %v7424_v61  ;;  %v2193_v4 = vpop.f32.mrb[68].mxu1  ;;  %v2024_v24 = vpop.f32.mrb[69].mxu0  ;;  %6097 = vmatprep.mubr.msk.bf16.mxu1 %vm1189_vm0, %v6426_v44 }
 0x1a3   :  { %v2194_v59 = vadd.f32 %v2193_v4, %v7424_v61  ;;  %v2025_v42 = vadd.f32 %v2024_v24, %v7424_v61  ;;  %v2195_v2 = vpop.f32.mrb[69].mxu1  ;;  %3817 = vmatpush1.bf16.msra.mxu0 %v7469_v48  ;;  %v2026_v38 = vpop.f32.mrb[70].mxu0 }
 0x1a4   :  { %v2196_v0 = vadd.f32 %v2195_v2, %v7424_v61  ;;  %3898 = vmatpush1.bf16.msra.mxu1 %v7478_v54  ;;  %v2027_v39 = vadd.f32 %v2026_v38, %v7437_v6  ;;  %v2197_v36 = vpop.f32.mrb[70].mxu1  ;;  %3818 = vmatprep.subr.bf16.mxu0 %v7530_v55  ;;  %v2028_v19 = vpop.f32.mrb[71].mxu0  ;;  %v3084_v9 = vmax.f32 %v2023_v34, 0.0 }
 0x1a5   :  { %v2198_v15 = vadd.f32 %v2197_v36, %v7437_v6  ;;  %3899 = vmatprep.subr.bf16.mxu1 %v7534_v20  ;;  %v2029_v32 = vadd.f32 %v2028_v19, %v7437_v6  ;;  %v2199_v40 = vpop.f32.mrb[71].mxu1  ;;  %v3086_v54 = vmax.f32 %v2194_v59, 0.0  ;;  %v3085_v26 = vmax.f32 %v2025_v42, 0.0 }
 0x1a6   :  { %v3100_v48 = vmax.f32 %v2027_v39, 0.0  ;;  %v2200_v33 = vadd.f32 %v2199_v40, %v7437_v6  ;;  %6054 = vmatmul.mubr.msk.bf16.gmra.mrb[176].mxu0 %vm1189_vm0, %v6426_v44  ;;  %v3087_v55 = vmax.f32 %v2196_v0, 0.0 }
 0x1a7   :  { %v3102_v23 = vmax.f32 %v2198_v15, 0.0  ;;  %v3101_v3 = vmax.f32 %v2029_v32, 0.0  ;;  %6098 = vmatmul.mubr.msk.bf16.gmra.mrb[176].mxu1 %vm1189_vm0, %v6426_v44  ;;  %3819 = vmatpush1.bf16.msra.mxu0 %v7512_v41  ;;  %v6427_v44 = vld [vmem:[%s9200_s1 + $0x18] sm:$0xff]  }
 0x1a8   :  { %v7952_v52 = vpack.c.bf16 %v3100_v48, %v3084_v9  ;;  %v3103_v20 = vmax.f32 %v2200_v33, 0.0  ;;  %3900 = vmatpush1.bf16.msra.mxu1 %v7521_v47  ;;  %3820 = vmatprep.subr.bf16.mxu0 %v7577_v5 }
 0x1a9   :  { %v7956_v7 = vpack.c.bf16 %v3102_v23, %v3086_v54  ;;  %v7958_v13 = vpack.c.bf16 %v3101_v3, %v3085_v26  ;;  %3901 = vmatprep.subr.bf16.mxu1 %v7581_v12  ;;  %v2032_v29 = vpop.f32.mrb[72].mxu0  ;;  %6055 = vmatprep.mubr.msk.bf16.mxu0 %vm1189_vm0, %v6427_v44  ;;  %v6428_v3 = vld [vmem:[%s9200_s1 + $0x20] sm:$0xff]  }
 0x1aa   :  { %v7965_v41 = vpack.c.bf16 %v3103_v20, %v3087_v55  ;;  %v2033_v34 = vadd.f32 %v2032_v29, %v7467_v45  ;;  %v2203_v47 = vpop.f32.mrb[72].mxu1  ;;  %v2034_v4 = vpop.f32.mrb[73].mxu0  ;;  %6099 = vmatprep.mubr.msk.bf16.mxu1 %vm1189_vm0, %v6427_v44  ;;  %v9350_v55 = vld [vmem:[#allocation14_spill] sm:$0xff] }
 0x1ab   :  { %v2204_v5 = vadd.f32 %v2203_v47, %v7467_v45  ;;  %v2035_v24 = vadd.f32 %v2034_v4, %v7467_v45  ;;  %v2205_v12 = vpop.f32.mrb[73].mxu1  ;;  %3821 = vmatpush1.bf16.msra.mxu0 %v7555_v43  ;;  %v2036_v59 = vpop.f32.mrb[74].mxu0 }
 0x1ac   :  { %v2206_v42 = vadd.f32 %v2205_v12, %v7467_v45  ;;  %3902 = vmatpush1.bf16.msra.mxu1 %v7567_v8  ;;  %v2037_v2 = vadd.f32 %v2036_v59, %v7480_v58  ;;  %v2207_v38 = vpop.f32.mrb[74].mxu1  ;;  %3822 = vmatprep.subr.bf16.mxu0 %v7622_v28  ;;  %v2038_v0 = vpop.f32.mrb[75].mxu0  ;;  %v3116_v15 = vmax.f32 %v2033_v34, 0.0  ;;  %v9351_v34 = vld [vmem:[#allocation22_spill] sm:$0xff] }
 0x1ad   :  { %v2208_v39 = vadd.f32 %v2207_v38, %v7480_v58  ;;  %3903 = vmatprep.subr.bf16.mxu1 %v7626_v35  ;;  %v2039_v36 = vadd.f32 %v2038_v0, %v7480_v58  ;;  %v2209_v19 = vpop.f32.mrb[75].mxu1  ;;  %v3118_v8 = vmax.f32 %v2204_v5, 0.0  ;;  %v3117_v40 = vmax.f32 %v2035_v24, 0.0  ;;  %v9352_v5 = vld [vmem:[#allocation23_spill] sm:$0xff] }
 0x1ae   :  { %v3132_v43 = vmax.f32 %v2037_v2, 0.0  ;;  %v2210_v32 = vadd.f32 %v2209_v19, %v7480_v58  ;;  %6056 = vmatmul.mubr.msk.bf16.gmra.mrb[180].mxu0 %vm1189_vm0, %v6427_v44  ;;  %v3119_v28 = vmax.f32 %v2206_v42, 0.0  ;;  %v9353_v24 = vld [vmem:[#allocation15_spill] sm:$0xff] }
 0x1af   :  { %v3134_v9 = vmax.f32 %v2208_v39, 0.0  ;;  %v3133_v48 = vmax.f32 %v2039_v36, 0.0  ;;  %6100 = vmatmul.mubr.msk.bf16.gmra.mrb[180].mxu1 %vm1189_vm0, %v6427_v44  ;;  %3823 = vmatpush1.bf16.msra.mxu0 %v7604_v18 }
 0x1b0   :  { %v7983_v33 = vpack.c.bf16 %v3132_v43, %v3116_v15  ;;  %v3135_v35 = vmax.f32 %v2210_v32, 0.0  ;;  %3904 = vmatpush1.bf16.msra.mxu1 %v7613_v22  ;;  %3824 = vmatprep.subr.bf16.mxu0 %v7665_v60 }
 0x1b1   :  { %v7987_v54 = vpack.c.bf16 %v3134_v9, %v3118_v8  ;;  %v7989_v26 = vpack.c.bf16 %v3133_v48, %v3117_v40  ;;  %3905 = vmatprep.subr.bf16.mxu1 %v7669_v31  ;;  %v2042_v23 = vpop.f32.mrb[76].mxu0  ;;  %6057 = vmatprep.mubr.msk.bf16.mxu0 %vm1189_vm0, %v6428_v3  ;;  %v8018_v9 = vpop.permute.xlu0 %478 }
 0x1b2   :  { %v7996_v18 = vpack.c.bf16 %v3135_v35, %v3119_v28  ;;  %v2043_v20 = vadd.f32 %v2042_v23, %v9350_v55  ;;  %v2213_v22 = vpop.f32.mrb[76].mxu1  ;;  %v2044_v29 = vpop.f32.mrb[77].mxu0  ;;  %6101 = vmatprep.mubr.msk.bf16.mxu1 %vm1189_vm0, %v6428_v3  ;;  %9354 = vst [vmem:[#allocation22_spill] sm:$0xff] %v8018_v9  ;;  %v9355_v35 = vld [vmem:[#allocation33_spill] sm:$0xff] }
 0x1b3   :  { %v2214_v60 = vadd.f32 %v2213_v22, %v9350_v55  ;;  %v2045_v44 = vadd.f32 %v2044_v29, %v9350_v55  ;;  %v2215_v31 = vpop.f32.mrb[77].mxu1  ;;  %3825 = vmatpush1.bf16.msra.mxu0 %v9351_v34  ;;  %v2046_v47 = vpop.f32.mrb[78].mxu0  ;;  %v9358_v34 = vld [vmem:[#allocation30_spill] sm:$0xff] }
 0x1b4   :  { %v2216_v4 = vadd.f32 %v2215_v31, %v9350_v55  ;;  %3906 = vmatpush1.bf16.msra.mxu1 %v9352_v5  ;;  %v2047_v12 = vadd.f32 %v2046_v47, %v9353_v24  ;;  %v2217_v59 = vpop.f32.mrb[78].mxu1  ;;  %3826 = vmatprep.subr.bf16.mxu0 %v7699_v27  ;;  %v2048_v42 = vpop.f32.mrb[79].mxu0  ;;  %v3148_v39 = vmax.f32 %v2043_v20, 0.0  ;;  %v9357_v20 = vld [vmem:[#allocation16_spill] sm:$0xff]  ;;  %v9359_v5 = vld [vmem:[#allocation31_spill] sm:$0xff] }
 0x1b5   :  { %v2218_v2 = vadd.f32 %v2217_v59, %v9353_v24  ;;  %3907 = vmatprep.subr.bf16.mxu1 %v7704_v57  ;;  %v2049_v38 = vadd.f32 %v2048_v42, %v9353_v24  ;;  %v2219_v0 = vpop.f32.mrb[79].mxu1  ;;  %v3150_v15 = vmax.f32 %v2214_v60, 0.0  ;;  %v3149_v43 = vmax.f32 %v2045_v44, 0.0 }
 0x1b6   :  { %v3164_v36 = vmax.f32 %v2047_v12, 0.0  ;;  %v2220_v19 = vadd.f32 %v2219_v0, %v9353_v24  ;;  %6058 = vmatmul.mubr.msk.bf16.gmra.mrb[184].mxu0 %vm1189_vm0, %v6428_v3  ;;  %v3151_v27 = vmax.f32 %v2216_v4, 0.0  ;;  %v9360_v12 = vld [vmem:[#allocation18_spill] sm:$0xff]  ;;  %v1781_v0 = vadd.f32 %v7829_v37, %v8018_v9 }
 0x1b7   :  { %v3166_v32 = vmax.f32 %v2218_v2, 0.0  ;;  %v3165_v8 = vmax.f32 %v2049_v38, 0.0  ;;  %6102 = vmatmul.mubr.msk.bf16.gmra.mrb[184].mxu1 %vm1189_vm0, %v6428_v3  ;;  %3827 = vmatpush1.bf16.msra.mxu0 %v7684_v56  ;;  %v9356_v3 = vld [vmem:[#allocation17_spill] sm:$0xff]  ;;  %v9361_v2 = vld [vmem:[#allocation39_spill] sm:$0xff] }
 0x1b8   :  { %v8014_v40 = vpack.c.bf16 %v3164_v36, %v3148_v39  ;;  %v3167_v57 = vmax.f32 %v2220_v19, 0.0  ;;  %3908 = vmatpush1.bf16.msra.mxu1 %v7687_v53  ;;  %3828 = vmatprep.subr.bf16.mxu0 %v7734_v25  ;;  %v6429_v25 = vld [vmem:[%s9200_s1 + $0x28] sm:$0xff]   ;;  %v1783_v39 = vadd.f32 %v7835_v50, %v8018_v9 }
 0x1b9   :  { %v8020_v48 = vpack.c.bf16 %v3166_v32, %v3150_v15  ;;  %v8022_v28 = vpack.c.bf16 %v3165_v8, %v3149_v43  ;;  %3909 = vmatprep.subr.bf16.mxu1 %v9355_v35  ;;  %v2052_v23 = vpop.f32.mrb[80].mxu0  ;;  %6059 = vmatprep.mubr.msk.bf16.mxu0 %vm1189_vm0, %v9356_v3  ;;  %v9362_v19 = vld [vmem:[#allocation40_spill] sm:$0xff] }
 0x1ba   :  { %v8027_v56 = vpack.c.bf16 %v3167_v57, %v3151_v27  ;;  %v2053_v22 = vadd.f32 %v2052_v23, %v9357_v20  ;;  %v2223_v29 = vpop.f32.mrb[80].mxu1  ;;  %v2054_v53 = vpop.f32.mrb[81].mxu0  ;;  %6103 = vmatprep.mubr.msk.bf16.mxu1 %vm1189_vm0, %v6429_v25  ;;  %v9363_v32 = vld [vmem:[#allocation52_spill] sm:$0xff]  ;;  %v9364_v27 = vld [vmem:[#allocation54_spill] sm:$0xff] }
 0x1bb   :  { %v2224_v60 = vadd.f32 %v2223_v29, %v9357_v20  ;;  %v2055_v44 = vadd.f32 %v2054_v53, %v9357_v20  ;;  %v2225_v31 = vpop.f32.mrb[81].mxu1  ;;  %3829 = vmatpush1.bf16.msra.mxu0 %v9358_v34  ;;  %v2056_v47 = vpop.f32.mrb[82].mxu0  ;;  %v1952_v8 = vadd.f32 %v9363_v32, %v8018_v9  ;;  %v1954_v57 = vadd.f32 %v9364_v27, %v8018_v9 }
 0x1bc   :  { %v2226_v4 = vadd.f32 %v2225_v31, %v9357_v20  ;;  %3910 = vmatpush1.bf16.msra.mxu1 %v9359_v5  ;;  %v2057_v59 = vadd.f32 %v2056_v47, %v9360_v12  ;;  %v2227_v42 = vpop.f32.mrb[82].mxu1  ;;  %3830 = vmatprep.subr.bf16.mxu0 %v9361_v2  ;;  %v2058_v38 = vpop.f32.mrb[83].mxu0  ;;  %v3180_v35 = vmax.f32 %v2053_v22, 0.0  ;;  %v9365_v31 = vld [vmem:[#allocation36_spill] sm:$0xff]  ;;  %v9367_v22 = vld [vmem:[#allocation46_spill] sm:$0xff]  ;;  %v3401_v2 = vmax.f32 %v1783_v39, 0.0 }
 0x1bd   :  { %v2228_v36 = vadd.f32 %v2227_v42, %v9360_v12  ;;  %3911 = vmatprep.subr.bf16.mxu1 %v9362_v19  ;;  %v2059_v15 = vadd.f32 %v2058_v38, %v9360_v12  ;;  %v2229_v43 = vpop.f32.mrb[83].mxu1  ;;  %v3182_v50 = vmax.f32 %v2224_v60, 0.0  ;;  %v3181_v3 = vmax.f32 %v2055_v44, 0.0  ;;  %v9366_v42 = vld [vmem:[#allocation37_spill] sm:$0xff]  ;;  %v9368_v44 = vld [vmem:[#allocation47_spill] sm:$0xff] }
 0x1be   :  { %v3196_v23 = vmax.f32 %v2057_v59, 0.0  ;;  %v2230_v37 = vadd.f32 %v2229_v43, %v9360_v12  ;;  %6060 = vmatmul.mubr.msk.bf16.gmra.mrb[188].mxu0 %vm1189_vm0, %v6429_v25  ;;  %v3183_v34 = vmax.f32 %v2226_v4, 0.0  ;;  %v3400_v59 = vmax.f32 %v1781_v0, 0.0  ;;  %v9369_v43 = vld [vmem:[#allocation19_spill] sm:$0xff] }
 0x1bf   :  { %v3198_v29 = vmax.f32 %v2228_v36, 0.0  ;;  %v3197_v53 = vmax.f32 %v2059_v15, 0.0  ;;  %6104 = vmatmul.mubr.msk.bf16.gmra.mrb[188].mxu1 %vm1189_vm0, %v6429_v25  ;;  %3831 = vmatpush1.bf16.msra.mxu0 %v9365_v31  ;;  %v6430_v25 = vld [vmem:[%s9200_s1 + $0x30] sm:$0xff]   ;;  %v3402_v4 = vmax.f32 %v1952_v8, 0.0  ;;  %v3403_v19 = vmax.f32 %v1954_v57, 0.0  ;;  %v9371_v8 = vld [vmem:[#allocation44_spill] sm:$0xff] }
 0x1c0   :  { %v8056_v47 = vpack.c.bf16 %v3196_v23, %v3180_v35  ;;  %v3199_v5 = vmax.f32 %v2230_v37, 0.0  ;;  %3912 = vmatpush1.bf16.msra.mxu1 %v9366_v42  ;;  %3832 = vmatprep.subr.bf16.mxu0 %v9367_v22  ;;  %v9370_v37 = vld [vmem:[#allocation43_spill] sm:$0xff]  ;;  %v9372_v57 = vld [vmem:[#allocation20_spill] sm:$0xff]  ;;  %v3634_v42 = vpack.c.bf16 %v3401_v2, %v3401_v2  ;;  %v9375_v2 = vld [vmem:[#allocation49_spill] sm:$0xff] }
 0x1c1   :  { %v8060_v38 = vpack.c.bf16 %v3198_v29, %v3182_v50  ;;  %v8062_v60 = vpack.c.bf16 %v3197_v53, %v3181_v3  ;;  %3913 = vmatprep.subr.bf16.mxu1 %v9368_v44  ;;  %v2062_v36 = vpop.f32.mrb[84].mxu0  ;;  %6061 = vmatprep.mubr.msk.bf16.mxu0 %vm1189_vm0, %v6430_v25  ;;  %v9373_v31 = vld [vmem:[#allocation51_spill] sm:$0xff]  ;;  %v9374_v44 = vld [vmem:[#allocation53_spill] sm:$0xff] }
 0x1c2   :  { %v8069_v15 = vpack.c.bf16 %v3199_v5, %v3183_v34  ;;  %v2063_v0 = vadd.f32 %v2062_v36, %v9369_v43  ;;  %v2233_v39 = vpop.f32.mrb[84].mxu1  ;;  %v2064_v32 = vpop.f32.mrb[85].mxu0  ;;  %6105 = vmatprep.mubr.msk.bf16.mxu1 %vm1189_vm0, %v6430_v25  ;;  %v3633_v5 = vpack.c.bf16 %v3400_v59, %v3400_v59 }
 0x1c3   :  { %v2234_v27 = vadd.f32 %v2233_v39, %v9369_v43  ;;  %v2065_v35 = vadd.f32 %v2064_v32, %v9369_v43  ;;  %v2235_v23 = vpop.f32.mrb[85].mxu1  ;;  %3833 = vmatpush1.bf16.msra.mxu0 %v9370_v37  ;;  %v2066_v50 = vpop.f32.mrb[86].mxu0  ;;  %v3635_v32 = vpack.c.bf16 %v3402_v4, %v3402_v4  ;;  %v9376_v4 = vld [vmem:[#allocation50_spill] sm:$0xff] }
 0x1c4   :  { %v2236_v3 = vadd.f32 %v2235_v23, %v9369_v43  ;;  %3914 = vmatpush1.bf16.msra.mxu1 %v9371_v8  ;;  %v2067_v29 = vadd.f32 %v2066_v50, %v9372_v57  ;;  %v2237_v53 = vpop.f32.mrb[86].mxu1  ;;  %3834 = vmatprep.subr.bf16.mxu0 %v9373_v31  ;;  %v2068_v34 = vpop.f32.mrb[87].mxu0  ;;  %v3636_v23 = vpack.c.bf16 %v3403_v19, %v3403_v19  ;;  %v3212_v37 = vmax.f32 %v2063_v0, 0.0 }
 0x1c5   :  { %v2238_v22 = vadd.f32 %v2237_v53, %v9372_v57  ;;  %3915 = vmatprep.subr.bf16.mxu1 %v9374_v44  ;;  %v2069_v36 = vadd.f32 %v2068_v34, %v9372_v57  ;;  %v2239_v39 = vpop.f32.mrb[87].mxu1  ;;  %v3214_v31 = vmax.f32 %v2234_v27, 0.0  ;;  %v3213_v43 = vmax.f32 %v2065_v35, 0.0 }
 0x1c6   :  { %v3228_v8 = vmax.f32 %v2067_v29, 0.0  ;;  %v2240_v50 = vadd.f32 %v2239_v39, %v9372_v57  ;;  %6062 = vmatmul.mubr.msk.bf16.gmra.mrb[192].mxu0 %vm1189_vm0, %v6430_v25  ;;  %v3215_v53 = vmax.f32 %v2236_v3, 0.0  ;;  %v9377_v3 = vld [vmem:[#allocation21_spill] sm:$0xff] }
 0x1c7   :  { %v3230_v12 = vmax.f32 %v2238_v22, 0.0  ;;  %v3229_v59 = vmax.f32 %v2069_v36, 0.0  ;;  %6106 = vmatmul.mubr.msk.bf16.gmra.mrb[192].mxu1 %vm1189_vm0, %v6430_v25  ;;  %3835 = vmatpush1.bf16.msra.mxu0 %v9375_v2  ;;  %v6431_v25 = vld [vmem:[%s9200_s1 + $0x38] sm:$0xff]  }
 0x1c8   :  { %v8087_v44 = vpack.c.bf16 %v3228_v8, %v3212_v37  ;;  %v3231_v34 = vmax.f32 %v2240_v50, 0.0  ;;  %3916 = vmatpush1.bf16.msra.mxu1 %v9376_v4  ;;  %5705 = vmatprep.subr.msk.bf16.mxu0 %vm3761_vm1, %v3634_v42  ;;  %v9378_v50 = vld [vmem:[#allocation24_spill] sm:$0xff] }
 0x1c9   :  { %v8091_v19 = vpack.c.bf16 %v3230_v12, %v3214_v31  ;;  %v8093_v0 = vpack.c.bf16 %v3229_v59, %v3213_v43  ;;  %5711 = vmatprep.subr.msk.bf16.mxu1 %vm3761_vm1, %v3636_v23  ;;  %v2072_v27 = vpop.f32.mrb[88].mxu0  ;;  %6063 = vmatprep.mubr.msk.bf16.mxu0 %vm1189_vm0, %v6431_v25  ;;  %v3763_v12 = vsel %vm3761_vm1, %v3633_v5, 0  ;;  %v3769_v23 = vsel %vm3761_vm1, %v3635_v32, 0 }
 0x1ca   :  { %v8100_v35 = vpack.c.bf16 %v3231_v34, %v3215_v53  ;;  %v2073_v29 = vadd.f32 %v2072_v27, %v9377_v3  ;;  %v2243_v22 = vpop.f32.mrb[88].mxu1  ;;  %v2074_v36 = vpop.f32.mrb[89].mxu0  ;;  %6107 = vmatprep.mubr.msk.bf16.mxu1 %vm1189_vm0, %v6431_v25  ;;  %v9379_v53 = vld [vmem:[#allocation58_spill] sm:$0xff] }
 0x1cb   :  { %v2244_v43 = vadd.f32 %v2243_v22, %v9377_v3  ;;  %v2075_v42 = vadd.f32 %v2074_v36, %v9377_v3  ;;  %v2245_v39 = vpop.f32.mrb[89].mxu1  ;;  %3837 = vmatpush1.bf16.msra.mxu0 %v3763_v12  ;;  %v2076_v37 = vpop.f32.mrb[90].mxu0 }
 0x1cc   :  { %v2246_v8 = vadd.f32 %v2245_v39, %v9377_v3  ;;  %3918 = vmatpush1.bf16.msra.mxu1 %v3769_v23  ;;  %v2077_v31 = vadd.f32 %v2076_v37, %v9378_v50  ;;  %v2247_v59 = vpop.f32.mrb[90].mxu1  ;;  %3972 = vmatprep.subr.bf16.mxu0 %v7875_v1  ;;  %v2078_v5 = vpop.f32.mrb[91].mxu0  ;;  %v3244_v27 = vmax.f32 %v2073_v29, 0.0  ;;  %v9380_v1 = vld [vmem:[#allocation27_spill] sm:$0xff] }
 0x1cd   :  { %v2248_v2 = vadd.f32 %v2247_v59, %v9378_v50  ;;  %4053 = vmatprep.subr.bf16.mxu1 %v9379_v53  ;;  %v2079_v34 = vadd.f32 %v2078_v5, %v9378_v50  ;;  %v2249_v4 = vpop.f32.mrb[91].mxu1  ;;  %v3246_v36 = vmax.f32 %v2244_v43, 0.0  ;;  %v3245_v12 = vmax.f32 %v2075_v42, 0.0 }
 0x1ce   :  { %v3260_v22 = vmax.f32 %v2077_v31, 0.0  ;;  %v2250_v32 = vadd.f32 %v2249_v4, %v9378_v50  ;;  %6064 = vmatmul.mubr.msk.bf16.gmra.mrb[196].mxu0 %vm1189_vm0, %v6431_v25  ;;  %v3247_v37 = vmax.f32 %v2246_v8, 0.0 }
 0x1cf   :  { %v3262_v39 = vmax.f32 %v2248_v2, 0.0  ;;  %v3261_v23 = vmax.f32 %v2079_v34, 0.0  ;;  %6108 = vmatmul.mubr.msk.bf16.gmra.mrb[196].mxu1 %vm1189_vm0, %v6431_v25  ;;  %6065 = vmatprep.mubr.msk.bf16.mxu0 %vm1189_vm0, %v9380_v1  ;;  %v9381_v2 = vld [vmem:[#allocation25_spill] sm:$0xff] }
 0x1d0   :  { %v8119_v59 = vpack.c.bf16 %v3260_v22, %v3244_v27  ;;  %v3263_v5 = vmax.f32 %v2250_v32, 0.0  ;;  %6109 = vmatprep.mubr.msk.bf16.mxu1 %vm1189_vm0, %v9380_v1  ;;  %v9382_v1 = vld [vmem:[#allocation26_spill] sm:$0xff] }
 0x1d1   :  { %v8123_v29 = vpack.c.bf16 %v3262_v39, %v3246_v36  ;;  %v8125_v31 = vpack.c.bf16 %v3261_v23, %v3245_v12  ;;  %v2082_v43 = vpop.f32.mrb[92].mxu0 }
 0x1d2   :  { %v8127_v42 = vpack.c.bf16 %v3263_v5, %v3247_v37  ;;  %v2083_v53 = vadd.f32 %v2082_v43, %v9381_v2  ;;  %v2253_v25 = vpop.f32.mrb[92].mxu1  ;;  %v2084_v34 = vpop.f32.mrb[93].mxu0 }
 0x1d3   :  { %v2254_v4 = vadd.f32 %v2253_v25, %v9381_v2  ;;  %v2085_v8 = vadd.f32 %v2084_v34, %v9381_v2  ;;  %v2255_v27 = vpop.f32.mrb[93].mxu1  ;;  %v2086_v22 = vpop.f32.mrb[94].mxu0  ;;  %v6432_v25 = vld [vmem:[%s9200_s1 + $0x40] sm:$0xff]  }
 0x1d4   :  { %v2256_v32 = vadd.f32 %v2255_v27, %v9381_v2  ;;  %v2087_v36 = vadd.f32 %v2086_v22, %v9382_v1  ;;  %v2257_v39 = vpop.f32.mrb[94].mxu1  ;;  %v2088_v12 = vpop.f32.mrb[95].mxu0  ;;  %v3276_v43 = vmax.f32 %v2083_v53, 0.0 }
 0x1d5   :  { %v2258_v23 = vadd.f32 %v2257_v39, %v9382_v1  ;;  %v2089_v37 = vadd.f32 %v2088_v12, %v9382_v1  ;;  %v2259_v5 = vpop.f32.mrb[95].mxu1  ;;  %v3278_v34 = vmax.f32 %v2254_v4, 0.0  ;;  %v3277_v27 = vmax.f32 %v2085_v8, 0.0  ;;  %v9383_v39 = vld [vmem:[#allocation29_spill] sm:$0xff] }
 0x1d6   :  { %v3292_v50 = vmax.f32 %v2087_v36, 0.0  ;;  %v2260_v3 = vadd.f32 %v2259_v5, %v9382_v1  ;;  %6066 = vmatmul.mubr.msk.bf16.gmra.mrb[200].mxu0 %vm1189_vm0, %v6432_v25  ;;  %v3279_v12 = vmax.f32 %v2256_v32, 0.0 }
 0x1d7   :  { %v3294_v22 = vmax.f32 %v2258_v23, 0.0  ;;  %v3293_v2 = vmax.f32 %v2089_v37, 0.0  ;;  %6110 = vmatmul.mubr.msk.bf16.gmra.mrb[200].mxu1 %vm1189_vm0, %v6432_v25  ;;  %6067 = vmatprep.mubr.msk.bf16.mxu0 %vm1189_vm0, %v9383_v39  ;;  %v9387_v23 = vld [vmem:[#allocation28_spill] sm:$0xff] }
 0x1d8   :  { %v8144_v53 = vpack.c.bf16 %v3292_v50, %v3276_v43  ;;  %v3295_v36 = vmax.f32 %v2260_v3, 0.0  ;;  %6111 = vmatprep.mubr.msk.bf16.mxu1 %vm1189_vm0, %v9383_v39  ;;  %v9388_v39 = vld [vmem:[#allocation32_spill] sm:$0xff] }
 0x1d9   :  { %v8148_v5 = vpack.c.bf16 %v3294_v22, %v3278_v34  ;;  %v8150_v1 = vpack.c.bf16 %v3293_v2, %v3277_v27  ;;  %v2092_v4 = vpop.f32.mrb[96].mxu0 }
 0x1da   :  { %9384 = vst [vmem:[#allocation23_spill] sm:$0xff] %v8144_v53  ;;  %v8152_v8 = vpack.c.bf16 %v3295_v36, %v3279_v12  ;;  %v2093_v37 = vadd.f32 %v2092_v4, %v9387_v23  ;;  %v2263_v25 = vpop.f32.mrb[96].mxu1  ;;  %v2094_v57 = vpop.f32.mrb[97].mxu0 }
 0x1db   :  { %9385 = vst [vmem:[#allocation33_spill] sm:$0xff] %v8148_v5  ;;  %v2264_v9 = vadd.f32 %v2263_v25, %v9387_v23  ;;  %v2095_v50 = vadd.f32 %v2094_v57, %v9387_v23  ;;  %v2265_v32 = vpop.f32.mrb[97].mxu1  ;;  %v2096_v3 = vpop.f32.mrb[98].mxu0  ;;  %v6433_v57 = vld [vmem:[%s9200_s1 + $0x48] sm:$0xff]  }
 0x1dc   :  { %9386 = vst [vmem:[#allocation17_spill] sm:$0xff] %v8152_v8  ;;  %v2266_v43 = vadd.f32 %v2265_v32, %v9387_v23  ;;  %v2097_v34 = vadd.f32 %v2096_v3, %v9388_v39  ;;  %v2267_v22 = vpop.f32.mrb[98].mxu1  ;;  %v2098_v2 = vpop.f32.mrb[99].mxu0  ;;  %v3308_v4 = vmax.f32 %v2093_v37, 0.0 }
 0x1dd   :  { %v2268_v27 = vadd.f32 %v2267_v22, %v9388_v39  ;;  %v2099_v12 = vadd.f32 %v2098_v2, %v9388_v39  ;;  %v2269_v36 = vpop.f32.mrb[99].mxu1  ;;  %v3310_v25 = vmax.f32 %v2264_v9, 0.0  ;;  %v3309_v32 = vmax.f32 %v2095_v50, 0.0  ;;  %v9389_v22 = vld [vmem:[#allocation35_spill] sm:$0xff] }
 0x1de   :  { %v3324_v5 = vmax.f32 %v2097_v34, 0.0  ;;  %v2270_v53 = vadd.f32 %v2269_v36, %v9388_v39  ;;  %6068 = vmatmul.mubr.msk.bf16.gmra.mrb[204].mxu0 %vm1189_vm0, %v6433_v57  ;;  %v3311_v2 = vmax.f32 %v2266_v43, 0.0 }
 0x1df   :  { %v3326_v3 = vmax.f32 %v2268_v27, 0.0  ;;  %v3325_v23 = vmax.f32 %v2099_v12, 0.0  ;;  %6112 = vmatmul.mubr.msk.bf16.gmra.mrb[204].mxu1 %vm1189_vm0, %v6433_v57  ;;  %6069 = vmatprep.mubr.msk.bf16.mxu0 %vm1189_vm0, %v9389_v22  ;;  %v9394_v27 = vld [vmem:[#allocation34_spill] sm:$0xff] }
 0x1e0   :  { %v8169_v37 = vpack.c.bf16 %v3324_v5, %v3308_v4  ;;  %v3327_v34 = vmax.f32 %v2270_v53, 0.0  ;;  %6113 = vmatprep.mubr.msk.bf16.mxu1 %vm1189_vm0, %v9389_v22  ;;  %v9395_v22 = vld [vmem:[#allocation38_spill] sm:$0xff] }
 0x1e1   :  { %v8173_v36 = vpack.c.bf16 %v3326_v3, %v3310_v25  ;;  %v8175_v39 = vpack.c.bf16 %v3325_v23, %v3309_v32  ;;  %v2102_v9 = vpop.f32.mrb[100].mxu0 }
 0x1e2   :  { %9390 = vst [vmem:[#allocation30_spill] sm:$0xff] %v8169_v37  ;;  %v8177_v50 = vpack.c.bf16 %v3327_v34, %v3311_v2  ;;  %v2103_v12 = vadd.f32 %v2102_v9, %v9394_v27  ;;  %v2273_v57 = vpop.f32.mrb[100].mxu1  ;;  %v2104_v20 = vpop.f32.mrb[101].mxu0 }
 0x1e3   :  { %9391 = vst [vmem:[#allocation31_spill] sm:$0xff] %v8173_v36  ;;  %9392 = vst [vmem:[#allocation39_spill] sm:$0xff] %v8175_v39  ;;  %v2274_v8 = vadd.f32 %v2273_v57, %v9394_v27  ;;  %v2105_v5 = vadd.f32 %v2104_v20, %v9394_v27  ;;  %v2275_v43 = vpop.f32.mrb[101].mxu1  ;;  %v2106_v53 = vpop.f32.mrb[102].mxu0  ;;  %v6434_v20 = vld [vmem:[%s9200_s1 + $0x50] sm:$0xff]  }
 0x1e4   :  { %9393 = vst [vmem:[#allocation40_spill] sm:$0xff] %v8177_v50  ;;  %v2276_v4 = vadd.f32 %v2275_v43, %v9394_v27  ;;  %v2107_v25 = vadd.f32 %v2106_v53, %v9395_v22  ;;  %v2277_v3 = vpop.f32.mrb[102].mxu1  ;;  %v2108_v23 = vpop.f32.mrb[103].mxu0  ;;  %v3340_v9 = vmax.f32 %v2103_v12, 0.0 }
 0x1e5   :  { %v2278_v32 = vadd.f32 %v2277_v3, %v9395_v22  ;;  %v2109_v2 = vadd.f32 %v2108_v23, %v9395_v22  ;;  %v2279_v34 = vpop.f32.mrb[103].mxu1  ;;  %v3342_v57 = vmax.f32 %v2274_v8, 0.0  ;;  %v3341_v43 = vmax.f32 %v2105_v5, 0.0  ;;  %v9396_v3 = vld [vmem:[#allocation42_spill] sm:$0xff] }
 0x1e6   :  { %v3356_v36 = vmax.f32 %v2107_v25, 0.0  ;;  %v2280_v37 = vadd.f32 %v2279_v34, %v9395_v22  ;;  %6070 = vmatmul.mubr.msk.bf16.gmra.mrb[208].mxu0 %vm1189_vm0, %v6434_v20  ;;  %v3343_v23 = vmax.f32 %v2276_v4, 0.0 }
 0x1e7   :  { %v3358_v53 = vmax.f32 %v2278_v32, 0.0  ;;  %v3357_v27 = vmax.f32 %v2109_v2, 0.0  ;;  %6114 = vmatmul.mubr.msk.bf16.gmra.mrb[208].mxu1 %vm1189_vm0, %v6434_v20  ;;  %6071 = vmatprep.mubr.msk.bf16.mxu0 %vm1189_vm0, %v9396_v3  ;;  %v9401_v32 = vld [vmem:[#allocation41_spill] sm:$0xff] }
 0x1e8   :  { %v8194_v12 = vpack.c.bf16 %v3356_v36, %v3340_v9  ;;  %v3359_v25 = vmax.f32 %v2280_v37, 0.0  ;;  %6115 = vmatprep.mubr.msk.bf16.mxu1 %vm1189_vm0, %v9396_v3  ;;  %v9402_v3 = vld [vmem:[#allocation45_spill] sm:$0xff] }
 0x1e9   :  { %v8198_v34 = vpack.c.bf16 %v3358_v53, %v3342_v57  ;;  %v8200_v22 = vpack.c.bf16 %v3357_v27, %v3341_v43  ;;  %v2112_v8 = vpop.f32.mrb[104].mxu0 }
 0x1ea   :  { %9397 = vst [vmem:[#allocation52_spill] sm:$0xff] %v8194_v12  ;;  %v8202_v5 = vpack.c.bf16 %v3359_v25, %v3343_v23  ;;  %v2113_v2 = vadd.f32 %v2112_v8, %v9401_v32  ;;  %v2283_v20 = vpop.f32.mrb[104].mxu1  ;;  %v2114_v50 = vpop.f32.mrb[105].mxu0 }
 0x1eb   :  { %9398 = vst [vmem:[#allocation54_spill] sm:$0xff] %v8198_v34  ;;  %9399 = vst [vmem:[#allocation36_spill] sm:$0xff] %v8200_v22  ;;  %v2284_v39 = vadd.f32 %v2283_v20, %v9401_v32  ;;  %v2115_v36 = vadd.f32 %v2114_v50, %v9401_v32  ;;  %v2285_v4 = vpop.f32.mrb[105].mxu1  ;;  %v2116_v37 = vpop.f32.mrb[106].mxu0  ;;  %v6435_v50 = vld [vmem:[%s9200_s1 + $0x58] sm:$0xff]  }
 0x1ec   :  { %9400 = vst [vmem:[#allocation37_spill] sm:$0xff] %v8202_v5  ;;  %v2286_v9 = vadd.f32 %v2285_v4, %v9401_v32  ;;  %v2117_v57 = vadd.f32 %v2116_v37, %v9402_v3  ;;  %v2287_v53 = vpop.f32.mrb[106].mxu1  ;;  %v2118_v27 = vpop.f32.mrb[107].mxu0  ;;  %v3372_v8 = vmax.f32 %v2113_v2, 0.0 }
 0x1ed   :  { %v2288_v43 = vadd.f32 %v2287_v53, %v9402_v3  ;;  %v2119_v23 = vadd.f32 %v2118_v27, %v9402_v3  ;;  %v2289_v25 = vpop.f32.mrb[107].mxu1  ;;  %v3374_v20 = vmax.f32 %v2284_v39, 0.0  ;;  %v3373_v4 = vmax.f32 %v2115_v36, 0.0  ;;  %v9403_v53 = vld [vmem:[#allocation48_spill] sm:$0xff] }
 0x1ee   :  { %v3388_v34 = vmax.f32 %v2117_v57, 0.0  ;;  %v2290_v12 = vadd.f32 %v2289_v25, %v9402_v3  ;;  %6072 = vmatmul.mubr.msk.bf16.gmra.mrb[212].mxu0 %vm1189_vm0, %v6435_v50  ;;  %v3375_v27 = vmax.f32 %v2286_v9, 0.0 }
 0x1ef   :  { %v3390_v37 = vmax.f32 %v2288_v43, 0.0  ;;  %v3389_v32 = vmax.f32 %v2119_v23, 0.0  ;;  %6116 = vmatmul.mubr.msk.bf16.gmra.mrb[212].mxu1 %vm1189_vm0, %v6435_v50  ;;  %6073 = vmatprep.mubr.msk.bf16.mxu0 %vm1189_vm0, %v9403_v53 }
 0x1f0   :  { %v8219_v2 = vpack.c.bf16 %v3388_v34, %v3372_v8  ;;  %v3391_v57 = vmax.f32 %v2290_v12, 0.0  ;;  %6117 = vmatprep.mubr.msk.bf16.mxu1 %vm1189_vm0, %v9403_v53 }
 0x1f1   :  { %v8223_v25 = vpack.c.bf16 %v3390_v37, %v3374_v20  ;;  %v8225_v3 = vpack.c.bf16 %v3389_v32, %v3373_v4  ;;  %v8227_v39 = vpop.f32.mrb[108].mxu0  ;;  %v6436_v20 = vld [vmem:[%s9200_s1 + $0x60] sm:$0xff]   ;;  %v9413_v37 = vld [vmem:[#allocation6_spill] sm:$0xff] }
 0x1f2   :  { %9404 = vst [vmem:[#allocation46_spill] sm:$0xff] %v8219_v2  ;;  %9407 = vst [vmem:[#allocation44_spill] sm:$0xff] %v8227_v39  ;;  %v8229_v36 = vpack.c.bf16 %v3391_v57, %v3375_v27  ;;  %v8231_v43 = vpop.f32.mrb[108].mxu1  ;;  %v8233_v23 = vpop.f32.mrb[109].mxu0  ;;  %v9412_v32 = vld [vmem:[#allocation55_spill] sm:$0xff] }
 0x1f3   :  { %9405 = vst [vmem:[#allocation47_spill] sm:$0xff] %v8223_v25  ;;  %9406 = vst [vmem:[#allocation43_spill] sm:$0xff] %v8225_v3  ;;  %v8235_v50 = vpop.f32.mrb[109].mxu1  ;;  %v2126_v34 = vpop.f32.mrb[110].mxu0  ;;  %v9415_v2 = vld [vmem:[#allocation7_spill] sm:$0xff] }
 0x1f4   :  { %9408 = vst [vmem:[#allocation51_spill] sm:$0xff] %v8229_v36  ;;  %9409 = vst [vmem:[#allocation53_spill] sm:$0xff] %v8231_v43  ;;  %v2297_v9 = vpop.f32.mrb[110].mxu1  ;;  %v2127_v12 = vpop.f32.mrb[111].mxu0 }
 0x1f5   :  { %9410 = vst [vmem:[#allocation49_spill] sm:$0xff] %v8233_v23  ;;  %9411 = vst [vmem:[#allocation50_spill] sm:$0xff] %v8235_v50  ;;  %v2298_v8 = vpop.f32.mrb[111].mxu1  ;;  %v6437_v23 = vld [vmem:[%s9200_s1 + $0x68] ss:$0 sps:$4 sm:$0xff]  }
 0x1f6   :  { %6074 = vmatmul.mubr.msk.bf16.gmra.mrb[216].mxu0 %vm1189_vm0, %v6436_v20 }
 0x1f7   :  { %6118 = vmatmul.mubr.msk.bf16.gmra.mrb[216].mxu1 %vm1189_vm0, %v6436_v20  ;;  %6075 = vmatprep.mubr.msk.bf16.mxu0 %vm1189_vm0, %v9412_v32  ;;  %v8252_v20 = vld [vmem:[%s9202_s3 + $0x4] ss:$8 sps:$4 sm:$0xff]  }
 0x1f8   :  { %6119 = vmatprep.mubr.msk.bf16.mxu1 %vm1189_vm0, %v9412_v32  ;;  %9414 = vst [vmem:[#allocation58_spill] sm:$0xff] %v8252_v20 }
 0x1f9   :  { %v2334_v4 = vpop.f32.mrb[112].mxu0 }
 0x1fa   :  { %v2335_v53 = vadd.f32 %v2334_v4, %v9413_v37  ;;  %v2505_v27 = vpop.f32.mrb[112].mxu1  ;;  %v2336_v57 = vpop.f32.mrb[113].mxu0 }
 0x1fb   :  { %v2506_v34 = vadd.f32 %v2505_v27, %v9413_v37  ;;  %v2337_v9 = vadd.f32 %v2336_v57, %v9413_v37  ;;  %v2507_v12 = vpop.f32.mrb[113].mxu1  ;;  %v2338_v8 = vpop.f32.mrb[114].mxu0 }
 0x1fc   :  { %v2508_v25 = vadd.f32 %v2507_v12, %v9413_v37  ;;  %v2339_v32 = vadd.f32 %v2338_v8, %v9415_v2  ;;  %v2509_v36 = vpop.f32.mrb[114].mxu1  ;;  %v2340_v3 = vpop.f32.mrb[115].mxu0  ;;  %v2992_v57 = vmax.f32 %v2335_v53, 0.0 }
 0x1fd   :  { %v2510_v4 = vadd.f32 %v2509_v36, %v9415_v2  ;;  %v2341_v27 = vadd.f32 %v2340_v3, %v9415_v2  ;;  %v2511_v5 = vpop.f32.mrb[115].mxu1  ;;  %v2994_v12 = vmax.f32 %v2506_v34, 0.0  ;;  %v2993_v8 = vmax.f32 %v2337_v9, 0.0 }
 0x1fe   :  { %v3008_v22 = vmax.f32 %v2339_v32, 0.0  ;;  %v2512_v50 = vadd.f32 %v2511_v5, %v9415_v2  ;;  %6076 = vmatmul.mubr.msk.bf16.gmra.mrb[220].mxu0 %vm1189_vm0, %v6437_v23  ;;  %v2995_v3 = vmax.f32 %v2508_v25, 0.0 }
 0x1ff   :  { %v3010_v37 = vmax.f32 %v2510_v4, 0.0  ;;  %v3009_v43 = vmax.f32 %v2341_v27, 0.0  ;;  %6120 = vmatmul.mubr.msk.bf16.gmra.mrb[220].mxu1 %vm1189_vm0, %v6437_v23  ;;  %5706 = vmatprep.mubr.msk.bf16.mxu0 %vm3745_vm2, %v8252_v20 }
 0x200   :  { %v8266_v36 = vpack.c.bf16 %v3008_v22, %v2992_v57  ;;  %v3011_v53 = vmax.f32 %v2512_v50, 0.0  ;;  %5712 = vmatprep.mubr.msk.bf16.mxu1 %vm3745_vm2, %v8252_v20  ;;  %v8280_v22 = vld [vmem:[%s9202_s3] ss:$8 sps:$4 sm:$0xff]  }
 0x201   :  { %v8270_v5 = vpack.c.bf16 %v3010_v37, %v2994_v12  ;;  %v8272_v32 = vpack.c.bf16 %v3009_v43, %v2993_v8  ;;  %v2344_v34 = vpop.f32.mrb[116].mxu0  ;;  %v9421_v20 = vld [vmem:[#allocation57_spill] sm:$0xff] }
 0x202   :  { %9416 = vst [vmem:[#allocation27_spill] sm:$0xff] %v8266_v36  ;;  %v8274_v9 = vpack.c.bf16 %v3011_v53, %v2995_v3  ;;  %v2345_v4 = vadd.f32 %v2344_v34, %v7328_v14  ;;  %v2515_v23 = vpop.f32.mrb[116].mxu1  ;;  %v2346_v27 = vpop.f32.mrb[117].mxu0 }
 0x203   :  { %9417 = vst [vmem:[#allocation29_spill] sm:$0xff] %v8270_v5  ;;  %9418 = vst [vmem:[#allocation35_spill] sm:$0xff] %v8272_v32  ;;  %v2516_v25 = vadd.f32 %v2515_v23, %v7328_v14  ;;  %v2347_v50 = vadd.f32 %v2346_v27, %v7328_v14  ;;  %v2517_v37 = vpop.f32.mrb[117].mxu1  ;;  %v2348_v57 = vpop.f32.mrb[118].mxu0  ;;  %v8291_v5 = vld [vmem:[%s9202_s3 + $0x14] ss:$8 sps:$4 sm:$0xff]  }
 0x204   :  { %9419 = vst [vmem:[#allocation42_spill] sm:$0xff] %v8274_v9  ;;  %v2518_v43 = vadd.f32 %v2517_v37, %v7328_v14  ;;  %v2349_v12 = vadd.f32 %v2348_v57, %v7354_v17  ;;  %v2519_v8 = vpop.f32.mrb[118].mxu1  ;;  %v2350_v3 = vpop.f32.mrb[119].mxu0  ;;  %v3024_v23 = vmax.f32 %v2345_v4, 0.0 }
 0x205   :  { %v2520_v53 = vadd.f32 %v2519_v8, %v7354_v17  ;;  %v2351_v34 = vadd.f32 %v2350_v3, %v7354_v17  ;;  %v2521_v2 = vpop.f32.mrb[119].mxu1  ;;  %v3026_v37 = vmax.f32 %v2516_v25, 0.0  ;;  %v3025_v57 = vmax.f32 %v2347_v50, 0.0  ;;  %v9420_v8 = vld [vmem:[#allocation56_spill] sm:$0xff] }
 0x206   :  { %v3040_v27 = vmax.f32 %v2349_v12, 0.0  ;;  %v2522_v36 = vadd.f32 %v2521_v2, %v7354_v17  ;;  %3843 = vmatmul.mubr.bf16.vlgmr.msra.gmra.mrb[224].mxu0 %v8280_v22  ;;  %v3027_v3 = vmax.f32 %v2518_v43, 0.0 }
 0x207   :  { %v3042_v14 = vmax.f32 %v2520_v53, 0.0  ;;  %v3041_v9 = vmax.f32 %v2351_v34, 0.0  ;;  %3924 = vmatmul.mubr.bf16.vlgmr.msra.gmra.mrb[224].mxu1 %v8280_v22  ;;  %3973 = vmatpush1.bf16.msra.mxu0 %v9420_v8 }
 0x208   :  { %v8297_v32 = vpack.c.bf16 %v3040_v27, %v3024_v23  ;;  %v3043_v39 = vmax.f32 %v2522_v36, 0.0  ;;  %4054 = vmatpush1.bf16.msra.mxu1 %v9421_v20  ;;  %3974 = vmatprep.subr.bf16.mxu0 %v7901_v46 }
 0x209   :  { %v8301_v4 = vpack.c.bf16 %v3042_v14, %v3026_v37  ;;  %v8303_v2 = vpack.c.bf16 %v3041_v9, %v3025_v57  ;;  %4055 = vmatprep.subr.bf16.mxu1 %v7905_v49  ;;  %v2354_v25 = vpop.f32.mrb[120].mxu0  ;;  %5707 = vmatprep.mubr.msk.bf16.mxu0 %vm3745_vm2, %v8291_v5  ;;  %v8316_v14 = vld [vmem:[%s9202_s3 + $0x10] ss:$8 sps:$4 sm:$0xff]  }
 0x20a   :  { %v8308_v50 = vpack.c.bf16 %v3043_v39, %v3027_v3  ;;  %v2355_v43 = vadd.f32 %v2354_v25, %v7381_v21  ;;  %v2525_v12 = vpop.f32.mrb[120].mxu1  ;;  %v2356_v36 = vpop.f32.mrb[121].mxu0  ;;  %5713 = vmatprep.mubr.msk.bf16.mxu1 %vm3745_vm2, %v8291_v5 }
 0x20b   :  { %v2526_v46 = vadd.f32 %v2525_v12, %v7381_v21  ;;  %v2357_v49 = vadd.f32 %v2356_v36, %v7381_v21  ;;  %v2527_v20 = vpop.f32.mrb[121].mxu1  ;;  %3975 = vmatpush1.bf16.msra.mxu0 %v7890_v11  ;;  %v2358_v39 = vpop.f32.mrb[122].mxu0  ;;  %v8331_v11 = vld [vmem:[%s9202_s3 + $0x24] ss:$8 sps:$4 sm:$0xff]  }
 0x20c   :  { %v2528_v9 = vadd.f32 %v2527_v20, %v7381_v21  ;;  %4056 = vmatpush1.bf16.msra.mxu1 %v7894_v10  ;;  %v2359_v53 = vadd.f32 %v2358_v39, %v7394_v16  ;;  %v2529_v34 = vpop.f32.mrb[122].mxu1  ;;  %3976 = vmatprep.subr.bf16.mxu0 %v7927_v62  ;;  %v2360_v23 = vpop.f32.mrb[123].mxu0  ;;  %v3056_v8 = vmax.f32 %v2355_v43, 0.0 }
 0x20d   :  { %v2530_v27 = vadd.f32 %v2529_v34, %v7394_v16  ;;  %4057 = vmatprep.subr.bf16.mxu1 %v7934_v63  ;;  %v2361_v37 = vadd.f32 %v2360_v23, %v7394_v16  ;;  %v2531_v57 = vpop.f32.mrb[123].mxu1  ;;  %v3058_v62 = vmax.f32 %v2526_v46, 0.0  ;;  %v3057_v25 = vmax.f32 %v2357_v49, 0.0 }
 0x20e   :  { %v3072_v10 = vmax.f32 %v2359_v53, 0.0  ;;  %v2532_v3 = vadd.f32 %v2531_v57, %v7394_v16  ;;  %3853 = vmatmul.mubr.bf16.gmra.mrb[228].mxu0 %v8316_v14  ;;  %v3059_v63 = vmax.f32 %v2528_v9, 0.0  ;;  %v9446_v16 = vld [vmem:[#allocation47_spill] sm:$0xff] }
 0x20f   :  { %v3074_v12 = vmax.f32 %v2530_v27, 0.0  ;;  %v3073_v36 = vmax.f32 %v2361_v37, 0.0  ;;  %3934 = vmatmul.mubr.bf16.gmra.mrb[228].mxu1 %v8316_v14  ;;  %3977 = vmatpush1.bf16.msra.mxu0 %v7921_v30 }
 0x210   :  { %v8337_v20 = vpack.c.bf16 %v3072_v10, %v3056_v8  ;;  %v3075_v39 = vmax.f32 %v2532_v3, 0.0  ;;  %4058 = vmatpush1.bf16.msra.mxu1 %v7925_v51  ;;  %3978 = vmatprep.subr.bf16.mxu0 %v7958_v13  ;;  %v8356_v51 = vld [vmem:[%s9202_s3 + $0x20] ss:$8 sps:$4 sm:$0xff]  }
 0x211   :  { %v8341_v43 = vpack.c.bf16 %v3074_v12, %v3058_v62  ;;  %v8343_v53 = vpack.c.bf16 %v3073_v36, %v3057_v25  ;;  %4059 = vmatprep.subr.bf16.mxu1 %v7965_v41  ;;  %v2364_v46 = vpop.f32.mrb[124].mxu0  ;;  %5708 = vmatprep.mubr.msk.bf16.mxu0 %vm3745_vm2, %v8331_v11 }
 0x212   :  { %v8348_v49 = vpack.c.bf16 %v3075_v39, %v3059_v63  ;;  %v2365_v30 = vadd.f32 %v2364_v46, %v7424_v61  ;;  %v2535_v9 = vpop.f32.mrb[124].mxu1  ;;  %v2366_v34 = vpop.f32.mrb[125].mxu0  ;;  %5714 = vmatprep.mubr.msk.bf16.mxu1 %vm3745_vm2, %v8331_v11 }
 0x213   :  { %v2536_v13 = vadd.f32 %v2535_v9, %v7424_v61  ;;  %v2367_v41 = vadd.f32 %v2366_v34, %v7424_v61  ;;  %v2537_v23 = vpop.f32.mrb[125].mxu1  ;;  %3979 = vmatpush1.bf16.msra.mxu0 %v7952_v52  ;;  %v2368_v27 = vpop.f32.mrb[126].mxu0  ;;  %v8371_v52 = vld [vmem:[%s9202_s3 + $0x34] ss:$8 sps:$4 sm:$0xff]  }
 0x214   :  { %v2538_v37 = vadd.f32 %v2537_v23, %v7424_v61  ;;  %4060 = vmatpush1.bf16.msra.mxu1 %v7956_v7  ;;  %v2369_v57 = vadd.f32 %v2368_v27, %v7437_v6  ;;  %v2539_v8 = vpop.f32.mrb[126].mxu1  ;;  %3980 = vmatprep.subr.bf16.mxu0 %v7989_v26  ;;  %v2370_v10 = vpop.f32.mrb[127].mxu0  ;;  %v3088_v12 = vmax.f32 %v2365_v30, 0.0 }
 0x215   :  { %v2540_v3 = vadd.f32 %v2539_v8, %v7437_v6  ;;  %4061 = vmatprep.subr.bf16.mxu1 %v7996_v18  ;;  %v2371_v62 = vadd.f32 %v2370_v10, %v7437_v6  ;;  %v2541_v25 = vpop.f32.mrb[127].mxu1  ;;  %v3090_v26 = vmax.f32 %v2536_v13, 0.0  ;;  %v3089_v63 = vmax.f32 %v2367_v41, 0.0 }
 0x216   :  { %v3104_v7 = vmax.f32 %v2369_v57, 0.0  ;;  %v2542_v36 = vadd.f32 %v2541_v25, %v7437_v6  ;;  %3863 = vmatmul.mubr.bf16.gmra.mrb[232].mxu0 %v8356_v51  ;;  %v3091_v18 = vmax.f32 %v2538_v37, 0.0 }
 0x217   :  { %v3106_v39 = vmax.f32 %v2540_v3, 0.0  ;;  %v3105_v46 = vmax.f32 %v2371_v62, 0.0  ;;  %3944 = vmatmul.mubr.bf16.gmra.mrb[232].mxu1 %v8356_v51  ;;  %3981 = vmatpush1.bf16.msra.mxu0 %v7983_v33 }
 0x218   :  { %v8377_v9 = vpack.c.bf16 %v3104_v7, %v3088_v12  ;;  %v3107_v34 = vmax.f32 %v2542_v36, 0.0  ;;  %4062 = vmatpush1.bf16.msra.mxu1 %v7987_v54  ;;  %3982 = vmatprep.subr.bf16.mxu0 %v8022_v28  ;;  %v8396_v54 = vld [vmem:[%s9202_s3 + $0x30] ss:$8 sps:$4 sm:$0xff]   ;;  %v3424_v28 = vld [vmem:[%s9202_s3 + $0x40] sm:$0xff] }
 0x219   :  { %v8381_v30 = vpack.c.bf16 %v3106_v39, %v3090_v26  ;;  %v8383_v23 = vpack.c.bf16 %v3105_v46, %v3089_v63  ;;  %4063 = vmatprep.subr.bf16.mxu1 %v8027_v56  ;;  %v2374_v13 = vpop.f32.mrb[128].mxu0  ;;  %5709 = vmatprep.mubr.msk.bf16.mxu0 %vm3745_vm2, %v8371_v52  ;;  %v8411_v63 = vcombine.high %v3424_v28, %v3424_v28 }
 0x21a   :  { %v8388_v41 = vpack.c.bf16 %v3107_v34, %v3091_v18  ;;  %v2375_v33 = vadd.f32 %v2374_v13, %v7467_v45  ;;  %v2545_v27 = vpop.f32.mrb[128].mxu1  ;;  %v2376_v37 = vpop.f32.mrb[129].mxu0  ;;  %5715 = vmatprep.mubr.msk.bf16.mxu1 %vm3745_vm2, %v8371_v52 }
 0x21b   :  { %v2546_v56 = vadd.f32 %v2545_v27, %v7467_v45  ;;  %v2377_v57 = vadd.f32 %v2376_v37, %v7467_v45  ;;  %v2547_v8 = vpop.f32.mrb[129].mxu1  ;;  %3983 = vmatpush1.bf16.msra.mxu0 %v8014_v40  ;;  %v2378_v10 = vpop.f32.mrb[130].mxu0 }
 0x21c   :  { %v2548_v3 = vadd.f32 %v2547_v8, %v7467_v45  ;;  %4064 = vmatpush1.bf16.msra.mxu1 %v8020_v48  ;;  %v2379_v62 = vadd.f32 %v2378_v10, %v7480_v58  ;;  %v2549_v25 = vpop.f32.mrb[130].mxu1  ;;  %3984 = vmatprep.subr.bf16.mxu0 %v8062_v60  ;;  %v2380_v12 = vpop.f32.mrb[131].mxu0  ;;  %v3120_v40 = vmax.f32 %v2375_v33, 0.0 }
 0x21d   :  { %v2550_v7 = vadd.f32 %v2549_v25, %v7480_v58  ;;  %4065 = vmatprep.subr.bf16.mxu1 %v8069_v15  ;;  %v2381_v36 = vadd.f32 %v2380_v12, %v7480_v58  ;;  %v2551_v26 = vpop.f32.mrb[131].mxu1  ;;  %v3122_v48 = vmax.f32 %v2546_v56, 0.0  ;;  %v3121_v18 = vmax.f32 %v2377_v57, 0.0 }
 0x21e   :  { %v3136_v39 = vmax.f32 %v2379_v62, 0.0  ;;  %v2552_v46 = vadd.f32 %v2551_v26, %v7480_v58  ;;  %3873 = vmatmul.mubr.bf16.gmra.mrb[236].mxu0 %v8396_v54  ;;  %v3123_v15 = vmax.f32 %v2548_v3, 0.0  ;;  %v9437_v58 = vld [vmem:[#allocation36_spill] sm:$0xff] }
 0x21f   :  { %v3138_v34 = vmax.f32 %v2550_v7, 0.0  ;;  %v3137_v60 = vmax.f32 %v2381_v36, 0.0  ;;  %3954 = vmatmul.mubr.bf16.gmra.mrb[236].mxu1 %v8396_v54  ;;  %3985 = vmatpush1.bf16.msra.mxu0 %v8056_v47 }
 0x220   :  { %v8417_v13 = vpack.c.bf16 %v3136_v39, %v3120_v40  ;;  %v3139_v27 = vmax.f32 %v2552_v46, 0.0  ;;  %4066 = vmatpush1.bf16.msra.mxu1 %v8060_v38  ;;  %3986 = vmatprep.subr.bf16.mxu0 %v8093_v0  ;;  %v8433_v38 = vcombine.low %v3424_v28, %v3424_v28 }
 0x221   :  { %v8421_v33 = vpack.c.bf16 %v3138_v34, %v3122_v48  ;;  %v8423_v37 = vpack.c.bf16 %v3137_v60, %v3121_v18  ;;  %4067 = vmatprep.subr.bf16.mxu1 %v8100_v35  ;;  %v2384_v56 = vpop.f32.mrb[132].mxu0  ;;  %5710 = vmatprep.mubr.msk.bf16.mxu0 %vm3745_vm2, %v8411_v63 }
 0x222   :  { %v8428_v57 = vpack.c.bf16 %v3139_v27, %v3123_v15  ;;  %v2385_v47 = vadd.f32 %v2384_v56, %v9350_v55  ;;  %v2555_v8 = vpop.f32.mrb[132].mxu1  ;;  %v2386_v10 = vpop.f32.mrb[133].mxu0  ;;  %5716 = vmatprep.mubr.msk.bf16.mxu1 %vm3745_vm2, %v8411_v63  ;;  %v9422_v56 = vld [vmem:[#allocation17_spill] sm:$0xff] }
 0x223   :  { %v2556_v0 = vadd.f32 %v2555_v8, %v9350_v55  ;;  %v2387_v3 = vadd.f32 %v2386_v10, %v9350_v55  ;;  %v2557_v35 = vpop.f32.mrb[133].mxu1  ;;  %3987 = vmatpush1.bf16.msra.mxu0 %v8087_v44  ;;  %v2388_v62 = vpop.f32.mrb[134].mxu0  ;;  %v9423_v8 = vld [vmem:[#allocation58_spill] sm:$0xff] }
 0x224   :  { %v2558_v25 = vadd.f32 %v2557_v35, %v9350_v55  ;;  %4068 = vmatpush1.bf16.msra.mxu1 %v8091_v19  ;;  %v2389_v12 = vadd.f32 %v2388_v62, %v9353_v24  ;;  %v2559_v7 = vpop.f32.mrb[134].mxu1  ;;  %3988 = vmatprep.subr.bf16.mxu0 %v8125_v31  ;;  %v2390_v36 = vpop.f32.mrb[135].mxu0  ;;  %v3152_v39 = vmax.f32 %v2385_v47, 0.0 }
 0x225   :  { %v2560_v28 = vadd.f32 %v2559_v7, %v9353_v24  ;;  %4069 = vmatprep.subr.bf16.mxu1 %v8127_v42  ;;  %v2391_v26 = vadd.f32 %v2390_v36, %v9353_v24  ;;  %v2561_v40 = vpop.f32.mrb[135].mxu1  ;;  %v3154_v19 = vmax.f32 %v2556_v0, 0.0  ;;  %v3153_v48 = vmax.f32 %v2387_v3, 0.0  ;;  %v9426_v7 = vld [vmem:[#allocation22_spill] sm:$0xff]  ;;  %v9427_v36 = vld [vmem:[#allocation44_spill] sm:$0xff] }
 0x226   :  { %v3168_v44 = vmax.f32 %v2389_v12, 0.0  ;;  %v2562_v46 = vadd.f32 %v2561_v40, %v9353_v24  ;;  %3883 = vmatmul.mubr.bf16.gmra.mrb[240].mxu0 %v8433_v38  ;;  %v3155_v31 = vmax.f32 %v2558_v25, 0.0  ;;  %v9425_v25 = vld [vmem:[#allocation23_spill] sm:$0xff]  ;;  %v9428_v40 = vld [vmem:[#allocation33_spill] sm:$0xff]  ;;  %v9435_v24 = vld [vmem:[#allocation30_spill] sm:$0xff] }
 0x227   :  { %v3170_v18 = vmax.f32 %v2560_v28, 0.0  ;;  %v3169_v34 = vmax.f32 %v2391_v26, 0.0  ;;  %3964 = vmatmul.mubr.bf16.gmra.mrb[240].mxu1 %v8433_v38  ;;  %3989 = vmatpush1.bf16.msra.mxu0 %v8119_v59  ;;  %v9424_v59 = vld [vmem:[#allocation16_spill] sm:$0xff]  ;;  %v2123_v28 = vadd.f32 %v9427_v36, %v9426_v7 }
 0x228   :  { %v8449_v60 = vpack.c.bf16 %v3168_v44, %v3152_v39  ;;  %v3171_v42 = vmax.f32 %v2562_v46, 0.0  ;;  %4070 = vmatpush1.bf16.msra.mxu1 %v8123_v29  ;;  %3990 = vmatprep.subr.bf16.mxu0 %v8150_v1  ;;  %v9429_v39 = vld [vmem:[#allocation18_spill] sm:$0xff] }
 0x229   :  { %v8453_v15 = vpack.c.bf16 %v3170_v18, %v3154_v19  ;;  %v8455_v27 = vpack.c.bf16 %v3169_v34, %v3153_v48  ;;  %4071 = vmatprep.subr.bf16.mxu1 %v9422_v56  ;;  %v2394_v47 = vpop.f32.mrb[136].mxu0  ;;  %5718 = vmatprep.mubr.msk.bf16.mxu0 %vm3745_vm2, %v9423_v8  ;;  %v9430_v19 = vld [vmem:[#allocation39_spill] sm:$0xff]  ;;  %v9431_v18 = vld [vmem:[#allocation53_spill] sm:$0xff] }
 0x22a   :  { %v8460_v10 = vpack.c.bf16 %v3171_v42, %v3155_v31  ;;  %v2395_v0 = vadd.f32 %v2394_v47, %v9424_v59  ;;  %v2565_v3 = vpop.f32.mrb[136].mxu1  ;;  %v2396_v35 = vpop.f32.mrb[137].mxu0  ;;  %5724 = vmatprep.mubr.msk.bf16.mxu1 %vm3745_vm2, %v9423_v8  ;;  %v2294_v34 = vadd.f32 %v9431_v18, %v9426_v7  ;;  %v9432_v31 = vld [vmem:[#allocation49_spill] sm:$0xff]  ;;  %v9433_v47 = vld [vmem:[#allocation40_spill] sm:$0xff] }
 0x22b   :  { %v2566_v29 = vadd.f32 %v2565_v3, %v9424_v59  ;;  %v2397_v1 = vadd.f32 %v2396_v35, %v9424_v59  ;;  %v2567_v62 = vpop.f32.mrb[137].mxu1  ;;  %3991 = vmatpush1.bf16.msra.mxu0 %v9425_v25  ;;  %v2398_v12 = vpop.f32.mrb[138].mxu0  ;;  %v2125_v42 = vadd.f32 %v9432_v31, %v9426_v7  ;;  %v9434_v35 = vld [vmem:[#allocation50_spill] sm:$0xff]  ;;  %v3404_v31 = vmax.f32 %v2123_v28, 0.0  ;;  %v9439_v28 = vld [vmem:[#allocation19_spill] sm:$0xff] }
 0x22c   :  { %v2568_v26 = vadd.f32 %v2567_v62, %v9424_v59  ;;  %4072 = vmatpush1.bf16.msra.mxu1 %v9428_v40  ;;  %v2399_v44 = vadd.f32 %v2398_v12, %v9429_v39  ;;  %v2569_v46 = vpop.f32.mrb[138].mxu1  ;;  %3992 = vmatprep.subr.bf16.mxu0 %v9430_v19  ;;  %v2400_v48 = vpop.f32.mrb[139].mxu0  ;;  %v2296_v62 = vadd.f32 %v9434_v35, %v9426_v7  ;;  %v3184_v25 = vmax.f32 %v2395_v0, 0.0 }
 0x22d   :  { %v2570_v56 = vadd.f32 %v2569_v46, %v9429_v39  ;;  %4073 = vmatprep.subr.bf16.mxu1 %v9433_v47  ;;  %v2401_v8 = vadd.f32 %v2400_v48, %v9429_v39  ;;  %v2571_v3 = vpop.f32.mrb[139].mxu1  ;;  %v3186_v40 = vmax.f32 %v2566_v29, 0.0  ;;  %v3185_v19 = vmax.f32 %v2397_v1, 0.0  ;;  %v9436_v48 = vld [vmem:[#allocation31_spill] sm:$0xff]  ;;  %v9438_v29 = vld [vmem:[#allocation37_spill] sm:$0xff] }
 0x22e   :  { %v3200_v12 = vmax.f32 %v2399_v44, 0.0  ;;  %v2572_v36 = vadd.f32 %v2571_v3, %v9429_v39  ;;  %v3187_v46 = vmax.f32 %v2568_v26, 0.0  ;;  %v3406_v35 = vmax.f32 %v2294_v34, 0.0 }
 0x22f   :  { %v3202_v18 = vmax.f32 %v2570_v56, 0.0  ;;  %v3201_v59 = vmax.f32 %v2401_v8, 0.0  ;;  %3993 = vmatpush1.bf16.msra.mxu0 %v9435_v24  ;;  %v3405_v0 = vmax.f32 %v2125_v42, 0.0  ;;  %v3407_v56 = vmax.f32 %v2296_v62, 0.0  ;;  %v9440_v42 = vld [vmem:[#allocation52_spill] sm:$0xff] }
 0x230   :  { %v8485_v55 = vpack.c.bf16 %v3200_v12, %v3184_v25  ;;  %v3203_v47 = vmax.f32 %v2572_v36, 0.0  ;;  %4074 = vmatpush1.bf16.msra.mxu1 %v9436_v48  ;;  %3994 = vmatprep.subr.bf16.mxu0 %v9437_v58  ;;  %v9442_v62 = vld [vmem:[#allocation20_spill] sm:$0xff] }
 0x231   :  { %v8489_v44 = vpack.c.bf16 %v3202_v18, %v3186_v40  ;;  %v8491_v3 = vpack.c.bf16 %v3201_v59, %v3185_v19  ;;  %4075 = vmatprep.subr.bf16.mxu1 %v9438_v29  ;;  %v2404_v1 = vpop.f32.mrb[140].mxu0  ;;  %v3637_v59 = vpack.c.bf16 %v3404_v31, %v3404_v31  ;;  %v9441_v19 = vld [vmem:[#allocation54_spill] sm:$0xff]  ;;  %v3639_v29 = vpack.c.bf16 %v3406_v35, %v3406_v35 }
 0x232   :  { %v8494_v24 = vpack.c.bf16 %v3203_v47, %v3187_v46  ;;  %v2405_v26 = vadd.f32 %v2404_v1, %v9439_v28  ;;  %v2575_v8 = vpop.f32.mrb[140].mxu1  ;;  %v2406_v25 = vpop.f32.mrb[141].mxu0  ;;  %v9443_v47 = vld [vmem:[#allocation43_spill] sm:$0xff]  ;;  %v3638_v1 = vpack.c.bf16 %v3405_v0, %v3405_v0  ;;  %v3640_v31 = vpack.c.bf16 %v3407_v56, %v3407_v56 }
 0x233   :  { %v2576_v12 = vadd.f32 %v2575_v8, %v9439_v28  ;;  %v2407_v58 = vadd.f32 %v2406_v25, %v9439_v28  ;;  %v2577_v34 = vpop.f32.mrb[141].mxu1  ;;  %3995 = vmatpush1.bf16.msra.mxu0 %v9440_v42  ;;  %v2408_v36 = vpop.f32.mrb[142].mxu0  ;;  %v9444_v25 = vld [vmem:[#allocation51_spill] sm:$0xff] }
 0x234   :  { %v2578_v40 = vadd.f32 %v2577_v34, %v9439_v28  ;;  %4076 = vmatpush1.bf16.msra.mxu1 %v9441_v19  ;;  %v2409_v18 = vadd.f32 %v2408_v36, %v9442_v62  ;;  %v2579_v46 = vpop.f32.mrb[142].mxu1  ;;  %3996 = vmatprep.subr.bf16.mxu0 %v9443_v47  ;;  %v2410_v48 = vpop.f32.mrb[143].mxu0  ;;  %v3216_v45 = vmax.f32 %v2405_v26, 0.0  ;;  %v9445_v47 = vld [vmem:[#allocation46_spill] sm:$0xff] }
 0x235   :  { %v2580_v8 = vadd.f32 %v2579_v46, %v9442_v62  ;;  %4077 = vmatprep.subr.bf16.mxu1 %v9444_v25  ;;  %v2411_v42 = vadd.f32 %v2410_v48, %v9442_v62  ;;  %v2581_v39 = vpop.f32.mrb[143].mxu1  ;;  %v3218_v28 = vmax.f32 %v2576_v12, 0.0  ;;  %v3217_v36 = vmax.f32 %v2407_v58, 0.0  ;;  %v9447_v12 = vld [vmem:[#allocation21_spill] sm:$0xff]  ;;  %v9448_v25 = vld [vmem:[#allocation24_spill] sm:$0xff] }
 0x236   :  { %v3232_v34 = vmax.f32 %v2409_v18, 0.0  ;;  %v2582_v19 = vadd.f32 %v2581_v39, %v9442_v62  ;;  %v3219_v35 = vmax.f32 %v2578_v40, 0.0 }
 0x237   :  { %v3234_v6 = vmax.f32 %v2580_v8, 0.0  ;;  %v3233_v61 = vmax.f32 %v2411_v42, 0.0  ;;  %3997 = vmatpush1.bf16.msra.mxu0 %v9445_v47 }
 0x238   :  { %v8509_v0 = vpack.c.bf16 %v3232_v34, %v3216_v45  ;;  %v3235_v46 = vmax.f32 %v2582_v19, 0.0  ;;  %4078 = vmatpush1.bf16.msra.mxu1 %v9446_v16  ;;  %5717 = vmatprep.subr.msk.bf16.mxu0 %vm3761_vm1, %v3638_v1  ;;  %v3775_v45 = vsel %vm3761_vm1, %v3637_v59, 0  ;;  %v9449_v34 = vld [vmem:[#allocation35_spill] sm:$0xff] }
 0x239   :  { %v8513_v48 = vpack.c.bf16 %v3234_v6, %v3218_v28  ;;  %v8515_v56 = vpack.c.bf16 %v3233_v61, %v3217_v36  ;;  %5723 = vmatprep.subr.msk.bf16.mxu1 %vm3761_vm1, %v3640_v31  ;;  %v2414_v39 = vpop.f32.mrb[144].mxu0  ;;  %v3781_v61 = vsel %vm3761_vm1, %v3639_v29, 0  ;;  %v9450_v36 = vld [vmem:[#allocation42_spill] sm:$0xff] }
 0x23a   :  { %v8518_v26 = vpack.c.bf16 %v3235_v46, %v3219_v35  ;;  %v2415_v58 = vadd.f32 %v2414_v39, %v9447_v12  ;;  %v2585_v18 = vpop.f32.mrb[144].mxu1  ;;  %v2416_v40 = vpop.f32.mrb[145].mxu0 }
 0x23b   :  { %v2586_v8 = vadd.f32 %v2585_v18, %v9447_v12  ;;  %v2417_v16 = vadd.f32 %v2416_v40, %v9447_v12  ;;  %v2587_v1 = vpop.f32.mrb[145].mxu1  ;;  %3999 = vmatpush1.bf16.msra.mxu0 %v3775_v45  ;;  %v2418_v6 = vpop.f32.mrb[146].mxu0 }
 0x23c   :  { %v2588_v28 = vadd.f32 %v2587_v1, %v9447_v12  ;;  %4080 = vmatpush1.bf16.msra.mxu1 %v3781_v61  ;;  %v2419_v42 = vadd.f32 %v2418_v6, %v9448_v25  ;;  %v2589_v31 = vpop.f32.mrb[146].mxu1  ;;  %4134 = vmatprep.subr.bf16.mxu0 %v9449_v34  ;;  %v2420_v19 = vpop.f32.mrb[147].mxu0  ;;  %v3248_v46 = vmax.f32 %v2415_v58, 0.0  ;;  %v9451_v61 = vld [vmem:[#allocation27_spill] sm:$0xff] }
 0x23d   :  { %v2590_v59 = vadd.f32 %v2589_v31, %v9448_v25  ;;  %4215 = vmatprep.subr.bf16.mxu1 %v9450_v36  ;;  %v2421_v47 = vadd.f32 %v2420_v19, %v9448_v25  ;;  %v2591_v35 = vpop.f32.mrb[147].mxu1  ;;  %v3250_v18 = vmax.f32 %v2586_v8, 0.0  ;;  %v3249_v40 = vmax.f32 %v2417_v16, 0.0  ;;  %v9452_v19 = vld [vmem:[#allocation29_spill] sm:$0xff] }
 0x23e   :  { %v3264_v39 = vmax.f32 %v2419_v42, 0.0  ;;  %v2592_v29 = vadd.f32 %v2591_v35, %v9448_v25  ;;  %4005 = vmatmul.mubr.bf16.vlgmr.msra.gmra.mrb[244].mxu0 %v8280_v22  ;;  %v3251_v6 = vmax.f32 %v2588_v28, 0.0  ;;  %v9453_v16 = vld [vmem:[#allocation25_spill] sm:$0xff] }
 0x23f   :  { %v3266_v45 = vmax.f32 %v2590_v59, 0.0  ;;  %v3265_v1 = vmax.f32 %v2421_v47, 0.0  ;;  %4086 = vmatmul.mubr.bf16.vlgmr.msra.gmra.mrb[244].mxu1 %v8280_v22  ;;  %4135 = vmatpush1.bf16.msra.mxu0 %v9451_v61 }
 0x240   :  { %v8535_v31 = vpack.c.bf16 %v3264_v39, %v3248_v46  ;;  %v3267_v34 = vmax.f32 %v2592_v29, 0.0  ;;  %4216 = vmatpush1.bf16.msra.mxu1 %v9452_v19  ;;  %4136 = vmatprep.subr.bf16.mxu0 %v8303_v2  ;;  %v9454_v39 = vld [vmem:[#allocation26_spill] sm:$0xff] }
 0x241   :  { %v8539_v58 = vpack.c.bf16 %v3266_v45, %v3250_v18  ;;  %v8541_v42 = vpack.c.bf16 %v3265_v1, %v3249_v40  ;;  %4217 = vmatprep.subr.bf16.mxu1 %v8308_v50  ;;  %v2424_v8 = vpop.f32.mrb[148].mxu0  ;;  %5719 = vmatprep.mubr.msk.bf16.mxu0 %vm3745_vm2, %v8291_v5 }
 0x242   :  { %v8546_v22 = vpack.c.bf16 %v3267_v34, %v3251_v6  ;;  %v2425_v28 = vadd.f32 %v2424_v8, %v9453_v16  ;;  %v2595_v59 = vpop.f32.mrb[148].mxu1  ;;  %v2426_v36 = vpop.f32.mrb[149].mxu0  ;;  %5725 = vmatprep.mubr.msk.bf16.mxu1 %vm3745_vm2, %v8291_v5 }
 0x243   :  { %v2596_v2 = vadd.f32 %v2595_v59, %v9453_v16  ;;  %v2427_v47 = vadd.f32 %v2426_v36, %v9453_v16  ;;  %v2597_v35 = vpop.f32.mrb[149].mxu1  ;;  %4137 = vmatpush1.bf16.msra.mxu0 %v8297_v32  ;;  %v2428_v50 = vpop.f32.mrb[150].mxu0 }
 0x244   :  { %v2598_v46 = vadd.f32 %v2597_v35, %v9453_v16  ;;  %4218 = vmatpush1.bf16.msra.mxu1 %v8301_v4  ;;  %v2429_v29 = vadd.f32 %v2428_v50, %v9454_v39  ;;  %v2599_v18 = vpop.f32.mrb[150].mxu1  ;;  %4138 = vmatprep.subr.bf16.mxu0 %v8343_v53  ;;  %v2430_v40 = vpop.f32.mrb[151].mxu0  ;;  %v3280_v61 = vmax.f32 %v2425_v28, 0.0 }
 0x245   :  { %v2600_v5 = vadd.f32 %v2599_v18, %v9454_v39  ;;  %4219 = vmatprep.subr.bf16.mxu1 %v8348_v49  ;;  %v2431_v45 = vadd.f32 %v2430_v40, %v9454_v39  ;;  %v2601_v1 = vpop.f32.mrb[151].mxu1  ;;  %v3282_v4 = vmax.f32 %v2596_v2, 0.0  ;;  %v3281_v34 = vmax.f32 %v2427_v47, 0.0  ;;  %v9456_v18 = vld [vmem:[#allocation32_spill] sm:$0xff] }
 0x246   :  { %v3296_v32 = vmax.f32 %v2429_v29, 0.0  ;;  %v2602_v6 = vadd.f32 %v2601_v1, %v9454_v39  ;;  %4015 = vmatmul.mubr.bf16.gmra.mrb[248].mxu0 %v8316_v14  ;;  %v3283_v53 = vmax.f32 %v2598_v46, 0.0 }
 0x247   :  { %v3298_v19 = vmax.f32 %v2600_v5, 0.0  ;;  %v3297_v8 = vmax.f32 %v2431_v45, 0.0  ;;  %4096 = vmatmul.mubr.bf16.gmra.mrb[248].mxu1 %v8316_v14  ;;  %4139 = vmatpush1.bf16.msra.mxu0 %v8337_v20  ;;  %v9455_v20 = vld [vmem:[#allocation28_spill] sm:$0xff] }
 0x248   :  { %v8565_v59 = vpack.c.bf16 %v3296_v32, %v3280_v61  ;;  %v3299_v49 = vmax.f32 %v2602_v6, 0.0  ;;  %4220 = vmatpush1.bf16.msra.mxu1 %v8341_v43  ;;  %4140 = vmatprep.subr.bf16.mxu0 %v8383_v23 }
 0x249   :  { %v8569_v28 = vpack.c.bf16 %v3298_v19, %v3282_v4  ;;  %v8571_v36 = vpack.c.bf16 %v3297_v8, %v3281_v34  ;;  %4221 = vmatprep.subr.bf16.mxu1 %v8388_v41  ;;  %v2434_v2 = vpop.f32.mrb[152].mxu0  ;;  %5720 = vmatprep.mubr.msk.bf16.mxu0 %vm3745_vm2, %v8331_v11 }
 0x24a   :  { %v8576_v14 = vpack.c.bf16 %v3299_v49, %v3283_v53  ;;  %v2435_v47 = vadd.f32 %v2434_v2, %v9455_v20  ;;  %v2605_v35 = vpop.f32.mrb[152].mxu1  ;;  %v2436_v50 = vpop.f32.mrb[153].mxu0  ;;  %5726 = vmatprep.mubr.msk.bf16.mxu1 %vm3745_vm2, %v8331_v11 }
 0x24b   :  { %v2606_v43 = vadd.f32 %v2605_v35, %v9455_v20  ;;  %v2437_v23 = vadd.f32 %v2436_v50, %v9455_v20  ;;  %v2607_v46 = vpop.f32.mrb[153].mxu1  ;;  %4141 = vmatpush1.bf16.msra.mxu0 %v8377_v9  ;;  %v2438_v41 = vpop.f32.mrb[154].mxu0 }
 0x24c   :  { %v2608_v29 = vadd.f32 %v2607_v46, %v9455_v20  ;;  %4222 = vmatpush1.bf16.msra.mxu1 %v8381_v30  ;;  %v2439_v40 = vadd.f32 %v2438_v41, %v9456_v18  ;;  %v2609_v5 = vpop.f32.mrb[154].mxu1  ;;  %4142 = vmatprep.subr.bf16.mxu0 %v8423_v37  ;;  %v2440_v45 = vpop.f32.mrb[155].mxu0  ;;  %v3312_v32 = vmax.f32 %v2435_v47, 0.0  ;;  %v9458_v46 = vld [vmem:[#allocation38_spill] sm:$0xff] }
 0x24d   :  { %v2610_v11 = vadd.f32 %v2609_v5, %v9456_v18  ;;  %4223 = vmatprep.subr.bf16.mxu1 %v8428_v57  ;;  %v2441_v1 = vadd.f32 %v2440_v45, %v9456_v18  ;;  %v2611_v61 = vpop.f32.mrb[155].mxu1  ;;  %v3314_v30 = vmax.f32 %v2606_v43, 0.0  ;;  %v3313_v4 = vmax.f32 %v2437_v23, 0.0 }
 0x24e   :  { %v3328_v9 = vmax.f32 %v2439_v40, 0.0  ;;  %v2612_v6 = vadd.f32 %v2611_v61, %v9456_v18  ;;  %4025 = vmatmul.mubr.bf16.gmra.mrb[252].mxu0 %v8356_v51  ;;  %v3315_v37 = vmax.f32 %v2608_v29, 0.0 }
 0x24f   :  { %v3330_v34 = vmax.f32 %v2610_v11, 0.0  ;;  %v3329_v19 = vmax.f32 %v2441_v1, 0.0  ;;  %4106 = vmatmul.mubr.bf16.gmra.mrb[252].mxu1 %v8356_v51  ;;  %4143 = vmatpush1.bf16.msra.mxu0 %v8417_v13  ;;  %v9457_v13 = vld [vmem:[#allocation34_spill] sm:$0xff] }
 0x250   :  { %v8595_v8 = vpack.c.bf16 %v3328_v9, %v3312_v32  ;;  %v3331_v57 = vmax.f32 %v2612_v6, 0.0  ;;  %4224 = vmatpush1.bf16.msra.mxu1 %v8421_v33  ;;  %4144 = vmatprep.subr.bf16.mxu0 %v8455_v27 }
 0x251   :  { %v8599_v53 = vpack.c.bf16 %v3330_v34, %v3314_v30  ;;  %v8601_v49 = vpack.c.bf16 %v3329_v19, %v3313_v4  ;;  %4225 = vmatprep.subr.bf16.mxu1 %v8460_v10  ;;  %v2444_v2 = vpop.f32.mrb[156].mxu0  ;;  %5721 = vmatprep.mubr.msk.bf16.mxu0 %vm3745_vm2, %v8371_v52 }
 0x252   :  { %v8606_v51 = vpack.c.bf16 %v3331_v57, %v3315_v37  ;;  %v2445_v47 = vadd.f32 %v2444_v2, %v9457_v13  ;;  %v2615_v35 = vpop.f32.mrb[156].mxu1  ;;  %v2446_v50 = vpop.f32.mrb[157].mxu0  ;;  %5727 = vmatprep.mubr.msk.bf16.mxu1 %vm3745_vm2, %v8371_v52 }
 0x253   :  { %v2616_v33 = vadd.f32 %v2615_v35, %v9457_v13  ;;  %v2447_v27 = vadd.f32 %v2446_v50, %v9457_v13  ;;  %v2617_v43 = vpop.f32.mrb[157].mxu1  ;;  %4145 = vmatpush1.bf16.msra.mxu0 %v8449_v60  ;;  %v2448_v10 = vpop.f32.mrb[158].mxu0  ;;  %v9460_v35 = vld [vmem:[#allocation45_spill] sm:$0xff] }
 0x254   :  { %v2618_v23 = vadd.f32 %v2617_v43, %v9457_v13  ;;  %4226 = vmatpush1.bf16.msra.mxu1 %v8453_v15  ;;  %v2449_v41 = vadd.f32 %v2448_v10, %v9458_v46  ;;  %v2619_v29 = vpop.f32.mrb[158].mxu1  ;;  %4146 = vmatprep.subr.bf16.mxu0 %v8491_v3  ;;  %v2450_v40 = vpop.f32.mrb[159].mxu0  ;;  %v3344_v11 = vmax.f32 %v2445_v47, 0.0 }
 0x255   :  { %v2620_v52 = vadd.f32 %v2619_v29, %v9458_v46  ;;  %4227 = vmatprep.subr.bf16.mxu1 %v8494_v24  ;;  %v2451_v5 = vadd.f32 %v2450_v40, %v9458_v46  ;;  %v2621_v45 = vpop.f32.mrb[159].mxu1  ;;  %v3346_v15 = vmax.f32 %v2616_v33, 0.0  ;;  %v3345_v61 = vmax.f32 %v2447_v27, 0.0 }
 0x256   :  { %v3360_v60 = vmax.f32 %v2449_v41, 0.0  ;;  %v2622_v1 = vadd.f32 %v2621_v45, %v9458_v46  ;;  %4035 = vmatmul.mubr.bf16.gmra.mrb[0].mxu0 %v8396_v54  ;;  %v3347_v3 = vmax.f32 %v2618_v23, 0.0 }
 0x257   :  { %v3362_v32 = vmax.f32 %v2620_v52, 0.0  ;;  %v3361_v9 = vmax.f32 %v2451_v5, 0.0  ;;  %4116 = vmatmul.mubr.bf16.gmra.mrb[0].mxu1 %v8396_v54  ;;  %4147 = vmatpush1.bf16.msra.mxu0 %v8485_v55  ;;  %v9459_v55 = vld [vmem:[#allocation41_spill] sm:$0xff] }
 0x258   :  { %v8625_v6 = vpack.c.bf16 %v3360_v60, %v3344_v11  ;;  %v3363_v24 = vmax.f32 %v2622_v1, 0.0  ;;  %4228 = vmatpush1.bf16.msra.mxu1 %v8489_v44  ;;  %4148 = vmatprep.subr.bf16.mxu0 %v8515_v56 }
 0x259   :  { %v8629_v30 = vpack.c.bf16 %v3362_v32, %v3346_v15  ;;  %v8631_v4 = vpack.c.bf16 %v3361_v9, %v3345_v61  ;;  %4229 = vmatprep.subr.bf16.mxu1 %v8518_v26  ;;  %v2454_v34 = vpop.f32.mrb[160].mxu0  ;;  %5722 = vmatprep.mubr.msk.bf16.mxu0 %vm3745_vm2, %v8411_v63  ;;  %v8665_v15 = vld [vmem:[%s9202_s3 + $0x4] ss:$8 sps:$4 sm:$0xff]  }
 0x25a   :  { %v8636_v54 = vpack.c.bf16 %v3363_v24, %v3347_v3  ;;  %v2455_v19 = vadd.f32 %v2454_v34, %v9459_v55  ;;  %v2625_v37 = vpop.f32.mrb[160].mxu1  ;;  %v2456_v57 = vpop.f32.mrb[161].mxu0  ;;  %5728 = vmatprep.mubr.msk.bf16.mxu1 %vm3745_vm2, %v8411_v63 }
 0x25b   :  { %v2626_v44 = vadd.f32 %v2625_v37, %v9459_v55  ;;  %v2457_v56 = vadd.f32 %v2456_v57, %v9459_v55  ;;  %v2627_v2 = vpop.f32.mrb[161].mxu1  ;;  %4149 = vmatpush1.bf16.msra.mxu0 %v8509_v0  ;;  %v2458_v26 = vpop.f32.mrb[162].mxu0 }
 0x25c   :  { %v2628_v47 = vadd.f32 %v2627_v2, %v9459_v55  ;;  %4230 = vmatpush1.bf16.msra.mxu1 %v8513_v48  ;;  %v2459_v50 = vadd.f32 %v2458_v26, %v9460_v35  ;;  %v2629_v33 = vpop.f32.mrb[162].mxu1  ;;  %4150 = vmatprep.subr.bf16.mxu0 %v8541_v42  ;;  %v2460_v27 = vpop.f32.mrb[163].mxu0  ;;  %v3376_v41 = vmax.f32 %v2455_v19, 0.0 }
 0x25d   :  { %v2630_v43 = vadd.f32 %v2629_v33, %v9460_v35  ;;  %4231 = vmatprep.subr.bf16.mxu1 %v8546_v22  ;;  %v2461_v10 = vadd.f32 %v2460_v27, %v9460_v35  ;;  %v2631_v23 = vpop.f32.mrb[163].mxu1  ;;  %v3378_v48 = vmax.f32 %v2626_v44, 0.0  ;;  %v3377_v40 = vmax.f32 %v2457_v56, 0.0  ;;  %v9461_v56 = vld [vmem:[#allocation6_spill] sm:$0xff] }
 0x25e   :  { %v3392_v0 = vmax.f32 %v2459_v50, 0.0  ;;  %v2632_v29 = vadd.f32 %v2631_v23, %v9460_v35  ;;  %4045 = vmatmul.mubr.bf16.gmra.mrb[4].mxu0 %v8433_v38  ;;  %v3379_v42 = vmax.f32 %v2628_v47, 0.0 }
 0x25f   :  { %v3394_v52 = vmax.f32 %v2630_v43, 0.0  ;;  %v3393_v5 = vmax.f32 %v2461_v10, 0.0  ;;  %4126 = vmatmul.mubr.bf16.gmra.mrb[4].mxu1 %v8433_v38  ;;  %4151 = vmatpush1.bf16.msra.mxu0 %v8535_v31 }
 0x260   :  { %v8655_v45 = vpack.c.bf16 %v3392_v0, %v3376_v41  ;;  %v3395_v22 = vmax.f32 %v2632_v29, 0.0  ;;  %4232 = vmatpush1.bf16.msra.mxu1 %v8539_v58  ;;  %4152 = vmatprep.subr.bf16.mxu0 %v8571_v36 }
 0x261   :  { %v8659_v11 = vpack.c.bf16 %v3394_v52, %v3378_v48  ;;  %v3626_v60 = vpack.c.bf16 %v3393_v5, %v3377_v40  ;;  %4233 = vmatprep.subr.bf16.mxu1 %v8576_v14  ;;  %v2464_v1 = vpop.f32.mrb[164].mxu0  ;;  %5730 = vmatprep.mubr.msk.bf16.mxu0 %vm3745_vm2, %v8665_v15 }
 0x262   :  { %v3628_v31 = vpack.c.bf16 %v3395_v22, %v3379_v42  ;;  %v2635_v61 = vpop.f32.mrb[164].mxu1  ;;  %v2466_v32 = vpop.f32.mrb[165].mxu0  ;;  %5736 = vmatprep.mubr.msk.bf16.mxu1 %vm3745_vm2, %v8665_v15  ;;  %v2465_v14 = vadd.f32 %v2464_v1, %v9426_v7 }
 0x263   :  { %v2637_v58 = vpop.f32.mrb[165].mxu1  ;;  %4153 = vmatpush1.bf16.msra.mxu0 %v8565_v59  ;;  %v2468_v36 = vpop.f32.mrb[166].mxu0  ;;  %v2636_v24 = vadd.f32 %v2635_v61, %v9426_v7  ;;  %v2467_v34 = vadd.f32 %v2466_v32, %v9426_v7 }
 0x264   :  { %4234 = vmatpush1.bf16.msra.mxu1 %v8569_v28  ;;  %v2639_v9 = vpop.f32.mrb[166].mxu1  ;;  %4154 = vmatprep.subr.bf16.mxu0 %v8601_v49  ;;  %v2469_v3 = vpop.f32.mrb[167].mxu0  ;;  %v2638_v37 = vadd.f32 %v2637_v58, %v9426_v7  ;;  %v3408_v59 = vmax.f32 %v2465_v14, 0.0 }
 0x265   :  { %4235 = vmatprep.subr.bf16.mxu1 %v8606_v51  ;;  %v2640_v19 = vpop.f32.mrb[167].mxu1  ;;  %v3410_v28 = vmax.f32 %v2636_v24, 0.0  ;;  %v3409_v57 = vmax.f32 %v2467_v34, 0.0  ;;  %v9463_v9 = vld [vmem:[#allocation8_spill] sm:$0xff] }
 0x266   :  { %v3411_v44 = vmax.f32 %v2638_v37, 0.0  ;;  %v3641_v33 = vpack.c.bf16 %v3408_v59, %v3408_v59 }
 0x267   :  { %4155 = vmatpush1.bf16.msra.mxu0 %v8595_v8  ;;  %v3643_v23 = vpack.c.bf16 %v3410_v28, %v3410_v28  ;;  %v3642_v41 = vpack.c.bf16 %v3409_v57, %v3409_v57 }
 0x268   :  { %4236 = vmatpush1.bf16.msra.mxu1 %v8599_v53  ;;  %4156 = vmatprep.subr.bf16.mxu0 %v8631_v4  ;;  %v3787_v19 = vsel %vm3761_vm1, %v3641_v33, 0 }
 0x269   :  { %4237 = vmatprep.subr.bf16.mxu1 %v8636_v54  ;;  %v2676_v49 = vpop.f32.mrb[168].mxu0  ;;  %v9462_v54 = vld [vmem:[#allocation7_spill] sm:$0xff] }
 0x26a   :  { %v2677_v2 = vadd.f32 %v2676_v49, %v9461_v56  ;;  %v2847_v26 = vpop.f32.mrb[168].mxu1  ;;  %v2678_v51 = vpop.f32.mrb[169].mxu0 }
 0x26b   :  { %v2848_v47 = vadd.f32 %v2847_v26, %v9461_v56  ;;  %v2679_v50 = vadd.f32 %v2678_v51, %v9461_v56  ;;  %v2849_v8 = vpop.f32.mrb[169].mxu1  ;;  %4157 = vmatpush1.bf16.msra.mxu0 %v8625_v6  ;;  %v2680_v53 = vpop.f32.mrb[170].mxu0  ;;  %v3644_v6 = vpack.c.bf16 %v3411_v44, %v3411_v44 }
 0x26c   :  { %v2850_v4 = vadd.f32 %v2849_v8, %v9461_v56  ;;  %4238 = vmatpush1.bf16.msra.mxu1 %v8629_v30  ;;  %v2681_v27 = vadd.f32 %v2680_v53, %v9462_v54  ;;  %v2851_v43 = vpop.f32.mrb[170].mxu1  ;;  %4158 = vmatprep.subr.bf16.mxu0 %v3626_v60  ;;  %v2682_v10 = vpop.f32.mrb[171].mxu0  ;;  %v2996_v40 = vmax.f32 %v2677_v2, 0.0  ;;  %v8710_v53 = vld [vmem:[%s9202_s3] ss:$8 sps:$4 sm:$0xff]  }
 0x26d   :  { %v2852_v0 = vadd.f32 %v2851_v43, %v9462_v54  ;;  %4239 = vmatprep.subr.bf16.mxu1 %v3628_v31  ;;  %v2683_v29 = vadd.f32 %v2682_v10, %v9462_v54  ;;  %v2853_v48 = vpop.f32.mrb[171].mxu1  ;;  %v2998_v42 = vmax.f32 %v2848_v47, 0.0  ;;  %v2997_v30 = vmax.f32 %v2679_v50, 0.0 }
 0x26e   :  { %v3012_v52 = vmax.f32 %v2681_v27, 0.0  ;;  %v2854_v5 = vadd.f32 %v2853_v48, %v9462_v54  ;;  %v2999_v60 = vmax.f32 %v2850_v4, 0.0 }
 0x26f   :  { %v3014_v22 = vmax.f32 %v2852_v0, 0.0  ;;  %v3013_v1 = vmax.f32 %v2683_v29, 0.0  ;;  %4159 = vmatpush1.bf16.msra.mxu0 %v8655_v45 }
 0x270   :  { %v3437_v61 = vpack.c.bf16 %v3012_v52, %v2996_v40  ;;  %v3015_v32 = vmax.f32 %v2854_v5, 0.0  ;;  %4240 = vmatpush1.bf16.msra.mxu1 %v8659_v11  ;;  %5729 = vmatprep.subr.msk.bf16.mxu0 %vm3761_vm1, %v3642_v41  ;;  %v3793_v11 = vsel %vm3761_vm1, %v3643_v23, 0 }
 0x271   :  { %v3439_v31 = vpack.c.bf16 %v3014_v22, %v2998_v42  ;;  %v3438_v58 = vpack.c.bf16 %v3013_v1, %v2997_v30  ;;  %5735 = vmatprep.subr.msk.bf16.mxu1 %vm3761_vm1, %v3644_v6  ;;  %v2686_v36 = vpop.f32.mrb[172].mxu0 }
 0x272   :  { %v3440_v14 = vpack.c.bf16 %v3015_v32, %v2999_v60  ;;  %v2687_v3 = vadd.f32 %v2686_v36, %v9463_v9  ;;  %v2857_v24 = vpop.f32.mrb[172].mxu1  ;;  %v2688_v34 = vpop.f32.mrb[173].mxu0  ;;  %v9464_v60 = vld [vmem:[#allocation9_spill] sm:$0xff] }
 0x273   :  { %v2858_v45 = vadd.f32 %v2857_v24, %v9463_v9  ;;  %v2689_v37 = vadd.f32 %v2688_v34, %v9463_v9  ;;  %v2859_v59 = vpop.f32.mrb[173].mxu1  ;;  %4161 = vmatpush1.bf16.msra.mxu0 %v3787_v19  ;;  %v2690_v28 = vpop.f32.mrb[174].mxu0 }
 0x274   :  { %v2860_v57 = vadd.f32 %v2859_v59, %v9463_v9  ;;  %4242 = vmatpush1.bf16.msra.mxu1 %v3793_v11  ;;  %v2691_v49 = vadd.f32 %v2690_v28, %v7354_v17  ;;  %v2861_v44 = vpop.f32.mrb[174].mxu1  ;;  %4296 = vmatprep.subr.bf16.mxu0 %v3438_v58  ;;  %v2692_v56 = vpop.f32.mrb[175].mxu0  ;;  %v3028_v47 = vmax.f32 %v2687_v3, 0.0  ;;  %v8741_v59 = vld [vmem:[%s9202_s3 + $0x24] ss:$8 sps:$4 sm:$0xff]  }
 0x275   :  { %v2862_v2 = vadd.f32 %v2861_v44, %v7354_v17  ;;  %4377 = vmatprep.subr.bf16.mxu1 %v3440_v14  ;;  %v2693_v26 = vadd.f32 %v2692_v56, %v7354_v17  ;;  %v2863_v51 = vpop.f32.mrb[175].mxu1  ;;  %v3030_v33 = vmax.f32 %v2858_v45, 0.0  ;;  %v3029_v4 = vmax.f32 %v2689_v37, 0.0 }
 0x276   :  { %v3044_v50 = vmax.f32 %v2691_v49, 0.0  ;;  %v2864_v8 = vadd.f32 %v2863_v51, %v7354_v17  ;;  %4167 = vmatmul.mubr.bf16.vlgmr.msra.gmra.mrb[8].mxu0 %v8710_v53  ;;  %v3031_v43 = vmax.f32 %v2860_v57, 0.0  ;;  %v8717_v17 = vld [vmem:[%s9202_s3 + $0x14] ss:$8 sps:$4 sm:$0xff]  }
 0x277   :  { %v3046_v54 = vmax.f32 %v2862_v2, 0.0  ;;  %v3045_v27 = vmax.f32 %v2693_v26, 0.0  ;;  %4248 = vmatmul.mubr.bf16.vlgmr.msra.gmra.mrb[8].mxu1 %v8710_v53  ;;  %4297 = vmatpush1.bf16.msra.mxu0 %v3437_v61  ;;  %v9465_v26 = vld [vmem:[#allocation10_spill] sm:$0xff] }
 0x278   :  { %v3453_v10 = vpack.c.bf16 %v3044_v50, %v3028_v47  ;;  %v3047_v23 = vmax.f32 %v2864_v8, 0.0  ;;  %4378 = vmatpush1.bf16.msra.mxu1 %v3439_v31  ;;  %5731 = vmatprep.mubr.msk.bf16.mxu0 %vm3745_vm2, %v8717_v17 }
 0x279   :  { %v3455_v41 = vpack.c.bf16 %v3046_v54, %v3030_v33  ;;  %v3454_v0 = vpack.c.bf16 %v3045_v27, %v3029_v4  ;;  %v2696_v29 = vpop.f32.mrb[176].mxu0  ;;  %5737 = vmatprep.mubr.msk.bf16.mxu1 %vm3745_vm2, %v8717_v17 }
 0x27a   :  { %v3456_v48 = vpack.c.bf16 %v3047_v23, %v3031_v43  ;;  %v2697_v6 = vadd.f32 %v2696_v29, %v7381_v21  ;;  %v2867_v40 = vpop.f32.mrb[176].mxu1  ;;  %v2698_v52 = vpop.f32.mrb[177].mxu0  ;;  %v9466_v43 = vld [vmem:[#allocation11_spill] sm:$0xff] }
 0x27b   :  { %v2868_v5 = vadd.f32 %v2867_v40, %v7381_v21  ;;  %v2699_v42 = vadd.f32 %v2698_v52, %v7381_v21  ;;  %v2869_v30 = vpop.f32.mrb[177].mxu1  ;;  %v2700_v22 = vpop.f32.mrb[178].mxu0  ;;  %4298 = vmatprep.subr.bf16.mxu0 %v3454_v0 }
 0x27c   :  { %v2870_v1 = vadd.f32 %v2869_v30, %v7381_v21  ;;  %v2701_v61 = vadd.f32 %v2700_v22, %v9464_v60  ;;  %v2871_v32 = vpop.f32.mrb[178].mxu1  ;;  %4379 = vmatprep.subr.bf16.mxu1 %v3456_v48  ;;  %v2702_v31 = vpop.f32.mrb[179].mxu0  ;;  %4299 = vmatpush1.bf16.msra.mxu0 %v3453_v10  ;;  %v3060_v9 = vmax.f32 %v2697_v6, 0.0  ;;  %v8734_v21 = vld [vmem:[%s9202_s3 + $0x10] ss:$8 sps:$4 sm:$0xff]  }
 0x27d   :  { %v2872_v58 = vadd.f32 %v2871_v32, %v9464_v60  ;;  %v2703_v36 = vadd.f32 %v2702_v31, %v9464_v60  ;;  %v2873_v14 = vpop.f32.mrb[179].mxu1  ;;  %4380 = vmatpush1.bf16.msra.mxu1 %v3455_v41  ;;  %v3062_v34 = vmax.f32 %v2868_v5, 0.0  ;;  %v3061_v19 = vmax.f32 %v2699_v42, 0.0  ;;  %v8758_v5 = vld [vmem:[%s9202_s3 + $0x20] ss:$8 sps:$4 sm:$0xff]  }
 0x27e   :  { %v3076_v3 = vmax.f32 %v2701_v61, 0.0  ;;  %v2874_v24 = vadd.f32 %v2873_v14, %v9464_v60  ;;  %4177 = vmatmul.mubr.bf16.gmra.mrb[12].mxu0 %v8734_v21  ;;  %v3063_v11 = vmax.f32 %v2870_v1, 0.0  ;;  %v8765_v60 = vld [vmem:[%s9202_s3 + $0x34] ss:$8 sps:$4 sm:$0xff]  }
 0x27f   :  { %v3078_v45 = vmax.f32 %v2872_v58, 0.0  ;;  %v3077_v37 = vmax.f32 %v2703_v36, 0.0  ;;  %4258 = vmatmul.mubr.bf16.gmra.mrb[12].mxu1 %v8734_v21  ;;  %5732 = vmatprep.mubr.msk.bf16.mxu0 %vm3745_vm2, %v8741_v59 }
 0x280   :  { %v3469_v28 = vpack.c.bf16 %v3076_v3, %v3060_v9  ;;  %v3079_v57 = vmax.f32 %v2874_v24, 0.0  ;;  %5738 = vmatprep.mubr.msk.bf16.mxu1 %vm3745_vm2, %v8741_v59  ;;  %v9467_v3 = vld [vmem:[#allocation12_spill] sm:$0xff] }
 0x281   :  { %v3471_v49 = vpack.c.bf16 %v3078_v45, %v3062_v34  ;;  %v3470_v44 = vpack.c.bf16 %v3077_v37, %v3061_v19  ;;  %v2706_v56 = vpop.f32.mrb[180].mxu0 }
 0x282   :  { %v3472_v2 = vpack.c.bf16 %v3079_v57, %v3063_v11  ;;  %v2707_v51 = vadd.f32 %v2706_v56, %v9465_v26  ;;  %v2877_v47 = vpop.f32.mrb[180].mxu1  ;;  %v2708_v50 = vpop.f32.mrb[181].mxu0 }
 0x283   :  { %v2878_v8 = vadd.f32 %v2877_v47, %v9465_v26  ;;  %v2709_v33 = vadd.f32 %v2708_v50, %v9465_v26  ;;  %v2879_v4 = vpop.f32.mrb[181].mxu1  ;;  %v2710_v54 = vpop.f32.mrb[182].mxu0  ;;  %4300 = vmatprep.subr.bf16.mxu0 %v3470_v44 }
 0x284   :  { %v2880_v27 = vadd.f32 %v2879_v4, %v9465_v26  ;;  %v2711_v10 = vadd.f32 %v2710_v54, %v9466_v43  ;;  %v2881_v23 = vpop.f32.mrb[182].mxu1  ;;  %4381 = vmatprep.subr.bf16.mxu1 %v3472_v2  ;;  %v2712_v41 = vpop.f32.mrb[183].mxu0  ;;  %4301 = vmatpush1.bf16.msra.mxu0 %v3469_v28  ;;  %v3092_v6 = vmax.f32 %v2707_v51, 0.0  ;;  %v8782_v4 = vld [vmem:[%s9202_s3 + $0x30] ss:$8 sps:$4 sm:$0xff]  }
 0x285   :  { %v2882_v0 = vadd.f32 %v2881_v23, %v9466_v43  ;;  %v2713_v29 = vadd.f32 %v2712_v41, %v9466_v43  ;;  %v2883_v48 = vpop.f32.mrb[183].mxu1  ;;  %4382 = vmatpush1.bf16.msra.mxu1 %v3471_v49  ;;  %v3094_v42 = vmax.f32 %v2878_v8, 0.0  ;;  %v3093_v30 = vmax.f32 %v2709_v33, 0.0  ;;  %v9468_v49 = vld [vmem:[#allocation13_spill] sm:$0xff] }
 0x286   :  { %v3108_v40 = vmax.f32 %v2711_v10, 0.0  ;;  %v2884_v52 = vadd.f32 %v2883_v48, %v9466_v43  ;;  %4187 = vmatmul.mubr.bf16.gmra.mrb[16].mxu0 %v8758_v5  ;;  %v3095_v61 = vmax.f32 %v2880_v27, 0.0 }
 0x287   :  { %v3110_v22 = vmax.f32 %v2882_v0, 0.0  ;;  %v3109_v1 = vmax.f32 %v2713_v29, 0.0  ;;  %4268 = vmatmul.mubr.bf16.gmra.mrb[16].mxu1 %v8758_v5  ;;  %5733 = vmatprep.mubr.msk.bf16.mxu0 %vm3745_vm2, %v8765_v60 }
 0x288   :  { %v3485_v32 = vpack.c.bf16 %v3108_v40, %v3092_v6  ;;  %v3111_v31 = vmax.f32 %v2884_v52, 0.0  ;;  %5739 = vmatprep.mubr.msk.bf16.mxu1 %vm3745_vm2, %v8765_v60  ;;  %v9469_v52 = vld [vmem:[#allocation14_spill] sm:$0xff] }
 0x289   :  { %v3487_v58 = vpack.c.bf16 %v3110_v22, %v3094_v42  ;;  %v3486_v36 = vpack.c.bf16 %v3109_v1, %v3093_v30  ;;  %v2716_v14 = vpop.f32.mrb[184].mxu0 }
 0x28a   :  { %v3488_v9 = vpack.c.bf16 %v3111_v31, %v3095_v61  ;;  %v2717_v24 = vadd.f32 %v2716_v14, %v9467_v3  ;;  %v2887_v34 = vpop.f32.mrb[184].mxu1  ;;  %v2718_v19 = vpop.f32.mrb[185].mxu0 }
 0x28b   :  { %v2888_v45 = vadd.f32 %v2887_v34, %v9467_v3  ;;  %v2719_v37 = vadd.f32 %v2718_v19, %v9467_v3  ;;  %v2889_v11 = vpop.f32.mrb[185].mxu1  ;;  %v2720_v28 = vpop.f32.mrb[186].mxu0  ;;  %4302 = vmatprep.subr.bf16.mxu0 %v3486_v36  ;;  %v9470_v36 = vld [vmem:[#allocation15_spill] sm:$0xff] }
 0x28c   :  { %v2890_v57 = vadd.f32 %v2889_v11, %v9467_v3  ;;  %v2721_v44 = vadd.f32 %v2720_v28, %v9468_v49  ;;  %v2891_v56 = vpop.f32.mrb[186].mxu1  ;;  %4383 = vmatprep.subr.bf16.mxu1 %v3488_v9  ;;  %v2722_v2 = vpop.f32.mrb[187].mxu0  ;;  %4303 = vmatpush1.bf16.msra.mxu0 %v3485_v32  ;;  %v3124_v50 = vmax.f32 %v2717_v24, 0.0 }
 0x28d   :  { %v2892_v26 = vadd.f32 %v2891_v56, %v9468_v49  ;;  %v2723_v51 = vadd.f32 %v2722_v2, %v9468_v49  ;;  %v2893_v47 = vpop.f32.mrb[187].mxu1  ;;  %4384 = vmatpush1.bf16.msra.mxu1 %v3487_v58  ;;  %v3126_v54 = vmax.f32 %v2888_v45, 0.0  ;;  %v3125_v27 = vmax.f32 %v2719_v37, 0.0 }
 0x28e   :  { %v3140_v8 = vmax.f32 %v2721_v44, 0.0  ;;  %v2894_v33 = vadd.f32 %v2893_v47, %v9468_v49  ;;  %4197 = vmatmul.mubr.bf16.gmra.mrb[20].mxu0 %v8782_v4  ;;  %v3127_v23 = vmax.f32 %v2890_v57, 0.0 }
 0x28f   :  { %v3142_v43 = vmax.f32 %v2892_v26, 0.0  ;;  %v3141_v10 = vmax.f32 %v2723_v51, 0.0  ;;  %4278 = vmatmul.mubr.bf16.gmra.mrb[20].mxu1 %v8782_v4  ;;  %5734 = vmatprep.mubr.msk.bf16.mxu0 %vm3745_vm2, %v8411_v63 }
 0x290   :  { %v3501_v41 = vpack.c.bf16 %v3140_v8, %v3124_v50  ;;  %v3143_v0 = vmax.f32 %v2894_v33, 0.0  ;;  %5740 = vmatprep.mubr.msk.bf16.mxu1 %vm3745_vm2, %v8411_v63  ;;  %v9471_v33 = vld [vmem:[#allocation16_spill] sm:$0xff] }
 0x291   :  { %v3503_v29 = vpack.c.bf16 %v3142_v43, %v3126_v54  ;;  %v3502_v48 = vpack.c.bf16 %v3141_v10, %v3125_v27  ;;  %v2726_v6 = vpop.f32.mrb[188].mxu0 }
 0x292   :  { %v3504_v40 = vpack.c.bf16 %v3143_v0, %v3127_v23  ;;  %v2727_v42 = vadd.f32 %v2726_v6, %v9469_v52  ;;  %v2897_v30 = vpop.f32.mrb[188].mxu1  ;;  %v2728_v22 = vpop.f32.mrb[189].mxu0 }
 0x293   :  { %v2898_v1 = vadd.f32 %v2897_v30, %v9469_v52  ;;  %v2729_v61 = vadd.f32 %v2728_v22, %v9469_v52  ;;  %v2899_v32 = vpop.f32.mrb[189].mxu1  ;;  %v2730_v31 = vpop.f32.mrb[190].mxu0  ;;  %4304 = vmatprep.subr.bf16.mxu0 %v3502_v48  ;;  %v9472_v48 = vld [vmem:[#allocation18_spill] sm:$0xff] }
 0x294   :  { %v2900_v58 = vadd.f32 %v2899_v32, %v9469_v52  ;;  %v2731_v14 = vadd.f32 %v2730_v31, %v9470_v36  ;;  %v2901_v9 = vpop.f32.mrb[190].mxu1  ;;  %4385 = vmatprep.subr.bf16.mxu1 %v3504_v40  ;;  %v2732_v3 = vpop.f32.mrb[191].mxu0  ;;  %4305 = vmatpush1.bf16.msra.mxu0 %v3501_v41  ;;  %v3156_v45 = vmax.f32 %v2727_v42, 0.0 }
 0x295   :  { %v2902_v24 = vadd.f32 %v2901_v9, %v9470_v36  ;;  %v2733_v34 = vadd.f32 %v2732_v3, %v9470_v36  ;;  %v2903_v19 = vpop.f32.mrb[191].mxu1  ;;  %4386 = vmatpush1.bf16.msra.mxu1 %v3503_v29  ;;  %v3158_v28 = vmax.f32 %v2898_v1, 0.0  ;;  %v3157_v57 = vmax.f32 %v2729_v61, 0.0 }
 0x296   :  { %v3172_v37 = vmax.f32 %v2731_v14, 0.0  ;;  %v2904_v11 = vadd.f32 %v2903_v19, %v9470_v36  ;;  %4207 = vmatmul.mubr.bf16.gmra.mrb[24].mxu0 %v8433_v38  ;;  %v3159_v56 = vmax.f32 %v2900_v58, 0.0 }
 0x297   :  { %v3174_v49 = vmax.f32 %v2902_v24, 0.0  ;;  %v3173_v44 = vmax.f32 %v2733_v34, 0.0  ;;  %4288 = vmatmul.mubr.bf16.gmra.mrb[24].mxu1 %v8433_v38  ;;  %5742 = vmatprep.mubr.msk.bf16.mxu0 %vm3745_vm2, %v8665_v15 }
 0x298   :  { %v3517_v2 = vpack.c.bf16 %v3172_v37, %v3156_v45  ;;  %v3175_v26 = vmax.f32 %v2904_v11, 0.0  ;;  %5748 = vmatprep.mubr.msk.bf16.mxu1 %vm3745_vm2, %v8665_v15  ;;  %v9473_v37 = vld [vmem:[#allocation19_spill] sm:$0xff] }
 0x299   :  { %v3519_v51 = vpack.c.bf16 %v3174_v49, %v3158_v28  ;;  %v3518_v47 = vpack.c.bf16 %v3173_v44, %v3157_v57  ;;  %v2736_v50 = vpop.f32.mrb[192].mxu0 }
 0x29a   :  { %v3520_v8 = vpack.c.bf16 %v3175_v26, %v3159_v56  ;;  %v2737_v54 = vadd.f32 %v2736_v50, %v9471_v33  ;;  %v2907_v27 = vpop.f32.mrb[192].mxu1  ;;  %v2738_v43 = vpop.f32.mrb[193].mxu0 }
 0x29b   :  { %v2908_v10 = vadd.f32 %v2907_v27, %v9471_v33  ;;  %v2739_v23 = vadd.f32 %v2738_v43, %v9471_v33  ;;  %v2909_v41 = vpop.f32.mrb[193].mxu1  ;;  %v2740_v0 = vpop.f32.mrb[194].mxu0  ;;  %4306 = vmatprep.subr.bf16.mxu0 %v3518_v47 }
 0x29c   :  { %v2910_v29 = vadd.f32 %v2909_v41, %v9471_v33  ;;  %v2741_v6 = vadd.f32 %v2740_v0, %v9472_v48  ;;  %v2911_v15 = vpop.f32.mrb[194].mxu1  ;;  %4387 = vmatprep.subr.bf16.mxu1 %v3520_v8  ;;  %v2742_v40 = vpop.f32.mrb[195].mxu0  ;;  %4307 = vmatpush1.bf16.msra.mxu0 %v3517_v2  ;;  %v3188_v22 = vmax.f32 %v2737_v54, 0.0 }
 0x29d   :  { %v2912_v52 = vadd.f32 %v2911_v15, %v9472_v48  ;;  %v2743_v42 = vadd.f32 %v2742_v40, %v9472_v48  ;;  %v2913_v30 = vpop.f32.mrb[195].mxu1  ;;  %4388 = vmatpush1.bf16.msra.mxu1 %v3519_v51  ;;  %v3190_v32 = vmax.f32 %v2908_v10, 0.0  ;;  %v3189_v31 = vmax.f32 %v2739_v23, 0.0 }
 0x29e   :  { %v3204_v1 = vmax.f32 %v2741_v6, 0.0  ;;  %v2914_v61 = vadd.f32 %v2913_v30, %v9472_v48  ;;  %v3191_v14 = vmax.f32 %v2910_v29, 0.0 }
 0x29f   :  { %v3206_v58 = vmax.f32 %v2912_v52, 0.0  ;;  %v3205_v36 = vmax.f32 %v2743_v42, 0.0 }
 0x2a0   :  { %v3533_v9 = vpack.c.bf16 %v3204_v1, %v3188_v22  ;;  %v3207_v3 = vmax.f32 %v2914_v61, 0.0 }
 0x2a1   :  { %v3535_v24 = vpack.c.bf16 %v3206_v58, %v3190_v32  ;;  %v3534_v34 = vpack.c.bf16 %v3205_v36, %v3189_v31  ;;  %v2746_v19 = vpop.f32.mrb[196].mxu0 }
 0x2a2   :  { %v3536_v45 = vpack.c.bf16 %v3207_v3, %v3191_v14  ;;  %v2747_v11 = vadd.f32 %v2746_v19, %v9473_v37  ;;  %v2917_v28 = vpop.f32.mrb[196].mxu1  ;;  %v2748_v57 = vpop.f32.mrb[197].mxu0 }
 0x2a3   :  { %v2918_v49 = vadd.f32 %v2917_v28, %v9473_v37  ;;  %v2749_v44 = vadd.f32 %v2748_v57, %v9473_v37  ;;  %v2919_v56 = vpop.f32.mrb[197].mxu1  ;;  %v2750_v2 = vpop.f32.mrb[198].mxu0  ;;  %4308 = vmatprep.subr.bf16.mxu0 %v3534_v34 }
 0x2a4   :  { %v2920_v26 = vadd.f32 %v2919_v56, %v9473_v37  ;;  %v2751_v51 = vadd.f32 %v2750_v2, %v9442_v62  ;;  %v2921_v47 = vpop.f32.mrb[198].mxu1  ;;  %4389 = vmatprep.subr.bf16.mxu1 %v3536_v45  ;;  %v2752_v50 = vpop.f32.mrb[199].mxu0  ;;  %4309 = vmatpush1.bf16.msra.mxu0 %v3533_v9  ;;  %v3220_v27 = vmax.f32 %v2747_v11, 0.0 }
 0x2a5   :  { %v2922_v8 = vadd.f32 %v2921_v47, %v9442_v62  ;;  %v2753_v33 = vadd.f32 %v2752_v50, %v9442_v62  ;;  %v2923_v54 = vpop.f32.mrb[199].mxu1  ;;  %4390 = vmatpush1.bf16.msra.mxu1 %v3535_v24  ;;  %v3222_v23 = vmax.f32 %v2918_v49, 0.0  ;;  %v3221_v41 = vmax.f32 %v2749_v44, 0.0 }
 0x2a6   :  { %v3236_v43 = vmax.f32 %v2751_v51, 0.0  ;;  %v2924_v10 = vadd.f32 %v2923_v54, %v9442_v62  ;;  %v3223_v48 = vmax.f32 %v2920_v26, 0.0 }
 0x2a7   :  { %v3238_v0 = vmax.f32 %v2922_v8, 0.0  ;;  %v3237_v29 = vmax.f32 %v2753_v33, 0.0 }
 0x2a8   :  { %v3549_v6 = vpack.c.bf16 %v3236_v43, %v3220_v27  ;;  %v3239_v15 = vmax.f32 %v2924_v10, 0.0 }
 0x2a9   :  { %v3551_v40 = vpack.c.bf16 %v3238_v0, %v3222_v23  ;;  %v3550_v52 = vpack.c.bf16 %v3237_v29, %v3221_v41  ;;  %v2756_v42 = vpop.f32.mrb[200].mxu0 }
 0x2aa   :  { %v3552_v30 = vpack.c.bf16 %v3239_v15, %v3223_v48  ;;  %v2757_v22 = vadd.f32 %v2756_v42, %v9447_v12  ;;  %v2927_v1 = vpop.f32.mrb[200].mxu1  ;;  %v2758_v61 = vpop.f32.mrb[201].mxu0 }
 0x2ab   :  { %v2928_v32 = vadd.f32 %v2927_v1, %v9447_v12  ;;  %v2759_v31 = vadd.f32 %v2758_v61, %v9447_v12  ;;  %v2929_v62 = vpop.f32.mrb[201].mxu1  ;;  %v2760_v58 = vpop.f32.mrb[202].mxu0  ;;  %4310 = vmatprep.subr.bf16.mxu0 %v3550_v52 }
 0x2ac   :  { %v2930_v36 = vadd.f32 %v2929_v62, %v9447_v12  ;;  %v2761_v14 = vadd.f32 %v2760_v58, %v9448_v25  ;;  %v2931_v9 = vpop.f32.mrb[202].mxu1  ;;  %4391 = vmatprep.subr.bf16.mxu1 %v3552_v30  ;;  %v2762_v3 = vpop.f32.mrb[203].mxu0  ;;  %4311 = vmatpush1.bf16.msra.mxu0 %v3549_v6  ;;  %v3252_v45 = vmax.f32 %v2757_v22, 0.0 }
 0x2ad   :  { %v2932_v24 = vadd.f32 %v2931_v9, %v9448_v25  ;;  %v2763_v34 = vadd.f32 %v2762_v3, %v9448_v25  ;;  %v2933_v19 = vpop.f32.mrb[203].mxu1  ;;  %4392 = vmatpush1.bf16.msra.mxu1 %v3551_v40  ;;  %v3254_v28 = vmax.f32 %v2928_v32, 0.0  ;;  %v3253_v57 = vmax.f32 %v2759_v31, 0.0 }
 0x2ae   :  { %v3268_v37 = vmax.f32 %v2761_v14, 0.0  ;;  %v2934_v11 = vadd.f32 %v2933_v19, %v9448_v25  ;;  %v3255_v44 = vmax.f32 %v2930_v36, 0.0 }
 0x2af   :  { %v3270_v49 = vmax.f32 %v2932_v24, 0.0  ;;  %v3269_v12 = vmax.f32 %v2763_v34, 0.0 }
 0x2b0   :  { %v3565_v56 = vpack.c.bf16 %v3268_v37, %v3252_v45  ;;  %v3271_v2 = vmax.f32 %v2934_v11, 0.0 }
 0x2b1   :  { %v3567_v26 = vpack.c.bf16 %v3270_v49, %v3254_v28  ;;  %v3566_v51 = vpack.c.bf16 %v3269_v12, %v3253_v57  ;;  %v2766_v47 = vpop.f32.mrb[204].mxu0 }
 0x2b2   :  { %v3568_v50 = vpack.c.bf16 %v3271_v2, %v3255_v44  ;;  %v2767_v8 = vadd.f32 %v2766_v47, %v9453_v16  ;;  %v2937_v33 = vpop.f32.mrb[204].mxu1  ;;  %v2768_v54 = vpop.f32.mrb[205].mxu0 }
 0x2b3   :  { %v2938_v27 = vadd.f32 %v2937_v33, %v9453_v16  ;;  %v2769_v43 = vadd.f32 %v2768_v54, %v9453_v16  ;;  %v2939_v25 = vpop.f32.mrb[205].mxu1  ;;  %v2770_v10 = vpop.f32.mrb[206].mxu0  ;;  %4312 = vmatprep.subr.bf16.mxu0 %v3566_v51 }
 0x2b4   :  { %v2940_v23 = vadd.f32 %v2939_v25, %v9453_v16  ;;  %v2771_v41 = vadd.f32 %v2770_v10, %v9454_v39  ;;  %v2941_v0 = vpop.f32.mrb[206].mxu1  ;;  %4393 = vmatprep.subr.bf16.mxu1 %v3568_v50  ;;  %v2772_v29 = vpop.f32.mrb[207].mxu0  ;;  %4313 = vmatpush1.bf16.msra.mxu0 %v3565_v56  ;;  %v3284_v40 = vmax.f32 %v2767_v8, 0.0 }
 0x2b5   :  { %v2942_v48 = vadd.f32 %v2941_v0, %v9454_v39  ;;  %v2773_v6 = vadd.f32 %v2772_v29, %v9454_v39  ;;  %v2943_v15 = vpop.f32.mrb[207].mxu1  ;;  %4394 = vmatpush1.bf16.msra.mxu1 %v3567_v26  ;;  %v3286_v30 = vmax.f32 %v2938_v27, 0.0  ;;  %v3285_v22 = vmax.f32 %v2769_v43, 0.0 }
 0x2b6   :  { %v3300_v52 = vmax.f32 %v2771_v41, 0.0  ;;  %v2944_v42 = vadd.f32 %v2943_v15, %v9454_v39  ;;  %v3287_v61 = vmax.f32 %v2940_v23, 0.0 }
 0x2b7   :  { %v3302_v1 = vmax.f32 %v2942_v48, 0.0  ;;  %v3301_v16 = vmax.f32 %v2773_v6, 0.0 }
 0x2b8   :  { %v3581_v32 = vpack.c.bf16 %v3300_v52, %v3284_v40  ;;  %v3303_v31 = vmax.f32 %v2944_v42, 0.0 }
 0x2b9   :  { %v3583_v62 = vpack.c.bf16 %v3302_v1, %v3286_v30  ;;  %v3582_v58 = vpack.c.bf16 %v3301_v16, %v3285_v22  ;;  %v2776_v36 = vpop.f32.mrb[208].mxu0 }
 0x2ba   :  { %v3584_v14 = vpack.c.bf16 %v3303_v31, %v3287_v61  ;;  %v2777_v9 = vadd.f32 %v2776_v36, %v9455_v20  ;;  %v2947_v3 = vpop.f32.mrb[208].mxu1  ;;  %v2778_v24 = vpop.f32.mrb[209].mxu0 }
 0x2bb   :  { %v2948_v34 = vadd.f32 %v2947_v3, %v9455_v20  ;;  %v2779_v19 = vadd.f32 %v2778_v24, %v9455_v20  ;;  %v2949_v39 = vpop.f32.mrb[209].mxu1  ;;  %v2780_v45 = vpop.f32.mrb[210].mxu0  ;;  %4314 = vmatprep.subr.bf16.mxu0 %v3582_v58 }
 0x2bc   :  { %v2950_v37 = vadd.f32 %v2949_v39, %v9455_v20  ;;  %v2781_v11 = vadd.f32 %v2780_v45, %v9456_v18  ;;  %v2951_v28 = vpop.f32.mrb[210].mxu1  ;;  %4395 = vmatprep.subr.bf16.mxu1 %v3584_v14  ;;  %v2782_v57 = vpop.f32.mrb[211].mxu0  ;;  %4315 = vmatpush1.bf16.msra.mxu0 %v3581_v32  ;;  %v3316_v56 = vmax.f32 %v2777_v9, 0.0 }
 0x2bd   :  { %v2952_v49 = vadd.f32 %v2951_v28, %v9456_v18  ;;  %v2783_v12 = vadd.f32 %v2782_v57, %v9456_v18  ;;  %v2953_v44 = vpop.f32.mrb[211].mxu1  ;;  %4396 = vmatpush1.bf16.msra.mxu1 %v3583_v62  ;;  %v3318_v51 = vmax.f32 %v2948_v34, 0.0  ;;  %v3317_v47 = vmax.f32 %v2779_v19, 0.0 }
 0x2be   :  { %v3332_v2 = vmax.f32 %v2781_v11, 0.0  ;;  %v2954_v26 = vadd.f32 %v2953_v44, %v9456_v18  ;;  %v3319_v8 = vmax.f32 %v2950_v37, 0.0 }
 0x2bf   :  { %v3334_v50 = vmax.f32 %v2952_v49, 0.0  ;;  %v3333_v20 = vmax.f32 %v2783_v12, 0.0 }
 0x2c0   :  { %v3597_v33 = vpack.c.bf16 %v3332_v2, %v3316_v56  ;;  %v3335_v54 = vmax.f32 %v2954_v26, 0.0 }
 0x2c1   :  { %v3599_v27 = vpack.c.bf16 %v3334_v50, %v3318_v51  ;;  %v3598_v43 = vpack.c.bf16 %v3333_v20, %v3317_v47  ;;  %v2786_v25 = vpop.f32.mrb[212].mxu0 }
 0x2c2   :  { %v3600_v10 = vpack.c.bf16 %v3335_v54, %v3319_v8  ;;  %v2787_v23 = vadd.f32 %v2786_v25, %v9457_v13  ;;  %v2957_v41 = vpop.f32.mrb[212].mxu1  ;;  %v2788_v0 = vpop.f32.mrb[213].mxu0 }
 0x2c3   :  { %v2958_v29 = vadd.f32 %v2957_v41, %v9457_v13  ;;  %v2789_v48 = vadd.f32 %v2788_v0, %v9457_v13  ;;  %v2959_v18 = vpop.f32.mrb[213].mxu1  ;;  %v2790_v6 = vpop.f32.mrb[214].mxu0  ;;  %4316 = vmatprep.subr.bf16.mxu0 %v3598_v43 }
 0x2c4   :  { %v2960_v15 = vadd.f32 %v2959_v18, %v9457_v13  ;;  %v2791_v40 = vadd.f32 %v2790_v6, %v9458_v46  ;;  %v2961_v52 = vpop.f32.mrb[214].mxu1  ;;  %4397 = vmatprep.subr.bf16.mxu1 %v3600_v10  ;;  %v2792_v42 = vpop.f32.mrb[215].mxu0  ;;  %4317 = vmatpush1.bf16.msra.mxu0 %v3597_v33  ;;  %v3348_v16 = vmax.f32 %v2787_v23, 0.0 }
 0x2c5   :  { %v2962_v30 = vadd.f32 %v2961_v52, %v9458_v46  ;;  %v2793_v22 = vadd.f32 %v2792_v42, %v9458_v46  ;;  %v2963_v1 = vpop.f32.mrb[215].mxu1  ;;  %4398 = vmatpush1.bf16.msra.mxu1 %v3599_v27  ;;  %v3350_v31 = vmax.f32 %v2958_v29, 0.0  ;;  %v3349_v62 = vmax.f32 %v2789_v48, 0.0 }
 0x2c6   :  { %v3364_v61 = vmax.f32 %v2791_v40, 0.0  ;;  %v2964_v32 = vadd.f32 %v2963_v1, %v9458_v46  ;;  %v3351_v36 = vmax.f32 %v2960_v15, 0.0 }
 0x2c7   :  { %v3366_v58 = vmax.f32 %v2962_v30, 0.0  ;;  %v3365_v13 = vmax.f32 %v2793_v22, 0.0 }
 0x2c8   :  { %v3613_v14 = vpack.c.bf16 %v3364_v61, %v3348_v16  ;;  %v3367_v9 = vmax.f32 %v2964_v32, 0.0 }
 0x2c9   :  { %v3615_v3 = vpack.c.bf16 %v3366_v58, %v3350_v31  ;;  %v3614_v24 = vpack.c.bf16 %v3365_v13, %v3349_v62  ;;  %v2796_v34 = vpop.f32.mrb[216].mxu0  ;;  %v8864_v13 = vpop.permute.xlu0 %3665 }
 0x2ca   :  { %v3616_v19 = vpack.c.bf16 %v3367_v9, %v3351_v36  ;;  %v2797_v39 = vadd.f32 %v2796_v34, %v9459_v55  ;;  %v2967_v45 = vpop.f32.mrb[216].mxu1  ;;  %v2798_v37 = vpop.f32.mrb[217].mxu0 }
 0x2cb   :  { %v2968_v11 = vadd.f32 %v2967_v45, %v9459_v55  ;;  %v2799_v28 = vadd.f32 %v2798_v37, %v9459_v55  ;;  %v2969_v46 = vpop.f32.mrb[217].mxu1  ;;  %v2800_v57 = vpop.f32.mrb[218].mxu0  ;;  %4318 = vmatprep.subr.bf16.mxu0 %v3614_v24 }
 0x2cc   :  { %v2970_v49 = vadd.f32 %v2969_v46, %v9459_v55  ;;  %v2801_v12 = vadd.f32 %v2800_v57, %v9460_v35  ;;  %v2971_v44 = vpop.f32.mrb[218].mxu1  ;;  %4399 = vmatprep.subr.bf16.mxu1 %v3616_v19  ;;  %v2802_v56 = vpop.f32.mrb[219].mxu0  ;;  %4319 = vmatpush1.bf16.msra.mxu0 %v3613_v14  ;;  %v3380_v47 = vmax.f32 %v2797_v39, 0.0 }
 0x2cd   :  { %v2972_v2 = vadd.f32 %v2971_v44, %v9460_v35  ;;  %v2803_v26 = vadd.f32 %v2802_v56, %v9460_v35  ;;  %v2973_v51 = vpop.f32.mrb[219].mxu1  ;;  %4400 = vmatpush1.bf16.msra.mxu1 %v3615_v3  ;;  %v3382_v8 = vmax.f32 %v2968_v11, 0.0  ;;  %v3381_v33 = vmax.f32 %v2799_v28, 0.0  ;;  %v8867_v9 = vpop.permute.xlu1 %3660 }
 0x2ce   :  { %v3396_v50 = vmax.f32 %v2801_v12, 0.0  ;;  %v2974_v20 = vadd.f32 %v2973_v51, %v9460_v35  ;;  %v3383_v27 = vmax.f32 %v2970_v49, 0.0 }
 0x2cf   :  { %v3398_v54 = vmax.f32 %v2972_v2, 0.0  ;;  %v3397_v55 = vmax.f32 %v2803_v26, 0.0 }
 0x2d0   :  { %v3629_v43 = vpack.c.bf16 %v3396_v50, %v3380_v47  ;;  %v3399_v25 = vmax.f32 %v2974_v20, 0.0 }
 0x2d1   :  { %v3631_v10 = vpack.c.bf16 %v3398_v54, %v3382_v8  ;;  %v3630_v23 = vpack.c.bf16 %v3397_v55, %v3381_v33  ;;  %v2806_v41 = vpop.f32.mrb[220].mxu0  ;;  %v8886_v33 = vpop.permute.xlu0 %3675 }
 0x2d2   :  { %v3632_v0 = vpack.c.bf16 %v3399_v25, %v3383_v27  ;;  %v2807_v29 = vadd.f32 %v2806_v41, %v9426_v7  ;;  %v2977_v48 = vpop.f32.mrb[220].mxu1  ;;  %v2808_v18 = vpop.f32.mrb[221].mxu0 }
 0x2d3   :  { %v2978_v6 = vadd.f32 %v2977_v48, %v9426_v7  ;;  %v2809_v15 = vadd.f32 %v2808_v18, %v9426_v7  ;;  %v2979_v35 = vpop.f32.mrb[221].mxu1  ;;  %v2810_v40 = vpop.f32.mrb[222].mxu0  ;;  %4320 = vmatprep.subr.bf16.mxu0 %v3630_v23 }
 0x2d4   :  { %v3412_v52 = vmax.f32 %v2807_v29, 0.0  ;;  %v2980_v42 = vadd.f32 %v2979_v35, %v9426_v7  ;;  %v2981_v30 = vpop.f32.mrb[222].mxu1  ;;  %4401 = vmatprep.subr.bf16.mxu1 %v3632_v0  ;;  %v2811_v22 = vpop.f32.mrb[223].mxu0  ;;  %4321 = vmatpush1.bf16.msra.mxu0 %v3629_v43 }
 0x2d5   :  { %v3414_v1 = vmax.f32 %v2978_v6, 0.0  ;;  %v3413_v16 = vmax.f32 %v2809_v15, 0.0  ;;  %v2982_v61 = vpop.f32.mrb[223].mxu1  ;;  %4402 = vmatpush1.bf16.msra.mxu1 %v3631_v10  ;;  %v8888_v43 = vpop.permute.xlu1 %3670 }
 0x2d6   :  { %v3645_v32 = vpack.c.bf16 %v3412_v52, %v3412_v52  ;;  %v3415_v31 = vmax.f32 %v2980_v42, 0.0 }
 0x2d7   :  { %v3647_v62 = vpack.c.bf16 %v3414_v1, %v3414_v1  ;;  %v3646_v58 = vpack.c.bf16 %v3413_v16, %v3413_v16 }
 0x2d8   :  { %v3648_v36 = vpack.c.bf16 %v3415_v31, %v3415_v31  ;;  %v3799_v14 = vsel %vm3761_vm1, %v3645_v32, 0 }
 0x2d9   :  { %v3844_v7 = vpop.f32.mrb[224].mxu0  ;;  %5741 = vmatprep.subr.msk.bf16.mxu0 %vm3761_vm1, %v3646_v58  ;;  %v3805_v3 = vsel %vm3761_vm1, %v3647_v62, 0 }
 0x2da   :  { %v3845_v24 = vadd.f32 %v3844_v7, %v8867_v9  ;;  %v3925_v34 = vpop.f32.mrb[224].mxu1  ;;  %5747 = vmatprep.subr.msk.bf16.mxu1 %vm3761_vm1, %v3648_v36  ;;  %v3846_v19 = vpop.f32.mrb[225].mxu0  ;;  %4323 = vmatpush1.bf16.msra.mxu0 %v3799_v14 }
 0x2db   :  { %v3926_v39 = vadd.f32 %v3925_v34, %v8867_v9  ;;  %v3847_v45 = vadd.f32 %v3846_v19, %v8867_v9  ;;  %v3927_v37 = vpop.f32.mrb[225].mxu1  ;;  %4404 = vmatpush1.bf16.msra.mxu1 %v3805_v3  ;;  %v3848_v11 = vpop.f32.mrb[226].mxu0 }
 0x2dc   :  { %v3928_v28 = vadd.f32 %v3927_v37, %v8867_v9  ;;  %v3849_v46 = vadd.f32 %v3848_v11, %v8864_v13  ;;  %v3929_v57 = vpop.f32.mrb[226].mxu1  ;;  %v3850_v49 = vpop.f32.mrb[227].mxu0  ;;  %v4458_v2 = vmax.f32 %v3845_v24, 0.0 }
 0x2dd   :  { %v3930_v12 = vadd.f32 %v3929_v57, %v8864_v13  ;;  %v3851_v44 = vadd.f32 %v3850_v49, %v8864_v13  ;;  %v3931_v56 = vpop.f32.mrb[227].mxu1  ;;  %4329 = vmatmul.mubr.bf16.vlgmr.msra.gmra.mrb[28].mxu0 %v8710_v53  ;;  %v4460_v47 = vmax.f32 %v3926_v39, 0.0  ;;  %v4459_v50 = vmax.f32 %v3847_v45, 0.0  ;;  %v8904_v36 = vpop.permute.xlu0 %3685 }
 0x2de   :  { %v4474_v26 = vmax.f32 %v3849_v46, 0.0  ;;  %v3932_v51 = vadd.f32 %v3931_v56, %v8864_v13  ;;  %4410 = vmatmul.mubr.bf16.vlgmr.msra.gmra.mrb[28].mxu1 %v8710_v53  ;;  %5743 = vmatprep.mubr.msk.bf16.mxu0 %vm3745_vm2, %v8717_v17  ;;  %v4461_v54 = vmax.f32 %v3928_v28, 0.0  ;;  %v8906_v24 = vpop.permute.xlu1 %3680 }
 0x2df   :  { %v4476_v20 = vmax.f32 %v3930_v12, 0.0  ;;  %v4475_v8 = vmax.f32 %v3851_v44, 0.0  ;;  %5749 = vmatprep.mubr.msk.bf16.mxu1 %vm3745_vm2, %v8717_v17 }
 0x2e0   :  { %v4603_v55 = vpack.c.bf16 %v4474_v26, %v4458_v2  ;;  %v4477_v27 = vmax.f32 %v3932_v51, 0.0 }
 0x2e1   :  { %v4605_v25 = vpack.c.bf16 %v4476_v20, %v4460_v47  ;;  %v4604_v10 = vpack.c.bf16 %v4475_v8, %v4459_v50  ;;  %v3854_v53 = vpop.f32.mrb[228].mxu0 }
 0x2e2   :  { %v4606_v23 = vpack.c.bf16 %v4477_v27, %v4461_v54  ;;  %v3855_v41 = vadd.f32 %v3854_v53, %v8888_v43  ;;  %v3935_v0 = vpop.f32.mrb[228].mxu1  ;;  %v3856_v29 = vpop.f32.mrb[229].mxu0 }
 0x2e3   :  { %v3936_v48 = vadd.f32 %v3935_v0, %v8888_v43  ;;  %v3857_v18 = vadd.f32 %v3856_v29, %v8888_v43  ;;  %v3937_v17 = vpop.f32.mrb[229].mxu1  ;;  %v3858_v6 = vpop.f32.mrb[230].mxu0  ;;  %4741 = vmatprep.subr.bf16.mxu0 %v4604_v10 }
 0x2e4   :  { %v3938_v15 = vadd.f32 %v3937_v17, %v8888_v43  ;;  %v3859_v35 = vadd.f32 %v3858_v6, %v8886_v33  ;;  %v3939_v40 = vpop.f32.mrb[230].mxu1  ;;  %4782 = vmatprep.subr.bf16.mxu1 %v4606_v23  ;;  %v3860_v52 = vpop.f32.mrb[231].mxu0  ;;  %4742 = vmatpush1.bf16.msra.mxu0 %v4603_v55  ;;  %v4490_v1 = vmax.f32 %v3855_v41, 0.0 }
 0x2e5   :  { %v3940_v42 = vadd.f32 %v3939_v40, %v8886_v33  ;;  %v3861_v30 = vadd.f32 %v3860_v52, %v8886_v33  ;;  %v3941_v22 = vpop.f32.mrb[231].mxu1  ;;  %4783 = vmatpush1.bf16.msra.mxu1 %v4605_v25  ;;  %4339 = vmatmul.mubr.bf16.gmra.mrb[32].mxu0 %v8734_v21  ;;  %v4492_v32 = vmax.f32 %v3936_v48, 0.0  ;;  %v4491_v31 = vmax.f32 %v3857_v18, 0.0  ;;  %v8922_v25 = vpop.permute.xlu0 %3695 }
 0x2e6   :  { %v4506_v16 = vmax.f32 %v3859_v35, 0.0  ;;  %v3942_v61 = vadd.f32 %v3941_v22, %v8886_v33  ;;  %4420 = vmatmul.mubr.bf16.gmra.mrb[32].mxu1 %v8734_v21  ;;  %5744 = vmatprep.mubr.msk.bf16.mxu0 %vm3745_vm2, %v8741_v59  ;;  %v4493_v14 = vmax.f32 %v3938_v15, 0.0  ;;  %v8924_v41 = vpop.permute.xlu1 %3690 }
 0x2e7   :  { %v4508_v62 = vmax.f32 %v3940_v42, 0.0  ;;  %v4507_v58 = vmax.f32 %v3861_v30, 0.0  ;;  %5750 = vmatprep.mubr.msk.bf16.mxu1 %vm3745_vm2, %v8741_v59 }
 0x2e8   :  { %v4619_v7 = vpack.c.bf16 %v4506_v16, %v4490_v1  ;;  %v4509_v3 = vmax.f32 %v3942_v61, 0.0 }
 0x2e9   :  { %v4621_v34 = vpack.c.bf16 %v4508_v62, %v4492_v32  ;;  %v4620_v19 = vpack.c.bf16 %v4507_v58, %v4491_v31  ;;  %v3864_v21 = vpop.f32.mrb[232].mxu0 }
 0x2ea   :  { %v4622_v39 = vpack.c.bf16 %v4509_v3, %v4493_v14  ;;  %v3865_v45 = vadd.f32 %v3864_v21, %v8906_v24  ;;  %v3945_v37 = vpop.f32.mrb[232].mxu1  ;;  %v3866_v11 = vpop.f32.mrb[233].mxu0 }
 0x2eb   :  { %v3946_v28 = vadd.f32 %v3945_v37, %v8906_v24  ;;  %v3867_v46 = vadd.f32 %v3866_v11, %v8906_v24  ;;  %v3947_v59 = vpop.f32.mrb[233].mxu1  ;;  %v3868_v57 = vpop.f32.mrb[234].mxu0  ;;  %4743 = vmatprep.subr.bf16.mxu0 %v4620_v19 }
 0x2ec   :  { %v3948_v49 = vadd.f32 %v3947_v59, %v8906_v24  ;;  %v3869_v12 = vadd.f32 %v3868_v57, %v8904_v36  ;;  %v3949_v44 = vpop.f32.mrb[234].mxu1  ;;  %4784 = vmatprep.subr.bf16.mxu1 %v4622_v39  ;;  %v3870_v56 = vpop.f32.mrb[235].mxu0  ;;  %4744 = vmatpush1.bf16.msra.mxu0 %v4619_v7  ;;  %v4522_v47 = vmax.f32 %v3865_v45, 0.0 }
 0x2ed   :  { %v3950_v2 = vadd.f32 %v3949_v44, %v8904_v36  ;;  %v3871_v26 = vadd.f32 %v3870_v56, %v8904_v36  ;;  %v3951_v51 = vpop.f32.mrb[235].mxu1  ;;  %4785 = vmatpush1.bf16.msra.mxu1 %v4621_v34  ;;  %4349 = vmatmul.mubr.bf16.gmra.mrb[36].mxu0 %v8758_v5  ;;  %v4524_v8 = vmax.f32 %v3946_v28, 0.0  ;;  %v4523_v54 = vmax.f32 %v3867_v46, 0.0  ;;  %v8940_v39 = vpop.permute.xlu1 %3700 }
 0x2ee   :  { %v4538_v50 = vmax.f32 %v3869_v12, 0.0  ;;  %v3952_v20 = vadd.f32 %v3951_v51, %v8904_v36  ;;  %4430 = vmatmul.mubr.bf16.gmra.mrb[36].mxu1 %v8758_v5  ;;  %5745 = vmatprep.mubr.msk.bf16.mxu0 %vm3745_vm2, %v8765_v60  ;;  %v4525_v10 = vmax.f32 %v3948_v49, 0.0 }
 0x2ef   :  { %v4540_v55 = vmax.f32 %v3950_v2, 0.0  ;;  %v4539_v27 = vmax.f32 %v3871_v26, 0.0  ;;  %5751 = vmatprep.mubr.msk.bf16.mxu1 %vm3745_vm2, %v8765_v60 }
 0x2f0   :  { %v4635_v53 = vpack.c.bf16 %v4538_v50, %v4522_v47  ;;  %v4541_v23 = vmax.f32 %v3952_v20, 0.0 }
 0x2f1   :  { %v4637_v0 = vpack.c.bf16 %v4540_v55, %v4524_v8  ;;  %v4636_v29 = vpack.c.bf16 %v4539_v27, %v4523_v54  ;;  %v3874_v5 = vpop.f32.mrb[236].mxu0  ;;  %v9474_v54 = vmov 0  }
 0x2f2   :  { %v4638_v48 = vpack.c.bf16 %v4541_v23, %v4525_v10  ;;  %v3875_v18 = vadd.f32 %v3874_v5, %v8924_v41  ;;  %v3955_v17 = vpop.f32.mrb[236].mxu1  ;;  %v3876_v6 = vpop.f32.mrb[237].mxu0 }
 0x2f3   :  { %v3956_v15 = vadd.f32 %v3955_v17, %v8924_v41  ;;  %v3877_v35 = vadd.f32 %v3876_v6, %v8924_v41  ;;  %v3957_v60 = vpop.f32.mrb[237].mxu1  ;;  %v3878_v40 = vpop.f32.mrb[238].mxu0  ;;  %4745 = vmatprep.subr.bf16.mxu0 %v4636_v29 }
 0x2f4   :  { %v3958_v52 = vadd.f32 %v3957_v60, %v8924_v41  ;;  %v3879_v42 = vadd.f32 %v3878_v40, %v8922_v25  ;;  %v3959_v30 = vpop.f32.mrb[238].mxu1  ;;  %4786 = vmatprep.subr.bf16.mxu1 %v4638_v48  ;;  %v3880_v22 = vpop.f32.mrb[239].mxu0  ;;  %4746 = vmatpush1.bf16.msra.mxu0 %v4635_v53  ;;  %v4554_v32 = vmax.f32 %v3875_v18, 0.0 }
 0x2f5   :  { %v3960_v1 = vadd.f32 %v3959_v30, %v8922_v25  ;;  %v3881_v16 = vadd.f32 %v3880_v22, %v8922_v25  ;;  %v3961_v61 = vpop.f32.mrb[239].mxu1  ;;  %4787 = vmatpush1.bf16.msra.mxu1 %v4637_v0  ;;  %4359 = vmatmul.mubr.bf16.gmra.mrb[40].mxu0 %v8782_v4  ;;  %v4556_v58 = vmax.f32 %v3956_v15, 0.0  ;;  %v4555_v14 = vmax.f32 %v3877_v35, 0.0 }
 0x2f6   :  { %v4570_v31 = vmax.f32 %v3879_v42, 0.0  ;;  %v3962_v62 = vadd.f32 %v3961_v61, %v8922_v25  ;;  %4440 = vmatmul.mubr.bf16.gmra.mrb[40].mxu1 %v8782_v4  ;;  %5746 = vmatprep.mubr.msk.bf16.mxu0 %vm3745_vm2, %v8411_v63  ;;  %v4557_v34 = vmax.f32 %v3958_v52, 0.0 }
 0x2f7   :  { %v4572_v7 = vmax.f32 %v3960_v1, 0.0  ;;  %v4571_v3 = vmax.f32 %v3881_v16, 0.0  ;;  %5752 = vmatprep.mubr.msk.bf16.mxu1 %vm3745_vm2, %v8411_v63 }
 0x2f8   :  { %v4651_v19 = vpack.c.bf16 %v4570_v31, %v4554_v32  ;;  %v4573_v21 = vmax.f32 %v3962_v62, 0.0 }
 0x2f9   :  { %v4653_v45 = vpack.c.bf16 %v4572_v7, %v4556_v58  ;;  %v4652_v37 = vpack.c.bf16 %v4571_v3, %v4555_v14  ;;  %v3884_v11 = vpop.f32.mrb[240].mxu0 }
 0x2fa   :  { %v4654_v28 = vpack.c.bf16 %v4573_v21, %v4557_v34  ;;  %v3885_v4 = vadd.f32 %v3884_v11, %v8940_v39  ;;  %v3965_v46 = vpop.f32.mrb[240].mxu1  ;;  %v3886_v59 = vpop.f32.mrb[241].mxu0 }
 0x2fb   :  { %v3966_v57 = vadd.f32 %v3965_v46, %v8940_v39  ;;  %v3887_v49 = vadd.f32 %v3886_v59, %v8940_v39  ;;  %v3967_v12 = vpop.f32.mrb[241].mxu1  ;;  %4747 = vmatprep.subr.bf16.mxu0 %v4652_v37  ;;  %v3888_v63 = vpop.f32.mrb[242].mxu0 }
 0x2fc   :  { %v4586_v44 = vmax.f32 %v3885_v4, 0.0  ;;  %v3968_v56 = vadd.f32 %v3967_v12, %v8940_v39  ;;  %4788 = vmatprep.subr.bf16.mxu1 %v4654_v28  ;;  %4748 = vmatpush1.bf16.msra.mxu0 %v4651_v19  ;;  %v3969_v2 = vpop.f32.mrb[242].mxu1  ;;  %v3889_v26 = vpop.f32.mrb[243].mxu0 }
 0x2fd   :  { %v4588_v51 = vmax.f32 %v3966_v57, 0.0  ;;  %v4587_v47 = vmax.f32 %v3887_v49, 0.0  ;;  %4789 = vmatpush1.bf16.msra.mxu1 %v4653_v45  ;;  %4369 = vmatmul.mubr.bf16.gmra.mrb[44].mxu0 %v8433_v38  ;;  %v3970_v50 = vpop.f32.mrb[243].mxu1 }
 0x2fe   :  { %v4667_v20 = vpack.c.bf16 %v4586_v44, %v4586_v44  ;;  %v4589_v8 = vmax.f32 %v3968_v56, 0.0  ;;  %4450 = vmatmul.mubr.bf16.gmra.mrb[44].mxu1 %v8433_v38  ;;  %4773 = vmatprep.mubr.bf16.mxu0 %v9474_v54  ;;  %v8957_v38 = vld [vmem:[%s9204_s5] sm:$0xf] }
 0x2ff   :  { %v4669_v55 = vpack.c.bf16 %v4588_v51, %v4588_v51  ;;  %v4668_v27 = vpack.c.bf16 %v4587_v47, %v4587_v47  ;;  %4814 = vmatprep.mubr.bf16.mxu1 %v9474_v54 }
 0x300   :  { %v4670_v10 = vpack.c.bf16 %v4589_v8, %v4589_v8  ;;  %v4694_v53 = vsel %vm3761_vm1, %v4667_v20, 0 }
 0x301   :  { %5753 = vmatprep.subr.msk.bf16.mxu0 %vm3761_vm1, %v4668_v27  ;;  %v4700_v23 = vsel %vm3761_vm1, %v4669_v55, 0 }
 0x302   :  { %5755 = vmatprep.subr.msk.bf16.mxu1 %vm3761_vm1, %v4670_v10  ;;  %4750 = vmatpush1.bf16.msra.mxu0 %v4694_v53 }
 0x303   :  { %4791 = vmatpush1.bf16.msra.mxu1 %v4700_v23 }
 0x305   :  { %5754 = vmatmul.mubr.msk.bf16.vlgmr.msra.gmra.mrb[48].mxu0 %vm4689_vm3, %v8957_v38 }
 0x306   :  { %5756 = vmatmul.mubr.msk.bf16.vlgmr.msra.gmra.mrb[48].mxu1 %vm4689_vm3, %v8957_v38  ;;  %4855 = vmatprep.mubr.bf16.mxu0 %v9474_v54 }
 0x307   :  { %4896 = vmatprep.mubr.bf16.mxu1 %v9474_v54 }
 0x311   :  { %v4006_v0 = vpop.f32.mrb[244].mxu0 }
 0x312   :  { %v4007_v29 = vadd.f32 %v4006_v0, %v8867_v9  ;;  %v4087_v5 = vpop.f32.mrb[244].mxu1  ;;  %v4008_v48 = vpop.f32.mrb[245].mxu0 }
 0x313   :  { %v4088_v18 = vadd.f32 %v4087_v5, %v8867_v9  ;;  %v4009_v17 = vadd.f32 %v4008_v48, %v8867_v9  ;;  %v4089_v6 = vpop.f32.mrb[245].mxu1  ;;  %v4010_v15 = vpop.f32.mrb[246].mxu0 }
 0x314   :  { %v4090_v35 = vadd.f32 %v4089_v6, %v8867_v9  ;;  %v4011_v60 = vadd.f32 %v4010_v15, %v8864_v13  ;;  %v4091_v40 = vpop.f32.mrb[246].mxu1  ;;  %v4012_v52 = vpop.f32.mrb[247].mxu0  ;;  %v4462_v1 = vmax.f32 %v4007_v29, 0.0 }
 0x315   :  { %v4092_v42 = vadd.f32 %v4091_v40, %v8864_v13  ;;  %v4013_v30 = vadd.f32 %v4012_v52, %v8864_v13  ;;  %v4093_v22 = vpop.f32.mrb[247].mxu1  ;;  %v4464_v32 = vmax.f32 %v4088_v18, 0.0  ;;  %v4463_v31 = vmax.f32 %v4009_v17, 0.0 }
 0x316   :  { %v4478_v16 = vmax.f32 %v4011_v60, 0.0  ;;  %v4094_v61 = vadd.f32 %v4093_v22, %v8864_v13  ;;  %v4465_v14 = vmax.f32 %v4090_v35, 0.0 }
 0x317   :  { %v4480_v62 = vmax.f32 %v4092_v42, 0.0  ;;  %v4479_v58 = vmax.f32 %v4013_v30, 0.0 }
 0x318   :  { %v4607_v7 = vpack.c.bf16 %v4478_v16, %v4462_v1  ;;  %v4481_v3 = vmax.f32 %v4094_v61, 0.0 }
 0x319   :  { %v4609_v34 = vpack.c.bf16 %v4480_v62, %v4464_v32  ;;  %v4608_v19 = vpack.c.bf16 %v4479_v58, %v4463_v31  ;;  %v4016_v21 = vpop.f32.mrb[248].mxu0 }
 0x31a   :  { %v4610_v45 = vpack.c.bf16 %v4481_v3, %v4465_v14  ;;  %v4017_v37 = vadd.f32 %v4016_v21, %v8888_v43  ;;  %v4097_v11 = vpop.f32.mrb[248].mxu1  ;;  %v4018_v28 = vpop.f32.mrb[249].mxu0 }
 0x31b   :  { %v4098_v4 = vadd.f32 %v4097_v11, %v8888_v43  ;;  %v4019_v46 = vadd.f32 %v4018_v28, %v8888_v43  ;;  %v4099_v59 = vpop.f32.mrb[249].mxu1  ;;  %v4020_v57 = vpop.f32.mrb[250].mxu0  ;;  %4823 = vmatprep.subr.bf16.mxu0 %v4608_v19 }
 0x31c   :  { %v4100_v49 = vadd.f32 %v4099_v59, %v8888_v43  ;;  %v4021_v12 = vadd.f32 %v4020_v57, %v8886_v33  ;;  %v4101_v63 = vpop.f32.mrb[250].mxu1  ;;  %4864 = vmatprep.subr.bf16.mxu1 %v4610_v45  ;;  %v4022_v44 = vpop.f32.mrb[251].mxu0  ;;  %4824 = vmatpush1.bf16.msra.mxu0 %v4607_v7  ;;  %v4494_v51 = vmax.f32 %v4017_v37, 0.0 }
 0x31d   :  { %v4102_v56 = vadd.f32 %v4101_v63, %v8886_v33  ;;  %v4023_v2 = vadd.f32 %v4022_v44, %v8886_v33  ;;  %v4103_v26 = vpop.f32.mrb[251].mxu1  ;;  %4865 = vmatpush1.bf16.msra.mxu1 %v4609_v34  ;;  %v4496_v20 = vmax.f32 %v4098_v4, 0.0  ;;  %v4495_v8 = vmax.f32 %v4019_v46, 0.0 }
 0x31e   :  { %v4510_v47 = vmax.f32 %v4021_v12, 0.0  ;;  %v4104_v50 = vadd.f32 %v4103_v26, %v8886_v33  ;;  %v4497_v10 = vmax.f32 %v4100_v49, 0.0 }
 0x31f   :  { %v4512_v55 = vmax.f32 %v4102_v56, 0.0  ;;  %v4511_v27 = vmax.f32 %v4023_v2, 0.0 }
 0x320   :  { %v4623_v53 = vpack.c.bf16 %v4510_v47, %v4494_v51  ;;  %v4513_v23 = vmax.f32 %v4104_v50, 0.0 }
 0x321   :  { %v4625_v0 = vpack.c.bf16 %v4512_v55, %v4496_v20  ;;  %v4624_v29 = vpack.c.bf16 %v4511_v27, %v4495_v8  ;;  %v4026_v5 = vpop.f32.mrb[252].mxu0 }
 0x322   :  { %v4626_v48 = vpack.c.bf16 %v4513_v23, %v4497_v10  ;;  %v4027_v18 = vadd.f32 %v4026_v5, %v8906_v24  ;;  %v4107_v17 = vpop.f32.mrb[252].mxu1  ;;  %v4028_v6 = vpop.f32.mrb[253].mxu0 }
 0x323   :  { %v4108_v15 = vadd.f32 %v4107_v17, %v8906_v24  ;;  %v4029_v35 = vadd.f32 %v4028_v6, %v8906_v24  ;;  %v4109_v60 = vpop.f32.mrb[253].mxu1  ;;  %v4030_v40 = vpop.f32.mrb[254].mxu0  ;;  %4825 = vmatprep.subr.bf16.mxu0 %v4624_v29 }
 0x324   :  { %v4110_v52 = vadd.f32 %v4109_v60, %v8906_v24  ;;  %v4031_v42 = vadd.f32 %v4030_v40, %v8904_v36  ;;  %v4111_v30 = vpop.f32.mrb[254].mxu1  ;;  %4866 = vmatprep.subr.bf16.mxu1 %v4626_v48  ;;  %v4032_v22 = vpop.f32.mrb[255].mxu0  ;;  %4826 = vmatpush1.bf16.msra.mxu0 %v4623_v53  ;;  %v4526_v32 = vmax.f32 %v4027_v18, 0.0 }
 0x325   :  { %v4112_v1 = vadd.f32 %v4111_v30, %v8904_v36  ;;  %v4033_v16 = vadd.f32 %v4032_v22, %v8904_v36  ;;  %v4113_v61 = vpop.f32.mrb[255].mxu1  ;;  %4867 = vmatpush1.bf16.msra.mxu1 %v4625_v0  ;;  %v4528_v58 = vmax.f32 %v4108_v15, 0.0  ;;  %v4527_v14 = vmax.f32 %v4029_v35, 0.0 }
 0x326   :  { %v4542_v31 = vmax.f32 %v4031_v42, 0.0  ;;  %v4114_v62 = vadd.f32 %v4113_v61, %v8904_v36  ;;  %v4529_v34 = vmax.f32 %v4110_v52, 0.0 }
 0x327   :  { %v4544_v7 = vmax.f32 %v4112_v1, 0.0  ;;  %v4543_v3 = vmax.f32 %v4033_v16, 0.0 }
 0x328   :  { %v4639_v19 = vpack.c.bf16 %v4542_v31, %v4526_v32  ;;  %v4545_v21 = vmax.f32 %v4114_v62, 0.0 }
 0x329   :  { %v4641_v45 = vpack.c.bf16 %v4544_v7, %v4528_v58  ;;  %v4640_v37 = vpack.c.bf16 %v4543_v3, %v4527_v14  ;;  %v4036_v11 = vpop.f32.mrb[0].mxu0 }
 0x32a   :  { %v4642_v28 = vpack.c.bf16 %v4545_v21, %v4529_v34  ;;  %v4037_v4 = vadd.f32 %v4036_v11, %v8924_v41  ;;  %v4117_v46 = vpop.f32.mrb[0].mxu1  ;;  %v4038_v59 = vpop.f32.mrb[1].mxu0 }
 0x32b   :  { %v4118_v57 = vadd.f32 %v4117_v46, %v8924_v41  ;;  %v4039_v49 = vadd.f32 %v4038_v59, %v8924_v41  ;;  %v4119_v12 = vpop.f32.mrb[1].mxu1  ;;  %v4040_v63 = vpop.f32.mrb[2].mxu0  ;;  %4827 = vmatprep.subr.bf16.mxu0 %v4640_v37 }
 0x32c   :  { %v4120_v44 = vadd.f32 %v4119_v12, %v8924_v41  ;;  %v4041_v56 = vadd.f32 %v4040_v63, %v8922_v25  ;;  %v4121_v2 = vpop.f32.mrb[2].mxu1  ;;  %4868 = vmatprep.subr.bf16.mxu1 %v4642_v28  ;;  %v4042_v26 = vpop.f32.mrb[3].mxu0  ;;  %4828 = vmatpush1.bf16.msra.mxu0 %v4639_v19  ;;  %v4558_v20 = vmax.f32 %v4037_v4, 0.0 }
 0x32d   :  { %v4122_v51 = vadd.f32 %v4121_v2, %v8922_v25  ;;  %v4043_v47 = vadd.f32 %v4042_v26, %v8922_v25  ;;  %v4123_v50 = vpop.f32.mrb[3].mxu1  ;;  %4869 = vmatpush1.bf16.msra.mxu1 %v4641_v45  ;;  %v4560_v27 = vmax.f32 %v4118_v57, 0.0  ;;  %v4559_v10 = vmax.f32 %v4039_v49, 0.0 }
 0x32e   :  { %v4574_v8 = vmax.f32 %v4041_v56, 0.0  ;;  %v4124_v55 = vadd.f32 %v4123_v50, %v8922_v25  ;;  %v4561_v0 = vmax.f32 %v4120_v44, 0.0 }
 0x32f   :  { %v4576_v53 = vmax.f32 %v4122_v51, 0.0  ;;  %v4575_v23 = vmax.f32 %v4043_v47, 0.0 }
 0x330   :  { %v4655_v29 = vpack.c.bf16 %v4574_v8, %v4558_v20  ;;  %v4577_v5 = vmax.f32 %v4124_v55, 0.0 }
 0x331   :  { %v4657_v48 = vpack.c.bf16 %v4576_v53, %v4560_v27  ;;  %v4656_v18 = vpack.c.bf16 %v4575_v23, %v4559_v10  ;;  %v4046_v17 = vpop.f32.mrb[4].mxu0 }
 0x332   :  { %v4658_v6 = vpack.c.bf16 %v4577_v5, %v4561_v0  ;;  %v4047_v15 = vadd.f32 %v4046_v17, %v8940_v39  ;;  %v4127_v35 = vpop.f32.mrb[4].mxu1  ;;  %v4048_v60 = vpop.f32.mrb[5].mxu0 }
 0x333   :  { %v4128_v40 = vadd.f32 %v4127_v35, %v8940_v39  ;;  %v4049_v52 = vadd.f32 %v4048_v60, %v8940_v39  ;;  %v4129_v42 = vpop.f32.mrb[5].mxu1  ;;  %4829 = vmatprep.subr.bf16.mxu0 %v4656_v18  ;;  %v4050_v30 = vpop.f32.mrb[6].mxu0 }
 0x334   :  { %v4590_v22 = vmax.f32 %v4047_v15, 0.0  ;;  %v4130_v1 = vadd.f32 %v4129_v42, %v8940_v39  ;;  %4870 = vmatprep.subr.bf16.mxu1 %v4658_v6  ;;  %4830 = vmatpush1.bf16.msra.mxu0 %v4655_v29  ;;  %v4131_v16 = vpop.f32.mrb[6].mxu1  ;;  %v4051_v61 = vpop.f32.mrb[7].mxu0 }
 0x335   :  { %v4592_v32 = vmax.f32 %v4128_v40, 0.0  ;;  %v4591_v31 = vmax.f32 %v4049_v52, 0.0  ;;  %4871 = vmatpush1.bf16.msra.mxu1 %v4657_v48  ;;  %v4132_v62 = vpop.f32.mrb[7].mxu1 }
 0x336   :  { %v4671_v58 = vpack.c.bf16 %v4590_v22, %v4590_v22  ;;  %v4593_v14 = vmax.f32 %v4130_v1, 0.0 }
 0x337   :  { %v4673_v7 = vpack.c.bf16 %v4592_v32, %v4592_v32  ;;  %v4672_v3 = vpack.c.bf16 %v4591_v31, %v4591_v31 }
 0x338   :  { %v4674_v34 = vpack.c.bf16 %v4593_v14, %v4593_v14  ;;  %v4706_v19 = vsel %vm3761_vm1, %v4671_v58, 0 }
 0x339   :  { %5757 = vmatprep.subr.msk.bf16.mxu0 %vm3761_vm1, %v4672_v3  ;;  %v4712_v21 = vsel %vm3761_vm1, %v4673_v7, 0 }
 0x33a   :  { %5759 = vmatprep.subr.msk.bf16.mxu1 %vm3761_vm1, %v4674_v34  ;;  %4832 = vmatpush1.bf16.msra.mxu0 %v4706_v19 }
 0x33b   :  { %4873 = vmatpush1.bf16.msra.mxu1 %v4712_v21 }
 0x33d   :  { %5758 = vmatmul.mubr.msk.bf16.vlgmr.msra.gmra.mrb[52].mxu0 %vm4689_vm3, %v8957_v38 }
 0x33e   :  { %5760 = vmatmul.mubr.msk.bf16.vlgmr.msra.gmra.mrb[52].mxu1 %vm4689_vm3, %v8957_v38  ;;  %4937 = vmatprep.mubr.bf16.mxu0 %v9474_v54 }
 0x33f   :  { %4978 = vmatprep.mubr.bf16.mxu1 %v9474_v54 }
 0x349   :  { %v4168_v45 = vpop.f32.mrb[8].mxu0 }
 0x34a   :  { %v4169_v37 = vadd.f32 %v4168_v45, %v8867_v9  ;;  %v4249_v11 = vpop.f32.mrb[8].mxu1  ;;  %v4170_v28 = vpop.f32.mrb[9].mxu0 }
 0x34b   :  { %v4250_v4 = vadd.f32 %v4249_v11, %v8867_v9  ;;  %v4171_v46 = vadd.f32 %v4170_v28, %v8867_v9  ;;  %v4251_v59 = vpop.f32.mrb[9].mxu1  ;;  %v4172_v57 = vpop.f32.mrb[10].mxu0 }
 0x34c   :  { %v4252_v49 = vadd.f32 %v4251_v59, %v8867_v9  ;;  %v4173_v12 = vadd.f32 %v4172_v57, %v8864_v13  ;;  %v4253_v63 = vpop.f32.mrb[10].mxu1  ;;  %v4174_v44 = vpop.f32.mrb[11].mxu0  ;;  %v4466_v51 = vmax.f32 %v4169_v37, 0.0 }
 0x34d   :  { %v4254_v56 = vadd.f32 %v4253_v63, %v8864_v13  ;;  %v4175_v2 = vadd.f32 %v4174_v44, %v8864_v13  ;;  %v4255_v26 = vpop.f32.mrb[11].mxu1  ;;  %v4468_v20 = vmax.f32 %v4250_v4, 0.0  ;;  %v4467_v8 = vmax.f32 %v4171_v46, 0.0 }
 0x34e   :  { %v4482_v47 = vmax.f32 %v4173_v12, 0.0  ;;  %v4256_v50 = vadd.f32 %v4255_v26, %v8864_v13  ;;  %v4469_v10 = vmax.f32 %v4252_v49, 0.0 }
 0x34f   :  { %v4484_v55 = vmax.f32 %v4254_v56, 0.0  ;;  %v4483_v27 = vmax.f32 %v4175_v2, 0.0 }
 0x350   :  { %v4611_v53 = vpack.c.bf16 %v4482_v47, %v4466_v51  ;;  %v4485_v23 = vmax.f32 %v4256_v50, 0.0 }
 0x351   :  { %v4613_v0 = vpack.c.bf16 %v4484_v55, %v4468_v20  ;;  %v4612_v29 = vpack.c.bf16 %v4483_v27, %v4467_v8  ;;  %v4178_v5 = vpop.f32.mrb[12].mxu0 }
 0x352   :  { %v4614_v48 = vpack.c.bf16 %v4485_v23, %v4469_v10  ;;  %v4179_v18 = vadd.f32 %v4178_v5, %v8888_v43  ;;  %v4259_v17 = vpop.f32.mrb[12].mxu1  ;;  %v4180_v6 = vpop.f32.mrb[13].mxu0 }
 0x353   :  { %v4260_v15 = vadd.f32 %v4259_v17, %v8888_v43  ;;  %v4181_v35 = vadd.f32 %v4180_v6, %v8888_v43  ;;  %v4261_v60 = vpop.f32.mrb[13].mxu1  ;;  %v4182_v40 = vpop.f32.mrb[14].mxu0  ;;  %4905 = vmatprep.subr.bf16.mxu0 %v4612_v29 }
 0x354   :  { %v4262_v52 = vadd.f32 %v4261_v60, %v8888_v43  ;;  %v4183_v42 = vadd.f32 %v4182_v40, %v8886_v33  ;;  %v4263_v30 = vpop.f32.mrb[14].mxu1  ;;  %4946 = vmatprep.subr.bf16.mxu1 %v4614_v48  ;;  %v4184_v22 = vpop.f32.mrb[15].mxu0  ;;  %4906 = vmatpush1.bf16.msra.mxu0 %v4611_v53  ;;  %v4498_v32 = vmax.f32 %v4179_v18, 0.0 }
 0x355   :  { %v4264_v1 = vadd.f32 %v4263_v30, %v8886_v33  ;;  %v4185_v16 = vadd.f32 %v4184_v22, %v8886_v33  ;;  %v4265_v61 = vpop.f32.mrb[15].mxu1  ;;  %4947 = vmatpush1.bf16.msra.mxu1 %v4613_v0  ;;  %v4500_v58 = vmax.f32 %v4260_v15, 0.0  ;;  %v4499_v14 = vmax.f32 %v4181_v35, 0.0 }
 0x356   :  { %v4514_v31 = vmax.f32 %v4183_v42, 0.0  ;;  %v4266_v62 = vadd.f32 %v4265_v61, %v8886_v33  ;;  %v4501_v34 = vmax.f32 %v4262_v52, 0.0 }
 0x357   :  { %v4516_v7 = vmax.f32 %v4264_v1, 0.0  ;;  %v4515_v3 = vmax.f32 %v4185_v16, 0.0 }
 0x358   :  { %v4627_v19 = vpack.c.bf16 %v4514_v31, %v4498_v32  ;;  %v4517_v21 = vmax.f32 %v4266_v62, 0.0 }
 0x359   :  { %v4629_v45 = vpack.c.bf16 %v4516_v7, %v4500_v58  ;;  %v4628_v37 = vpack.c.bf16 %v4515_v3, %v4499_v14  ;;  %v4188_v11 = vpop.f32.mrb[16].mxu0 }
 0x35a   :  { %v4630_v28 = vpack.c.bf16 %v4517_v21, %v4501_v34  ;;  %v4189_v4 = vadd.f32 %v4188_v11, %v8906_v24  ;;  %v4269_v46 = vpop.f32.mrb[16].mxu1  ;;  %v4190_v59 = vpop.f32.mrb[17].mxu0 }
 0x35b   :  { %v4270_v57 = vadd.f32 %v4269_v46, %v8906_v24  ;;  %v4191_v49 = vadd.f32 %v4190_v59, %v8906_v24  ;;  %v4271_v12 = vpop.f32.mrb[17].mxu1  ;;  %v4192_v63 = vpop.f32.mrb[18].mxu0  ;;  %4907 = vmatprep.subr.bf16.mxu0 %v4628_v37 }
 0x35c   :  { %v4272_v44 = vadd.f32 %v4271_v12, %v8906_v24  ;;  %v4193_v56 = vadd.f32 %v4192_v63, %v8904_v36  ;;  %v4273_v2 = vpop.f32.mrb[18].mxu1  ;;  %4948 = vmatprep.subr.bf16.mxu1 %v4630_v28  ;;  %v4194_v26 = vpop.f32.mrb[19].mxu0  ;;  %4908 = vmatpush1.bf16.msra.mxu0 %v4627_v19  ;;  %v4530_v20 = vmax.f32 %v4189_v4, 0.0 }
 0x35d   :  { %v4274_v51 = vadd.f32 %v4273_v2, %v8904_v36  ;;  %v4195_v47 = vadd.f32 %v4194_v26, %v8904_v36  ;;  %v4275_v50 = vpop.f32.mrb[19].mxu1  ;;  %4949 = vmatpush1.bf16.msra.mxu1 %v4629_v45  ;;  %v4532_v27 = vmax.f32 %v4270_v57, 0.0  ;;  %v4531_v10 = vmax.f32 %v4191_v49, 0.0 }
 0x35e   :  { %v4546_v8 = vmax.f32 %v4193_v56, 0.0  ;;  %v4276_v55 = vadd.f32 %v4275_v50, %v8904_v36  ;;  %v4533_v0 = vmax.f32 %v4272_v44, 0.0 }
 0x35f   :  { %v4548_v53 = vmax.f32 %v4274_v51, 0.0  ;;  %v4547_v23 = vmax.f32 %v4195_v47, 0.0 }
 0x360   :  { %v4643_v29 = vpack.c.bf16 %v4546_v8, %v4530_v20  ;;  %v4549_v5 = vmax.f32 %v4276_v55, 0.0 }
 0x361   :  { %v4645_v48 = vpack.c.bf16 %v4548_v53, %v4532_v27  ;;  %v4644_v18 = vpack.c.bf16 %v4547_v23, %v4531_v10  ;;  %v4198_v17 = vpop.f32.mrb[20].mxu0 }
 0x362   :  { %v4646_v6 = vpack.c.bf16 %v4549_v5, %v4533_v0  ;;  %v4199_v15 = vadd.f32 %v4198_v17, %v8924_v41  ;;  %v4279_v35 = vpop.f32.mrb[20].mxu1  ;;  %v4200_v60 = vpop.f32.mrb[21].mxu0 }
 0x363   :  { %v4280_v40 = vadd.f32 %v4279_v35, %v8924_v41  ;;  %v4201_v52 = vadd.f32 %v4200_v60, %v8924_v41  ;;  %v4281_v42 = vpop.f32.mrb[21].mxu1  ;;  %v4202_v30 = vpop.f32.mrb[22].mxu0  ;;  %4909 = vmatprep.subr.bf16.mxu0 %v4644_v18 }
 0x364   :  { %v4282_v22 = vadd.f32 %v4281_v42, %v8924_v41  ;;  %v4203_v1 = vadd.f32 %v4202_v30, %v8922_v25  ;;  %v4283_v16 = vpop.f32.mrb[22].mxu1  ;;  %4950 = vmatprep.subr.bf16.mxu1 %v4646_v6  ;;  %v4204_v61 = vpop.f32.mrb[23].mxu0  ;;  %4910 = vmatpush1.bf16.msra.mxu0 %v4643_v29  ;;  %v4562_v58 = vmax.f32 %v4199_v15, 0.0 }
 0x365   :  { %v4284_v32 = vadd.f32 %v4283_v16, %v8922_v25  ;;  %v4205_v31 = vadd.f32 %v4204_v61, %v8922_v25  ;;  %v4285_v62 = vpop.f32.mrb[23].mxu1  ;;  %4951 = vmatpush1.bf16.msra.mxu1 %v4645_v48  ;;  %v4564_v3 = vmax.f32 %v4280_v40, 0.0  ;;  %v4563_v34 = vmax.f32 %v4201_v52, 0.0 }
 0x366   :  { %v4578_v14 = vmax.f32 %v4203_v1, 0.0  ;;  %v4286_v7 = vadd.f32 %v4285_v62, %v8922_v25  ;;  %v4565_v45 = vmax.f32 %v4282_v22, 0.0 }
 0x367   :  { %v4580_v19 = vmax.f32 %v4284_v32, 0.0  ;;  %v4579_v21 = vmax.f32 %v4205_v31, 0.0 }
 0x368   :  { %v4659_v37 = vpack.c.bf16 %v4578_v14, %v4562_v58  ;;  %v4581_v11 = vmax.f32 %v4286_v7, 0.0 }
 0x369   :  { %v4661_v28 = vpack.c.bf16 %v4580_v19, %v4564_v3  ;;  %v4660_v4 = vpack.c.bf16 %v4579_v21, %v4563_v34  ;;  %v4208_v46 = vpop.f32.mrb[24].mxu0 }
 0x36a   :  { %v4662_v59 = vpack.c.bf16 %v4581_v11, %v4565_v45  ;;  %v4209_v57 = vadd.f32 %v4208_v46, %v8940_v39  ;;  %v4289_v49 = vpop.f32.mrb[24].mxu1  ;;  %v4210_v12 = vpop.f32.mrb[25].mxu0 }
 0x36b   :  { %v4290_v63 = vadd.f32 %v4289_v49, %v8940_v39  ;;  %v4211_v44 = vadd.f32 %v4210_v12, %v8940_v39  ;;  %v4291_v56 = vpop.f32.mrb[25].mxu1  ;;  %4911 = vmatprep.subr.bf16.mxu0 %v4660_v4  ;;  %v4212_v2 = vpop.f32.mrb[26].mxu0 }
 0x36c   :  { %v4594_v26 = vmax.f32 %v4209_v57, 0.0  ;;  %v4292_v51 = vadd.f32 %v4291_v56, %v8940_v39  ;;  %4952 = vmatprep.subr.bf16.mxu1 %v4662_v59  ;;  %4912 = vmatpush1.bf16.msra.mxu0 %v4659_v37  ;;  %v4293_v47 = vpop.f32.mrb[26].mxu1  ;;  %v4213_v50 = vpop.f32.mrb[27].mxu0 }
 0x36d   :  { %v4596_v20 = vmax.f32 %v4290_v63, 0.0  ;;  %v4595_v8 = vmax.f32 %v4211_v44, 0.0  ;;  %4953 = vmatpush1.bf16.msra.mxu1 %v4661_v28  ;;  %v4294_v55 = vpop.f32.mrb[27].mxu1 }
 0x36e   :  { %v4675_v27 = vpack.c.bf16 %v4594_v26, %v4594_v26  ;;  %v4597_v10 = vmax.f32 %v4292_v51, 0.0 }
 0x36f   :  { %v4677_v53 = vpack.c.bf16 %v4596_v20, %v4596_v20  ;;  %v4676_v23 = vpack.c.bf16 %v4595_v8, %v4595_v8 }
 0x370   :  { %v4678_v0 = vpack.c.bf16 %v4597_v10, %v4597_v10  ;;  %v4718_v29 = vsel %vm3761_vm1, %v4675_v27, 0 }
 0x371   :  { %5761 = vmatprep.subr.msk.bf16.mxu0 %vm3761_vm1, %v4676_v23  ;;  %v4724_v5 = vsel %vm3761_vm1, %v4677_v53, 0 }
 0x372   :  { %5763 = vmatprep.subr.msk.bf16.mxu1 %vm3761_vm1, %v4678_v0  ;;  %4914 = vmatpush1.bf16.msra.mxu0 %v4718_v29 }
 0x373   :  { %4955 = vmatpush1.bf16.msra.mxu1 %v4724_v5 }
 0x375   :  { %5762 = vmatmul.mubr.msk.bf16.vlgmr.msra.gmra.mrb[56].mxu0 %vm4689_vm3, %v8957_v38 }
 0x376   :  { %5764 = vmatmul.mubr.msk.bf16.vlgmr.msra.gmra.mrb[56].mxu1 %vm4689_vm3, %v8957_v38  ;;  %5019 = vmatprep.mubr.bf16.mxu0 %v9474_v54 }
 0x377   :  { %5060 = vmatprep.mubr.bf16.mxu1 %v9474_v54 }
 0x3b0   :  { %v4330_v48 = vpop.f32.mrb[28].mxu0 }
 0x3b1   :  { %v4331_v18 = vadd.f32 %v4330_v48, %v8867_v9  ;;  %v4411_v17 = vpop.f32.mrb[28].mxu1  ;;  %v4332_v6 = vpop.f32.mrb[29].mxu0 }
 0x3b2   :  { %v4412_v15 = vadd.f32 %v4411_v17, %v8867_v9  ;;  %v4333_v35 = vadd.f32 %v4332_v6, %v8867_v9  ;;  %v4413_v60 = vpop.f32.mrb[29].mxu1  ;;  %v4334_v40 = vpop.f32.mrb[30].mxu0 }
 0x3b3   :  { %v4414_v52 = vadd.f32 %v4413_v60, %v8867_v9  ;;  %v4335_v42 = vadd.f32 %v4334_v40, %v8864_v13  ;;  %v4415_v30 = vpop.f32.mrb[30].mxu1  ;;  %v4336_v22 = vpop.f32.mrb[31].mxu0  ;;  %v4470_v61 = vmax.f32 %v4331_v18, 0.0 }
 0x3b4   :  { %v4416_v1 = vadd.f32 %v4415_v30, %v8864_v13  ;;  %v4337_v54 = vadd.f32 %v4336_v22, %v8864_v13  ;;  %v4417_v16 = vpop.f32.mrb[31].mxu1  ;;  %v4472_v62 = vmax.f32 %v4412_v15, 0.0  ;;  %v4471_v58 = vmax.f32 %v4333_v35, 0.0 }
 0x3b5   :  { %v4486_v32 = vmax.f32 %v4335_v42, 0.0  ;;  %v4418_v31 = vadd.f32 %v4417_v16, %v8864_v13  ;;  %v4473_v3 = vmax.f32 %v4414_v52, 0.0 }
 0x3b6   :  { %v4488_v14 = vmax.f32 %v4416_v1, 0.0  ;;  %v4487_v7 = vmax.f32 %v4337_v54, 0.0 }
 0x3b7   :  { %v4615_v34 = vpack.c.bf16 %v4486_v32, %v4470_v61  ;;  %v4489_v9 = vmax.f32 %v4418_v31, 0.0 }
 0x3b8   :  { %v4617_v19 = vpack.c.bf16 %v4488_v14, %v4472_v62  ;;  %v4616_v21 = vpack.c.bf16 %v4487_v7, %v4471_v58  ;;  %v4340_v45 = vpop.f32.mrb[32].mxu0 }
 0x3b9   :  { %v4618_v37 = vpack.c.bf16 %v4489_v9, %v4473_v3  ;;  %v4341_v11 = vadd.f32 %v4340_v45, %v8888_v43  ;;  %v4421_v28 = vpop.f32.mrb[32].mxu1  ;;  %v4342_v4 = vpop.f32.mrb[33].mxu0 }
 0x3ba   :  { %v4422_v46 = vadd.f32 %v4421_v28, %v8888_v43  ;;  %v4343_v59 = vadd.f32 %v4342_v4, %v8888_v43  ;;  %v4423_v13 = vpop.f32.mrb[33].mxu1  ;;  %v4344_v57 = vpop.f32.mrb[34].mxu0  ;;  %4987 = vmatprep.subr.bf16.mxu0 %v4616_v21 }
 0x3bb   :  { %v4424_v49 = vadd.f32 %v4423_v13, %v8888_v43  ;;  %v4345_v12 = vadd.f32 %v4344_v57, %v8886_v33  ;;  %v4425_v63 = vpop.f32.mrb[34].mxu1  ;;  %5028 = vmatprep.subr.bf16.mxu1 %v4618_v37  ;;  %v4346_v44 = vpop.f32.mrb[35].mxu0  ;;  %4988 = vmatpush1.bf16.msra.mxu0 %v4615_v34  ;;  %v4502_v51 = vmax.f32 %v4341_v11, 0.0 }
 0x3bc   :  { %v4426_v56 = vadd.f32 %v4425_v63, %v8886_v33  ;;  %v4347_v2 = vadd.f32 %v4346_v44, %v8886_v33  ;;  %v4427_v26 = vpop.f32.mrb[35].mxu1  ;;  %5029 = vmatpush1.bf16.msra.mxu1 %v4617_v19  ;;  %v4504_v20 = vmax.f32 %v4422_v46, 0.0  ;;  %v4503_v8 = vmax.f32 %v4343_v59, 0.0 }
 0x3bd   :  { %v4518_v47 = vmax.f32 %v4345_v12, 0.0  ;;  %v4428_v50 = vadd.f32 %v4427_v26, %v8886_v33  ;;  %v4505_v27 = vmax.f32 %v4424_v49, 0.0 }
 0x3be   :  { %v4520_v55 = vmax.f32 %v4426_v56, 0.0  ;;  %v4519_v43 = vmax.f32 %v4347_v2, 0.0 }
 0x3bf   :  { %v4631_v10 = vpack.c.bf16 %v4518_v47, %v4502_v51  ;;  %v4521_v53 = vmax.f32 %v4428_v50, 0.0 }
 0x3c0   :  { %v4633_v23 = vpack.c.bf16 %v4520_v55, %v4504_v20  ;;  %v4632_v0 = vpack.c.bf16 %v4519_v43, %v4503_v8  ;;  %v4350_v29 = vpop.f32.mrb[36].mxu0 }
 0x3c1   :  { %v4634_v5 = vpack.c.bf16 %v4521_v53, %v4505_v27  ;;  %v4351_v48 = vadd.f32 %v4350_v29, %v8906_v24  ;;  %v4431_v18 = vpop.f32.mrb[36].mxu1  ;;  %v4352_v17 = vpop.f32.mrb[37].mxu0 }
 0x3c2   :  { %v4432_v6 = vadd.f32 %v4431_v18, %v8906_v24  ;;  %v4353_v15 = vadd.f32 %v4352_v17, %v8906_v24  ;;  %v4433_v33 = vpop.f32.mrb[37].mxu1  ;;  %v4354_v35 = vpop.f32.mrb[38].mxu0  ;;  %4989 = vmatprep.subr.bf16.mxu0 %v4632_v0 }
 0x3c3   :  { %v4434_v60 = vadd.f32 %v4433_v33, %v8906_v24  ;;  %v4355_v40 = vadd.f32 %v4354_v35, %v8904_v36  ;;  %v4435_v52 = vpop.f32.mrb[38].mxu1  ;;  %5030 = vmatprep.subr.bf16.mxu1 %v4634_v5  ;;  %v4356_v42 = vpop.f32.mrb[39].mxu0  ;;  %4990 = vmatpush1.bf16.msra.mxu0 %v4631_v10  ;;  %v4534_v54 = vmax.f32 %v4351_v48, 0.0 }
 0x3c4   :  { %v4436_v30 = vadd.f32 %v4435_v52, %v8904_v36  ;;  %v4357_v22 = vadd.f32 %v4356_v42, %v8904_v36  ;;  %v4437_v1 = vpop.f32.mrb[39].mxu1  ;;  %5031 = vmatpush1.bf16.msra.mxu1 %v4633_v23  ;;  %v4536_v32 = vmax.f32 %v4432_v6, 0.0  ;;  %v4535_v31 = vmax.f32 %v4353_v15, 0.0 }
 0x3c5   :  { %v4550_v16 = vmax.f32 %v4355_v40, 0.0  ;;  %v4438_v61 = vadd.f32 %v4437_v1, %v8904_v36  ;;  %v4537_v58 = vmax.f32 %v4434_v60, 0.0 }
 0x3c6   :  { %v4552_v62 = vmax.f32 %v4436_v30, 0.0  ;;  %v4551_v24 = vmax.f32 %v4357_v22, 0.0 }
 0x3c7   :  { %v4647_v14 = vpack.c.bf16 %v4550_v16, %v4534_v54  ;;  %v4553_v7 = vmax.f32 %v4438_v61, 0.0  ;;  %v9094_v54 = vpop.permute.xlu0 %4686 }
 0x3c8   :  { %v4649_v3 = vpack.c.bf16 %v4552_v62, %v4536_v32  ;;  %v4648_v34 = vpack.c.bf16 %v4551_v24, %v4535_v31  ;;  %v4360_v9 = vpop.f32.mrb[40].mxu0 }
 0x3c9   :  { %v4650_v19 = vpack.c.bf16 %v4553_v7, %v4537_v58  ;;  %v4361_v21 = vadd.f32 %v4360_v9, %v8924_v41  ;;  %v4441_v45 = vpop.f32.mrb[40].mxu1  ;;  %v4362_v37 = vpop.f32.mrb[41].mxu0 }
 0x3ca   :  { %v4442_v11 = vadd.f32 %v4441_v45, %v8924_v41  ;;  %v4363_v28 = vadd.f32 %v4362_v37, %v8924_v41  ;;  %v4443_v36 = vpop.f32.mrb[41].mxu1  ;;  %v4364_v4 = vpop.f32.mrb[42].mxu0  ;;  %4991 = vmatprep.subr.bf16.mxu0 %v4648_v34 }
 0x3cb   :  { %v4444_v46 = vadd.f32 %v4443_v36, %v8924_v41  ;;  %v4365_v59 = vadd.f32 %v4364_v4, %v8922_v25  ;;  %v4445_v13 = vpop.f32.mrb[42].mxu1  ;;  %5032 = vmatprep.subr.bf16.mxu1 %v4650_v19  ;;  %v4366_v57 = vpop.f32.mrb[43].mxu0  ;;  %4992 = vmatpush1.bf16.msra.mxu0 %v4647_v14  ;;  %v4566_v44 = vmax.f32 %v4361_v21, 0.0 }
 0x3cc   :  { %v4446_v49 = vadd.f32 %v4445_v13, %v8922_v25  ;;  %v4367_v12 = vadd.f32 %v4366_v57, %v8922_v25  ;;  %v4447_v63 = vpop.f32.mrb[43].mxu1  ;;  %5033 = vmatpush1.bf16.msra.mxu1 %v4649_v3  ;;  %v4568_v26 = vmax.f32 %v4442_v11, 0.0  ;;  %v4567_v51 = vmax.f32 %v4363_v28, 0.0  ;;  %v9103_v19 = vpop.permute.xlu1 %5088 }
 0x3cd   :  { %v4582_v56 = vmax.f32 %v4365_v59, 0.0  ;;  %v4448_v2 = vadd.f32 %v4447_v63, %v8922_v25  ;;  %v4569_v50 = vmax.f32 %v4444_v46, 0.0  ;;  %v5209_v11 = vlaneseq }
 0x3ce   :  { %v4584_v47 = vmax.f32 %v4446_v49, 0.0  ;;  %v4583_v41 = vmax.f32 %v4367_v12, 0.0 }
 0x3cf   :  { %v4663_v20 = vpack.c.bf16 %v4582_v56, %v4566_v44  ;;  %v4585_v8 = vmax.f32 %v4448_v2, 0.0  ;;  %v5210_v12 = vshrl.u32 %v5209_v11, 7 }
 0x3d0   :  { %v4665_v55 = vpack.c.bf16 %v4584_v47, %v4568_v26  ;;  %v4664_v43 = vpack.c.bf16 %v4583_v41, %v4567_v51  ;;  %v4370_v27 = vpop.f32.mrb[44].mxu0 }
 0x3d1   :  { %v4666_v10 = vpack.c.bf16 %v4585_v8, %v4569_v50  ;;  %v4371_v53 = vadd.f32 %v4370_v27, %v8940_v39  ;;  %v4451_v23 = vpop.f32.mrb[44].mxu1  ;;  %v4372_v0 = vpop.f32.mrb[45].mxu0  ;;  %v5211_v50 = vsub.s32 0, %v5210_v12 }
 0x3d2   :  { %v4452_v29 = vadd.f32 %v4451_v23, %v8940_v39  ;;  %v4373_v5 = vadd.f32 %v4372_v0, %v8940_v39  ;;  %v4453_v25 = vpop.f32.mrb[45].mxu1  ;;  %v4374_v48 = vpop.f32.mrb[46].mxu0  ;;  %4993 = vmatprep.subr.bf16.mxu0 %v4664_v43 }
 0x3d3   :  { %v4598_v18 = vmax.f32 %v4371_v53, 0.0  ;;  %v4454_v17 = vadd.f32 %v4453_v25, %v8940_v39  ;;  %v4455_v6 = vpop.f32.mrb[46].mxu1  ;;  %5034 = vmatprep.subr.bf16.mxu1 %v4666_v10  ;;  %v4375_v15 = vpop.f32.mrb[47].mxu0  ;;  %4994 = vmatpush1.bf16.msra.mxu0 %v4663_v20 }
 0x3d4   :  { %v4600_v33 = vmax.f32 %v4452_v29, 0.0  ;;  %v4599_v35 = vmax.f32 %v4373_v5, 0.0  ;;  %v4456_v60 = vpop.f32.mrb[47].mxu1  ;;  %5035 = vmatpush1.bf16.msra.mxu1 %v4665_v55  ;;  %v5207_v8 = vpop.permute.xlu0 %5206 }
 0x3d5   :  { %v4679_v40 = vpack.c.bf16 %v4598_v18, %v4598_v18  ;;  %v4601_v52 = vmax.f32 %v4454_v17, 0.0  ;;  %v9113_v0 = vrot.slane %v5207_v8, %v5211_v50 }
 0x3d6   :  { %v4681_v42 = vpack.c.bf16 %v4600_v33, %v4600_v33  ;;  %v4680_v30 = vpack.c.bf16 %v4599_v35, %v4599_v35 }
 0x3d7   :  { %v4682_v22 = vpack.c.bf16 %v4601_v52, %v4601_v52  ;;  %v4730_v1 = vsel %vm3761_vm1, %v4679_v40, 0 }
 0x3d8   :  { %v4775_v16 = vpop.f32.mrb[48].mxu0  ;;  %5765 = vmatprep.subr.msk.bf16.mxu0 %vm3761_vm1, %v4680_v30  ;;  %v4736_v39 = vsel %vm3761_vm1, %v4681_v42, 0 }
 0x3d9   :  { %v4776_v61 = vadd.f32 %v4775_v16, %v9094_v54  ;;  %v4816_v32 = vpop.f32.mrb[48].mxu1  ;;  %5767 = vmatprep.subr.msk.bf16.mxu1 %vm3761_vm1, %v4682_v22  ;;  %v4777_v31 = vpop.f32.mrb[49].mxu0  ;;  %4996 = vmatpush1.bf16.msra.mxu0 %v4730_v1 }
 0x3da   :  { %v4817_v62 = vadd.f32 %v4816_v32, %v9094_v54  ;;  %v4778_v24 = vadd.f32 %v4777_v31, %v9094_v54  ;;  %v4818_v58 = vpop.f32.mrb[49].mxu1  ;;  %5037 = vmatpush1.bf16.msra.mxu1 %v4736_v39  ;;  %v4779_v14 = vpop.f32.mrb[50].mxu0 }
 0x3db   :  { %v5069_v7 = vmax.f32 %v4776_v61, 0.0  ;;  %v4819_v3 = vadd.f32 %v4818_v58, %v9094_v54  ;;  %v4820_v34 = vpop.f32.mrb[50].mxu1  ;;  %v4780_v9 = vpop.f32.mrb[51].mxu0  ;;  %v6471_v14 = vmov 1966171168  }
 0x3dc   :  { %v5071_v21 = vmax.f32 %v4817_v62, 0.0  ;;  %v5070_v45 = vmax.f32 %v4778_v24, 0.0  ;;  %5766 = vmatmul.mubr.msk.bf16.vlgmr.msra.gmra.mrb[60].mxu0 %vm4689_vm3, %v8957_v38  ;;  %v4821_v37 = vpop.f32.mrb[51].mxu1 }
 0x3dd   :  { %v5091_v28 = vmul.f32 %v9103_v19, %v5069_v7  ;;  %v5072_v36 = vmax.f32 %v4819_v3, 0.0  ;;  %5768 = vmatmul.mubr.msk.bf16.vlgmr.msra.gmra.mrb[60].mxu1 %vm4689_vm3, %v8957_v38  ;;  %v5330_v7 = vunpack.c.l.s4 %v6471_v14 }
 0x3de   :  { %v5093_v4 = vmul.f32 %v9103_v19, %v5071_v21  ;;  %v5092_v46 = vmul.f32 %v9103_v19, %v5070_v45 }
 0x3df   :  { %v5107_v59 = vrot.slane %v5091_v28, 4  ;;  %v5094_v13 = vmul.f32 %v9103_v19, %v5072_v36  ;;  %v5331_v3 = vunpack.c.0.s8 %v5330_v7 }
 0x3e0   :  { %v5119_v57 = vrot.slane %v5093_v4, 4  ;;  %v5113_v49 = vrot.slane %v5092_v46, 4 }
 0x3e1   :  { %v5108_v63 = vadd.f32 %v5107_v59, %v5091_v28  ;;  %v5125_v44 = vrot.slane %v5094_v13, 4  ;;  %v9119_v21 = vsub.s32 %v5331_v3, %v5210_v12 }
 0x3e2   :  { %v5120_v56 = vadd.f32 %v5119_v57, %v5093_v4  ;;  %v5114_v2 = vadd.f32 %v5113_v49, %v5092_v46 }
 0x3e3   :  { %v5109_v26 = vrot.slane %v5108_v63, 2  ;;  %v5126_v51 = vadd.f32 %v5125_v44, %v5094_v13 }
 0x3e4   :  { %v5121_v47 = vrot.slane %v5120_v56, 2  ;;  %v5115_v41 = vrot.slane %v5114_v2, 2 }
 0x3e5   :  { %v5110_v38 = vadd.f32 %v5109_v26, %v5108_v63  ;;  %v5127_v20 = vrot.slane %v5126_v51, 2 }
 0x3e6   :  { %v5122_v55 = vadd.f32 %v5121_v47, %v5120_v56  ;;  %v5116_v43 = vadd.f32 %v5115_v41, %v5114_v2 }
 0x3e7   :  { %v5111_v27 = vrot.slane %v5110_v38, 1  ;;  %v5128_v10 = vadd.f32 %v5127_v20, %v5126_v51 }
 0x3e8   :  { %v5123_v53 = vrot.slane %v5122_v55, 1  ;;  %v5117_v23 = vrot.slane %v5116_v43, 1 }
 0x3e9   :  { %v5112_v29 = vadd.f32 %v5111_v27, %v5110_v38  ;;  %v5129_v5 = vrot.slane %v5128_v10, 1 }
 0x3ea   :  { %v5124_v25 = vadd.f32 %v5123_v53, %v5122_v55  ;;  %v5118_v48 = vadd.f32 %v5117_v23, %v5116_v43 }
 0x3eb   :  { %v5213_v18 = vadd.f32 %v9113_v0, %v5112_v29  ;;  %v5130_v17 = vadd.f32 %v5129_v5, %v5128_v10 }
 0x3ec   :  { %v5215_v6 = vadd.f32 %v9113_v0, %v5124_v25  ;;  %v5214_v15 = vadd.f32 %v9113_v0, %v5118_v48 }
 0x3ed   :  { %v5229_v33 = vsub.f32 0.0, %v5213_v18  ;;  %v5216_v35 = vadd.f32 %v9113_v0, %v5130_v17 }
 0x3ee   :  { %v5231_v60 = vsub.f32 0.0, %v5215_v6  ;;  %v5230_v40 = vsub.f32 0.0, %v5214_v15 }
 0x3ef   :  { %v5245_v52 = vmul.f32 1.442695, %v5229_v33  ;;  %v5232_v42 = vsub.f32 0.0, %v5216_v35 }
 0x3f0   :  { %v5249_v30 = vmul.f32 1.442695, %v5231_v60  ;;  %v5247_v22 = vmul.f32 1.442695, %v5230_v40 }
 0x3f1   :  { %6346 = vpow2.f32 %v5245_v52  ;;  %v5251_v1 = vmul.f32 1.442695, %v5232_v42 }
 0x3f2   :  { %6348 = vpow2.f32 %v5249_v30 }
 0x3f3   :  { %6350 = vpow2.f32 %v5247_v22 }
 0x3f4   :  { %6352 = vpow2.f32 %v5251_v1 }
 0x3fb   :  { %v6347_v16 = vpop.eup %6346 }
 0x3fc   :  { %v6349_v39 = vpop.eup %6348  ;;  %v5277_v61 = vadd.f32 1.0, %v6347_v16 }
 0x3fd   :  { %v6351_v32 = vpop.eup %6350  ;;  %v5279_v31 = vadd.f32 1.0, %v6349_v39 }
 0x3fe   :  { %v6353_v62 = vpop.eup %6352  ;;  %6354 = vrcp.f32 %v5277_v61  ;;  %v5278_v24 = vadd.f32 1.0, %v6351_v32 }
 0x3ff   :  { %6356 = vrcp.f32 %v5279_v31  ;;  %v5280_v58 = vadd.f32 1.0, %v6353_v62 }
 0x400   :  { %6358 = vrcp.f32 %v5278_v24 }
 0x401   :  { %6360 = vrcp.f32 %v5280_v58 }
 0x408   :  { %v6355_v34 = vpop.eup %6354 }
 0x409   :  { %v6357_v9 = vpop.eup %6356 }
 0x40a   :  { %v6359_v45 = vpop.eup %6358 }
 0x40b   :  { %v6361_v37 = vpop.eup %6360  ;;  %v5325_v11 = vcombine.low %v6355_v34, %v6359_v45 }
 0x40c   :  { %v5326_v28 = vcombine.low %v6357_v9, %v6361_v37 }
 0x40d   :  { %v9122_v36 = vrot.slane %v5325_v11, %v9119_v21 }
 0x40e   :  { %v9125_v4 = vrot.slane %v5326_v28, %v9119_v21 }
 0x410   :  { %v5357_v46 = vcombine.low %v9122_v36, %v9125_v4  ;;  %v4857_v59 = vpop.f32.mrb[52].mxu0 }
 0x411   :  { %v4858_v13 = vadd.f32 %v4857_v59, %v9094_v54  ;;  %v4898_v57 = vpop.f32.mrb[52].mxu1  ;;  %v4859_v49 = vpop.f32.mrb[53].mxu0 }
 0x412   :  { %v4899_v12 = vadd.f32 %v4898_v57, %v9094_v54  ;;  %v4860_v63 = vadd.f32 %v4859_v49, %v9094_v54  ;;  %v4900_v44 = vpop.f32.mrb[53].mxu1  ;;  %v4861_v56 = vpop.f32.mrb[54].mxu0 }
 0x413   :  { %v5073_v2 = vmax.f32 %v4858_v13, 0.0  ;;  %v4901_v26 = vadd.f32 %v4900_v44, %v9094_v54  ;;  %v4902_v51 = vpop.f32.mrb[54].mxu1  ;;  %v4862_v47 = vpop.f32.mrb[55].mxu0 }
 0x414   :  { %v5075_v41 = vmax.f32 %v4899_v12, 0.0  ;;  %v5074_v50 = vmax.f32 %v4860_v63, 0.0  ;;  %v4903_v38 = vpop.f32.mrb[55].mxu1 }
 0x415   :  { %v5095_v20 = vmul.f32 %v9103_v19, %v5073_v2  ;;  %v5076_v8 = vmax.f32 %v4901_v26, 0.0 }
 0x416   :  { %v5097_v55 = vmul.f32 %v9103_v19, %v5075_v41  ;;  %v5096_v43 = vmul.f32 %v9103_v19, %v5074_v50 }
 0x417   :  { %v5131_v27 = vrot.slane %v5095_v20, 4  ;;  %v5098_v10 = vmul.f32 %v9103_v19, %v5076_v8 }
 0x418   :  { %v5143_v53 = vrot.slane %v5097_v55, 4  ;;  %v5137_v23 = vrot.slane %v5096_v43, 4 }
 0x419   :  { %v5132_v29 = vadd.f32 %v5131_v27, %v5095_v20  ;;  %v5149_v5 = vrot.slane %v5098_v10, 4 }
 0x41a   :  { %v5144_v25 = vadd.f32 %v5143_v53, %v5097_v55  ;;  %v5138_v48 = vadd.f32 %v5137_v23, %v5096_v43 }
 0x41b   :  { %v5133_v18 = vrot.slane %v5132_v29, 2  ;;  %v5150_v17 = vadd.f32 %v5149_v5, %v5098_v10  ;;  %v5365_v10 = vrot.slane %v5357_v46, %v9119_v21 }
 0x41c   :  { %v5145_v6 = vrot.slane %v5144_v25, 2  ;;  %v5139_v15 = vrot.slane %v5138_v48, 2 }
 0x41d   :  { %v5134_v33 = vadd.f32 %v5133_v18, %v5132_v29  ;;  %v5151_v35 = vrot.slane %v5150_v17, 2 }
 0x41e   :  { %v5146_v60 = vadd.f32 %v5145_v6, %v5144_v25  ;;  %v5140_v40 = vadd.f32 %v5139_v15, %v5138_v48 }
 0x41f   :  { %v5135_v52 = vrot.slane %v5134_v33, 1  ;;  %v5152_v42 = vadd.f32 %v5151_v35, %v5150_v17 }
 0x420   :  { %v5147_v30 = vrot.slane %v5146_v60, 1  ;;  %v5141_v22 = vrot.slane %v5140_v40, 1 }
 0x421   :  { %v5136_v1 = vadd.f32 %v5135_v52, %v5134_v33  ;;  %v5153_v16 = vrot.slane %v5152_v42, 1 }
 0x422   :  { %v5148_v39 = vadd.f32 %v5147_v30, %v5146_v60  ;;  %v5142_v61 = vadd.f32 %v5141_v22, %v5140_v40 }
 0x423   :  { %v5217_v32 = vadd.f32 %v9113_v0, %v5136_v1  ;;  %v5154_v31 = vadd.f32 %v5153_v16, %v5152_v42 }
 0x424   :  { %v5219_v62 = vadd.f32 %v9113_v0, %v5148_v39  ;;  %v5218_v24 = vadd.f32 %v9113_v0, %v5142_v61 }
 0x425   :  { %v5233_v58 = vsub.f32 0.0, %v5217_v32  ;;  %v5220_v14 = vadd.f32 %v9113_v0, %v5154_v31 }
 0x426   :  { %v5235_v7 = vsub.f32 0.0, %v5219_v62  ;;  %v5234_v3 = vsub.f32 0.0, %v5218_v24 }
 0x427   :  { %v5253_v34 = vmul.f32 1.442695, %v5233_v58  ;;  %v5236_v9 = vsub.f32 0.0, %v5220_v14 }
 0x428   :  { %v5257_v45 = vmul.f32 1.442695, %v5235_v7  ;;  %v5255_v37 = vmul.f32 1.442695, %v5234_v3 }
 0x429   :  { %6362 = vpow2.f32 %v5253_v34  ;;  %v5259_v11 = vmul.f32 1.442695, %v5236_v9 }
 0x42a   :  { %6364 = vpow2.f32 %v5257_v45 }
 0x42b   :  { %6366 = vpow2.f32 %v5255_v37 }
 0x42c   :  { %6368 = vpow2.f32 %v5259_v11 }
 0x433   :  { %v6363_v28 = vpop.eup %6362 }
 0x434   :  { %v6365_v59 = vpop.eup %6364  ;;  %v5281_v13 = vadd.f32 1.0, %v6363_v28 }
 0x435   :  { %v6367_v57 = vpop.eup %6366  ;;  %v5283_v49 = vadd.f32 1.0, %v6365_v59 }
 0x436   :  { %v6369_v12 = vpop.eup %6368  ;;  %6370 = vrcp.f32 %v5281_v13  ;;  %v5282_v63 = vadd.f32 1.0, %v6367_v57 }
 0x437   :  { %6372 = vrcp.f32 %v5283_v49  ;;  %v5284_v44 = vadd.f32 1.0, %v6369_v12 }
 0x438   :  { %6374 = vrcp.f32 %v5282_v63 }
 0x439   :  { %6376 = vrcp.f32 %v5284_v44 }
 0x440   :  { %v6371_v56 = vpop.eup %6370 }
 0x441   :  { %v6373_v2 = vpop.eup %6372 }
 0x442   :  { %v6375_v26 = vpop.eup %6374 }
 0x443   :  { %v6377_v51 = vpop.eup %6376  ;;  %v5327_v47 = vcombine.low %v6371_v56, %v6375_v26 }
 0x444   :  { %v5328_v41 = vcombine.low %v6373_v2, %v6377_v51 }
 0x445   :  { %v5349_v50 = vrot.slane %v5327_v47, %v9119_v21 }
 0x446   :  { %v5356_v38 = vrot.slane %v5328_v41, %v9119_v21 }
 0x448   :  { %v5358_v20 = vcombine.low %v5349_v50, %v5356_v38  ;;  %v4939_v8 = vpop.f32.mrb[56].mxu0 }
 0x449   :  { %v4940_v55 = vadd.f32 %v4939_v8, %v9094_v54  ;;  %v4980_v43 = vpop.f32.mrb[56].mxu1  ;;  %v4941_v27 = vpop.f32.mrb[57].mxu0 }
 0x44a   :  { %v5372_v53 = vrot.slane %v5358_v20, %v9119_v21  ;;  %v4981_v23 = vadd.f32 %v4980_v43, %v9094_v54  ;;  %v4942_v29 = vadd.f32 %v4941_v27, %v9094_v54  ;;  %v4982_v5 = vpop.f32.mrb[57].mxu1  ;;  %v4943_v25 = vpop.f32.mrb[58].mxu0 }
 0x44b   :  { %v5077_v48 = vmax.f32 %v4940_v55, 0.0  ;;  %v4983_v18 = vadd.f32 %v4982_v5, %v9094_v54  ;;  %v4984_v17 = vpop.f32.mrb[58].mxu1  ;;  %v4944_v6 = vpop.f32.mrb[59].mxu0 }
 0x44c   :  { %v5373_v15 = vcombine.low %v5365_v10, %v5372_v53  ;;  %v5079_v33 = vmax.f32 %v4981_v23, 0.0  ;;  %v5078_v35 = vmax.f32 %v4942_v29, 0.0  ;;  %v4985_v60 = vpop.f32.mrb[59].mxu1 }
 0x44d   :  { %v5099_v36 = vmul.f32 %v9103_v19, %v5077_v48  ;;  %v5080_v4 = vmax.f32 %v4983_v18, 0.0 }
 0x44e   :  { %5425 = vst [vmem:[#allocation3] sm:$0xff] %v5373_v15  ;;  %v5101_v46 = vmul.f32 %v9103_v19, %v5079_v33  ;;  %v5100_v40 = vmul.f32 %v9103_v19, %v5078_v35 }
 0x44f   :  { %v5155_v52 = vrot.slane %v5099_v36, 4  ;;  %v5102_v42 = vmul.f32 %v9103_v19, %v5080_v4 }
 0x450   :  { %v5167_v30 = vrot.slane %v5101_v46, 4  ;;  %v5161_v22 = vrot.slane %v5100_v40, 4 }
 0x451   :  { %v5156_v1 = vadd.f32 %v5155_v52, %v5099_v36  ;;  %v5173_v16 = vrot.slane %v5102_v42, 4 }
 0x452   :  { %v5168_v39 = vadd.f32 %v5167_v30, %v5101_v46  ;;  %v5162_v61 = vadd.f32 %v5161_v22, %v5100_v40 }
 0x453   :  { %v5157_v32 = vrot.slane %v5156_v1, 2  ;;  %v5174_v31 = vadd.f32 %v5173_v16, %v5102_v42 }
 0x454   :  { %v5169_v62 = vrot.slane %v5168_v39, 2  ;;  %v5163_v24 = vrot.slane %v5162_v61, 2 }
 0x455   :  { %v5158_v58 = vadd.f32 %v5157_v32, %v5156_v1  ;;  %v5175_v14 = vrot.slane %v5174_v31, 2 }
 0x456   :  { %v5170_v7 = vadd.f32 %v5169_v62, %v5168_v39  ;;  %v5164_v3 = vadd.f32 %v5163_v24, %v5162_v61 }
 0x457   :  { %v5159_v34 = vrot.slane %v5158_v58, 1  ;;  %v5176_v9 = vadd.f32 %v5175_v14, %v5174_v31 }
 0x458   :  { %v5171_v45 = vrot.slane %v5170_v7, 1  ;;  %v5165_v37 = vrot.slane %v5164_v3, 1 }
 0x459   :  { %v5160_v11 = vadd.f32 %v5159_v34, %v5158_v58  ;;  %v5177_v28 = vrot.slane %v5176_v9, 1 }
 0x45a   :  { %v5172_v59 = vadd.f32 %v5171_v45, %v5170_v7  ;;  %v5166_v13 = vadd.f32 %v5165_v37, %v5164_v3 }
 0x45b   :  { %v5221_v57 = vadd.f32 %v9113_v0, %v5160_v11  ;;  %v5178_v49 = vadd.f32 %v5177_v28, %v5176_v9 }
 0x45c   :  { %v5223_v12 = vadd.f32 %v9113_v0, %v5172_v59  ;;  %v5222_v63 = vadd.f32 %v9113_v0, %v5166_v13 }
 0x45d   :  { %v5237_v44 = vsub.f32 0.0, %v5221_v57  ;;  %v5224_v56 = vadd.f32 %v9113_v0, %v5178_v49 }
 0x45e   :  { %v5239_v2 = vsub.f32 0.0, %v5223_v12  ;;  %v5238_v26 = vsub.f32 0.0, %v5222_v63 }
 0x45f   :  { %v5261_v51 = vmul.f32 1.442695, %v5237_v44  ;;  %v5240_v47 = vsub.f32 0.0, %v5224_v56 }
 0x460   :  { %v5265_v41 = vmul.f32 1.442695, %v5239_v2  ;;  %v5263_v50 = vmul.f32 1.442695, %v5238_v26 }
 0x461   :  { %6378 = vpow2.f32 %v5261_v51  ;;  %v5267_v38 = vmul.f32 1.442695, %v5240_v47 }
 0x462   :  { %6380 = vpow2.f32 %v5265_v41 }
 0x463   :  { %6382 = vpow2.f32 %v5263_v50 }
 0x464   :  { %6384 = vpow2.f32 %v5267_v38 }
 0x46b   :  { %v6379_v20 = vpop.eup %6378 }
 0x46c   :  { %v6381_v8 = vpop.eup %6380  ;;  %v5285_v55 = vadd.f32 1.0, %v6379_v20 }
 0x46d   :  { %v6383_v43 = vpop.eup %6382  ;;  %v5287_v27 = vadd.f32 1.0, %v6381_v8 }
 0x46e   :  { %v6385_v10 = vpop.eup %6384  ;;  %6386 = vrcp.f32 %v5285_v55  ;;  %v5286_v53 = vadd.f32 1.0, %v6383_v43 }
 0x46f   :  { %6388 = vrcp.f32 %v5287_v27  ;;  %v5288_v23 = vadd.f32 1.0, %v6385_v10 }
 0x470   :  { %6390 = vrcp.f32 %v5286_v53 }
 0x471   :  { %6392 = vrcp.f32 %v5288_v23 }
 0x478   :  { %v6387_v29 = vpop.eup %6386 }
 0x479   :  { %v6389_v5 = vpop.eup %6388 }
 0x47a   :  { %v6391_v25 = vpop.eup %6390 }
 0x47b   :  { %v6393_v48 = vpop.eup %6392  ;;  %v5374_v18 = vcombine.low %v6387_v29, %v6391_v25 }
 0x47c   :  { %v5375_v17 = vcombine.low %v6389_v5, %v6393_v48 }
 0x47d   :  { %v9161_v6 = vrot.slane %v5374_v18, %v9119_v21 }
 0x47e   :  { %v9164_v15 = vrot.slane %v5375_v17, %v9119_v21 }
 0x480   :  { %v5406_v33 = vcombine.low %v9161_v6, %v9164_v15 }
 0x4af   :  { %v5021_v35 = vpop.f32.mrb[60].mxu0 }
 0x4b0   :  { %v5022_v60 = vadd.f32 %v5021_v35, %v9094_v54  ;;  %v5062_v36 = vpop.f32.mrb[60].mxu1  ;;  %v5023_v4 = vpop.f32.mrb[61].mxu0 }
 0x4b1   :  { %v5063_v46 = vadd.f32 %v5062_v36, %v9094_v54  ;;  %v5024_v40 = vadd.f32 %v5023_v4, %v9094_v54  ;;  %v5064_v52 = vpop.f32.mrb[61].mxu1  ;;  %v5025_v42 = vpop.f32.mrb[62].mxu0 }
 0x4b2   :  { %v5081_v30 = vmax.f32 %v5022_v60, 0.0  ;;  %v5065_v22 = vadd.f32 %v5064_v52, %v9094_v54  ;;  %v5066_v1 = vpop.f32.mrb[62].mxu1  ;;  %v5026_v16 = vpop.f32.mrb[63].mxu0 }
 0x4b3   :  { %v5083_v39 = vmax.f32 %v5063_v46, 0.0  ;;  %v5082_v61 = vmax.f32 %v5024_v40, 0.0  ;;  %v5067_v32 = vpop.f32.mrb[63].mxu1 }
 0x4b4   :  { %v5103_v31 = vmul.f32 %v9103_v19, %v5081_v30  ;;  %v5084_v62 = vmax.f32 %v5065_v22, 0.0 }
 0x4b5   :  { %v5105_v24 = vmul.f32 %v9103_v19, %v5083_v39  ;;  %v5104_v58 = vmul.f32 %v9103_v19, %v5082_v61  ;;  %v5414_v61 = vrot.slane %v5406_v33, %v9119_v21 }
 0x4b6   :  { %v5179_v14 = vrot.slane %v5103_v31, 4  ;;  %v5106_v7 = vmul.f32 %v9103_v19, %v5084_v62 }
 0x4b7   :  { %v5191_v3 = vrot.slane %v5105_v24, 4  ;;  %v5185_v34 = vrot.slane %v5104_v58, 4 }
 0x4b8   :  { %v5180_v9 = vadd.f32 %v5179_v14, %v5103_v31  ;;  %v5197_v45 = vrot.slane %v5106_v7, 4 }
 0x4b9   :  { %v5192_v54 = vadd.f32 %v5191_v3, %v5105_v24  ;;  %v5186_v37 = vadd.f32 %v5185_v34, %v5104_v58 }
 0x4ba   :  { %v5181_v11 = vrot.slane %v5180_v9, 2  ;;  %v5198_v28 = vadd.f32 %v5197_v45, %v5106_v7 }
 0x4bb   :  { %v5193_v59 = vrot.slane %v5192_v54, 2  ;;  %v5187_v13 = vrot.slane %v5186_v37, 2 }
 0x4bc   :  { %v5182_v57 = vadd.f32 %v5181_v11, %v5180_v9  ;;  %v5199_v49 = vrot.slane %v5198_v28, 2 }
 0x4bd   :  { %v5194_v12 = vadd.f32 %v5193_v59, %v5192_v54  ;;  %v5188_v63 = vadd.f32 %v5187_v13, %v5186_v37 }
 0x4be   :  { %v5183_v44 = vrot.slane %v5182_v57, 1  ;;  %v5200_v56 = vadd.f32 %v5199_v49, %v5198_v28 }
 0x4bf   :  { %v5195_v2 = vrot.slane %v5194_v12, 1  ;;  %v5189_v26 = vrot.slane %v5188_v63, 1 }
 0x4c0   :  { %v5184_v51 = vadd.f32 %v5183_v44, %v5182_v57  ;;  %v5201_v19 = vrot.slane %v5200_v56, 1 }
 0x4c1   :  { %v5196_v47 = vadd.f32 %v5195_v2, %v5194_v12  ;;  %v5190_v41 = vadd.f32 %v5189_v26, %v5188_v63 }
 0x4c2   :  { %v5225_v50 = vadd.f32 %v9113_v0, %v5184_v51  ;;  %v5202_v38 = vadd.f32 %v5201_v19, %v5200_v56 }
 0x4c3   :  { %v5227_v20 = vadd.f32 %v9113_v0, %v5196_v47  ;;  %v5226_v8 = vadd.f32 %v9113_v0, %v5190_v41 }
 0x4c4   :  { %v5241_v55 = vsub.f32 0.0, %v5225_v50  ;;  %v5228_v43 = vadd.f32 %v9113_v0, %v5202_v38 }
 0x4c5   :  { %v5243_v27 = vsub.f32 0.0, %v5227_v20  ;;  %v5242_v10 = vsub.f32 0.0, %v5226_v8 }
 0x4c6   :  { %v5269_v53 = vmul.f32 1.442695, %v5241_v55  ;;  %v5244_v23 = vsub.f32 0.0, %v5228_v43 }
 0x4c7   :  { %v5273_v29 = vmul.f32 1.442695, %v5243_v27  ;;  %v5271_v5 = vmul.f32 1.442695, %v5242_v10 }
 0x4c8   :  { %6394 = vpow2.f32 %v5269_v53  ;;  %v5275_v25 = vmul.f32 1.442695, %v5244_v23 }
 0x4c9   :  { %6396 = vpow2.f32 %v5273_v29 }
 0x4ca   :  { %6398 = vpow2.f32 %v5271_v5 }
 0x4cb   :  { %6400 = vpow2.f32 %v5275_v25 }
 0x4d2   :  { %v6395_v48 = vpop.eup %6394 }
 0x4d3   :  { %v6397_v18 = vpop.eup %6396  ;;  %v5289_v17 = vadd.f32 1.0, %v6395_v48 }
 0x4d4   :  { %v6399_v35 = vpop.eup %6398  ;;  %v5291_v60 = vadd.f32 1.0, %v6397_v18 }
 0x4d5   :  { %v6401_v36 = vpop.eup %6400  ;;  %6402 = vrcp.f32 %v5289_v17  ;;  %v5290_v4 = vadd.f32 1.0, %v6399_v35 }
 0x4d6   :  { %6404 = vrcp.f32 %v5291_v60  ;;  %v5292_v0 = vadd.f32 1.0, %v6401_v36 }
 0x4d7   :  { %6406 = vrcp.f32 %v5290_v4 }
 0x4d8   :  { %6408 = vrcp.f32 %v5292_v0 }
 0x4df   :  { %v6403_v46 = vpop.eup %6402 }
 0x4e0   :  { %v6405_v40 = vpop.eup %6404 }
 0x4e1   :  { %v6407_v52 = vpop.eup %6406 }
 0x4e2   :  { %v6409_v42 = vpop.eup %6408  ;;  %v5376_v30 = vcombine.low %v6403_v46, %v6407_v52 }
 0x4e3   :  { %v5377_v22 = vcombine.low %v6405_v40, %v6409_v42 }
 0x4e4   :  { %v5398_v1 = vrot.slane %v5376_v30, %v9119_v21 }
 0x4e5   :  { %v5405_v16 = vrot.slane %v5377_v22, %v9119_v21 }
 0x4e7   :  { %v5407_v39 = vcombine.low %v5398_v1, %v5405_v16 }
 0x4e9   :  { %v5421_v32 = vrot.slane %v5407_v39, %v9119_v21 }
 0x4eb   :  { %v5422_v31 = vcombine.low %v5414_v61, %v5421_v32 }
 0x4ed   :  { %5426 = vst [vmem:[#allocation3 + $0x8] sm:$0xff] %v5422_v31 }
 0x4ee   :  { %5431 = vsyncadd [#allocation4], 208  ;;  %s6472_s5 = smov [#allocation3]  }
 0x4ef   :  { %s5433_s27 = sshll.u32 %s6472_s5, 4  ;;  %s5434_s27 = int_to_ptr.vmem [resolvable:$true] %s5433_s27 }
 0x4f0   :  { %s6446_s28 = scalar_lea.vmem %s5434_s27, 48  ;;  %s6450_s29 = scalar_lea.vmem %s5434_s27, 256 }
 0x4f1   :  { %p6447_p0 = scmp.ne.s32.totalorder %s5434_s27, %s6446_s28  ;;  %p6451_p1 = scmp.lt.s32.totalorder %s5434_s27, %s5434_s27 }
 0x4f2   :  { %p6452_p2 = scmp.lt.s32.totalorder %s6450_s29, %s6446_s28 }
 0x4f4   :  { %p6453_p3 = por %p6452_p2, %p6451_p1 }
 0x4f6   :  { %p6454_p4 = pnand %p6453_p3, %p6447_p0 }
 0x4f8   :  { %6457 = shalt.err (!%p6454_p4)
}
 0x4f9   :  { %s6458_s10 = scalar_lea.hbm %s9208_s9, 48 }
 0x4fa   :  { %p6459_p5 = scmp.ne.s32.totalorder %s9208_s9, %s6458_s10  ;;  %p6462_p6 = scmp.lt.u32.totalorder %s6458_s10, %s9208_s9 }
 0x4fc   :  { %p6464_p7 = pnand %p6462_p6, %p6459_p5 }
 0x4fe   :  { %6467 = shalt.err (!%p6464_p7)
}
 0x4ff   :  { %5436 = dma.vmem_to_hbm [thread:$0]  %s5434_s27, 48, %s9208_s9, [#allocation4]  }
 0x500   :  { %6468 = dma.done.wait [#allocation4], 256  }
 0x501   :  { %6469 = vsyncadd [#allocation4], 4294967040 }
 0x502   :  { %5440 = vsyncpa [#allocation4], 1 }

</bundles_post_ra>
